<compile_context>
chip_gen: v7x
topology: tpu7x:2x2x1
jax: 0.10.0
libtpu: 0.0.40
codegen_flags: <defaults>
</compile_context>

<pallas_src>
import functools
import math

import jax
import jax.numpy as jnp
from jax.experimental import pallas as pl
from jax.experimental.pallas import tpu as pltpu


# ----------------------------- config (small ViT) -----------------------------
class Config:
    num_channels = 3
    image_size = 16
    patch_size = 8
    hidden_size = 32
    num_attention_heads = 4
    intermediate_size = 64
    num_hidden_layers = 2
    layer_norm_eps = 1e-12          # ViTConfig default


# Row offsets (per layer) inside the packed f32 vector slab.
_LN1_G, _LN1_B, _LN2_G, _LN2_B, _BO, _B2, _B1, _BQKV = 0, 1, 2, 3, 4, 5, 6, 7


# --------------------------------- kernel -------------------------------------
def fused_vit_kernel(patches_ref, w_attn_ref, w_mlp_ref, w_misc_ref, vecs_ref,
                     last_ref, pool_ref, *,
                     num_layers, num_heads, inter, d_patch, eps):
    B, S, _ = patches_ref.shape
    H = w_misc_ref.shape[1]
    nh = num_heads
    hd = H // nh
    I = inter
    G = 3 * nh                          # fused per-head Q/K/V weight groups
    rpl = _BQKV + G                     # vector-slab rows per layer
    scale = 1.0 / math.sqrt(hd)
    f32, bf16 = jnp.float32, jnp.bfloat16

    def layer_norm(x, grow, brow):      # gamma/beta live in the f32 vector slab
        g = vecs_ref[grow, 0:H]
        b = vecs_ref[brow, 0:H]
        mu = jnp.mean(x, axis=-1, keepdims=True)
        var = jnp.mean(jnp.square(x - mu), axis=-1, keepdims=True)
        return (x - mu) * jax.lax.rsqrt(var + eps) * g + b

    # ---- patch embedding; CLS token + patch bias are folded into the pos slab ----
    patch_w = w_misc_ref[0:d_patch, :]                               # (D, H) bf16
    pos = vecs_ref[0:S, 0:H]                                         # (S, H) f32
    x = jnp.einsum("bsd,dh->bsh", patches_ref[...], patch_w,
                   preferred_element_type=f32) + pos[None]           # (B, S, H) f32
    # (hidden_dropout is identity in eval mode)

    # ---- transformer layers (static unroll) ----
    for layer in range(num_layers):
        vb = S + layer * rpl

        # --- self-attention (pre-LN), per-head batched projections ---
        y = layer_norm(x, vb + _LN1_G, vb + _LN1_B).astype(bf16)     # (B, S, H)
        wqkv = w_attn_ref[layer, 0:G]                                # (3nh, H, hd) bf16
        y_bc = jnp.broadcast_to(y[None], (G, B, S, H)).reshape(G * B, S, H)
        w_bc = jnp.broadcast_to(wqkv[:, None], (G, B, H, hd)).reshape(G * B, H, hd)
        qkv = jnp.einsum("gsh,ghd->gsd", y_bc, w_bc,
                         preferred_element_type=f32)                 # (3nh*B, S, hd)
        bqkv = vecs_ref[vb + _BQKV: vb + _BQKV + G, 0:hd]            # (3nh, hd) f32
        bias = jnp.broadcast_to(bqkv[:, None, :], (G, B, hd)).reshape(G * B, 1, hd)
        qkv = qkv + bias

        q = (qkv[0:nh * B] * scale).astype(bf16)                     # (nh*B, S, hd)
        k = qkv[nh * B:2 * nh * B].astype(bf16)
        v = qkv[2 * nh * B:3 * nh * B].astype(bf16)

        s = jnp.einsum("gqd,gkd->gqk", q, k,
                       preferred_element_type=f32)                   # (nh*B, S, S)
        s = s - jnp.max(s, axis=-1, keepdims=True)
        p = jnp.exp(s)
        p = p / jnp.sum(p, axis=-1, keepdims=True)                   # exact softmax
        # (attention_probs_dropout is identity in eval mode)
        ctx = jnp.einsum("gqk,gkd->gqd", p.astype(bf16), v,
                         preferred_element_type=f32)                 # (nh*B, S, hd)

        # per-head output projection (weights stored transposed), heads summed by
        # static leading-axis adds -> no axis=-1 concat / lane relayout.
        wo_t = w_attn_ref[layer, G:G + nh]                           # (nh, H, hd) bf16
        wo_bc = jnp.broadcast_to(wo_t[:, None], (nh, B, H, hd)).reshape(nh * B, H, hd)
        proj = jnp.einsum("gqd,ghd->gqh", ctx.astype(bf16), wo_bc,
                          preferred_element_type=f32)                # (nh*B, S, H)
        attn_out = proj[0:B]
        for h in range(1, nh):
            attn_out = attn_out + proj[h * B:(h + 1) * B]
        attn_out = attn_out + vecs_ref[vb + _BO, 0:H]
        h1 = x + attn_out                                            # residual 1

        # --- MLP (pre-LN) ---
        z = layer_norm(h1, vb + _LN2_G, vb + _LN2_B).astype(bf16)
        w1 = w_mlp_ref[layer, 0, 0:H, 0:I]                           # (H, I) bf16
        w2 = w_mlp_ref[layer, 1, 0:I, 0:H]                           # (I, H) bf16
        ff = jnp.einsum("bsh,hi->bsi", z, w1,
                        preferred_element_type=f32) + vecs_ref[vb + _B1, 0:I]
        # TODO(synk): HF ViT uses exact erf-GELU; tanh-approx GELU used (~1e-3 diff).
        ff = jax.nn.gelu(ff, approximate=True).astype(bf16)
        ff2 = jnp.einsum("bsi,ih->bsh", ff, w2,
                         preferred_element_type=f32) + vecs_ref[vb + _B2, 0:H]
        x = h1 + ff2                                                 # residual 2

    # ---- final LayerNorm + pooler ----
    fb = S + num_layers * rpl
    xf = layer_norm(x, fb + 0, fb + 1)
    last_ref[...] = xf                                               # last_hidden_state
    cls_tok = xf[:, 0, :].astype(bf16)                               # (B, H) CLS token
    pool_w = w_misc_ref[d_patch:d_patch + H, :]                      # (H, H) bf16
    pool_ref[...] = jnp.tanh(
        jnp.dot(cls_tok, pool_w, preferred_element_type=f32) + vecs_ref[fb + 2, 0:H])


# ------------------------------ parameter init --------------------------------
def init_params(key, cfg):
    H, P, C = cfg.hidden_size, cfg.patch_size, cfg.num_channels
    I, L = cfg.intermediate_size, cfg.num_hidden_layers
    D = C * P * P
    S = (cfg.image_size // P) ** 2 + 1       # ViTModel: CLS token only
    keys = iter(jax.random.split(key, 8 + 8 * L))
    std = 0.02

    def normal(shape):
        return (std * jax.random.normal(next(keys), shape)).astype(jnp.float32)

    params = dict(
        patch_w=normal((D, H)),              # Conv2d(P, stride=P) as matmul
        patch_b=jnp.zeros((H,), jnp.float32),
        cls_token=normal((H,)),
        pos_embed=normal((S, H)),
        lnf_g=jnp.ones((H,), jnp.float32),
        lnf_b=jnp.zeros((H,), jnp.float32),
        pool_w=normal((H, H)),
        pool_b=jnp.zeros((H,), jnp.float32),
        layers=[],
    )
    for _ in range(L):
        params["layers"].append(dict(
            ln1_g=jnp.ones((H,), jnp.float32), ln1_b=jnp.zeros((H,), jnp.float32),
            wq=normal((H, H)), bq=jnp.zeros((H,), jnp.float32),
            wk=normal((H, H)), bk=jnp.zeros((H,), jnp.float32),
            wv=normal((H, H)), bv=jnp.zeros((H,), jnp.float32),
            wo=normal((H, H)), bo=jnp.zeros((H,), jnp.float32),
            ln2_g=jnp.ones((H,), jnp.float32), ln2_b=jnp.zeros((H,), jnp.float32),
            w1=normal((H, I)), b1=jnp.zeros((I,), jnp.float32),
            w2=normal((I, H)), b2=jnp.zeros((H,), jnp.float32),
        ))
    return params


def pack_params(params, cfg):
    """Pack all parameters into 4 contiguous slabs (few DMAs, static in-kernel slices)."""
    H, nh = cfg.hidden_size, cfg.num_attention_heads
    hd = H // nh
    I, L = cfg.intermediate_size, cfg.num_hidden_layers
    D = cfg.num_channels * cfg.patch_size ** 2
    S = (cfg.image_size // cfg.patch_size) ** 2 + 1
    G = 3 * nh
    Q = max(H, I)
    rpl = _BQKV + G

    def heads_cols(w):                       # (H, H) -> (nh, H, hd) per-head columns
        return jnp.stack([w[:, h * hd:(h + 1) * hd] for h in range(nh)], axis=0)

    def vrow(v):                             # pad a 1-D vector into a (1, Q) f32 row
        v = jnp.asarray(v, jnp.float32).reshape(-1)
        return jnp.zeros((1, Q), jnp.float32).at[0, :v.shape[0]].set(v)

    vec_rows = []
    # position slab: row 0 = cls + pos[0]; rows 1: = pos[1:] + patch_bias (folded).
    pos_full = jnp.concatenate(
        [(params["cls_token"] + params["pos_embed"][0])[None, :],
         params["pos_embed"][1:] + params["patch_b"][None, :]], axis=0)      # (S, H)
    for r in range(S):
        vec_rows.append(vrow(pos_full[r]))

    w_attn, w_mlp = [], []
    for lp in params["layers"]:
        qkv_h = jnp.concatenate(
            [heads_cols(lp["wq"]), heads_cols(lp["wk"]), heads_cols(lp["wv"])], axis=0)
        wo_t = jnp.stack([lp["wo"][h * hd:(h + 1) * hd, :].T for h in range(nh)],
                         axis=0)                                             # (nh, H, hd)
        w_attn.append(jnp.concatenate([qkv_h, wo_t], axis=0))                # (4nh, H, hd)

        m = jnp.zeros((2, Q, Q), jnp.float32)
        m = m.at[0, :H, :I].set(lp["w1"]).at[1, :I, :H].set(lp["w2"])
        w_mlp.append(m)

        vec_rows += [vrow(lp["ln1_g"]), vrow(lp["ln1_b"]),
                     vrow(lp["ln2_g"]), vrow(lp["ln2_b"]),
                     vrow(lp["bo"]), vrow(lp["b2"]), vrow(lp["b1"])]
        bqkv = jnp.concatenate([lp["bq"], lp["bk"], lp["bv"]]).reshape(G, hd)
        for r in range(G):
            vec_rows.append(vrow(bqkv[r]))

    vec_rows += [vrow(params["lnf_g"]), vrow(params["lnf_b"]), vrow(params["pool_b"])]

    packed = dict(
        w_attn=jnp.stack(w_attn, axis=0).astype(jnp.bfloat16),      # (L, 4nh, H, hd)
        w_mlp=jnp.stack(w_mlp, axis=0).astype(jnp.bfloat16),        # (L, 2, Q, Q)
        w_misc=jnp.concatenate([params["patch_w"], params["pool_w"]],
                               axis=0).astype(jnp.bfloat16),         # (D+H, H)
        vecs=jnp.concatenate(vec_rows, axis=0),                      # (S+L*rpl+3, Q) f32
    )
    assert packed["vecs"].shape[0] == S + L * rpl + 3
    return packed


# --------------------------------- wrapper ------------------------------------
def distilled_vision_encoder_forward(packed, pixel_values, cfg=Config):
    B, C, Hi, Wi = pixel_values.shape
    P, H = cfg.patch_size, cfg.hidden_size
    I, L, nh = cfg.intermediate_size, cfg.num_hidden_layers, cfg.num_attention_heads
    hd = H // nh
    D = C * P * P
    nph, npw = Hi // P, Wi // P
    N = nph * npw
    S = N + 1

    # im2col of Conv2d(kernel=P, stride=P) + flatten(2).transpose(1,2); a leading zero
    # row stands in for the CLS token (its embedding is folded into the pos slab).
    patches = pixel_values.reshape(B, C, nph, P, npw, P)
    patches = patches.transpose(0, 2, 4, 1, 3, 5).reshape(B, N, D)
    patches = jnp.concatenate(
        [jnp.zeros((B, 1, D), patches.dtype), patches], axis=1).astype(jnp.bfloat16)

    w_attn, w_mlp = packed["w_attn"], packed["w_mlp"]
    w_misc, vecs = packed["w_misc"], packed["vecs"]

    # Batch tiling: degenerate grid=(1,) at tiny B; at serving batch sizes the
    # "parallel" B axis pipelines activations and splits across v7x TensorCores.
    b_tile = 8 if (B > 8 and B % 8 == 0) else B
    grid = (B // b_tile,)

    kernel = functools.partial(
        fused_vit_kernel, num_layers=L, num_heads=nh, inter=I, d_patch=D,
        eps=cfg.layer_norm_eps)

    flops = (2 * B * S * D * H
             + L * (2 * B * S * H * 3 * H + 4 * B * nh * S * S * hd
                    + 2 * B * S * H * H + 4 * B * S * H * I)
             + 2 * B * H * H)
    transc = L * (B * nh * S * S + B * S * I) + B * H
    bytes_acc = (sum(int(a.size) * a.dtype.itemsize
                     for a in (patches, w_attn, w_mlp, w_misc, vecs))
                 + B * S * H * 4 + B * H * 4)

    last_hidden_state, pooler_output = pl.pallas_call(
        kernel,
        out_shape=(jax.ShapeDtypeStruct((B, S, H), jnp.float32),
                   jax.ShapeDtypeStruct((B, H), jnp.float32)),
        grid=grid,
        in_specs=[
            pl.BlockSpec((b_tile, S, D), lambda i: (i, 0, 0)),       # activations
            pl.BlockSpec(w_attn.shape, lambda i: (0, 0, 0, 0)),      # resident weights
            pl.BlockSpec(w_mlp.shape, lambda i: (0, 0, 0, 0)),
            pl.BlockSpec(w_misc.shape, lambda i: (0, 0)),
            pl.BlockSpec(vecs.shape, lambda i: (0, 0)),
        ],
        out_specs=(
            pl.BlockSpec((b_tile, S, H), lambda i: (i, 0, 0)),
            pl.BlockSpec((b_tile, H), lambda i: (i, 0)),
        ),
        compiler_params=pltpu.CompilerParams(dimension_semantics=("parallel",)),
        cost_estimate=pl.CostEstimate(
            flops=flops, transcendentals=transc, bytes_accessed=bytes_acc),
    )(patches, w_attn, w_mlp, w_misc, vecs)
    return last_hidden_state, pooler_output


# ----------------------------------- main --------------------------------------
if __name__ == "__main__":
    cfg = Config
    key = jax.random.PRNGKey(0)
    k_param, k_input = jax.random.split(key)
    params = init_params(k_param, cfg)
    packed = pack_params(params, cfg)
    pixel_values = jax.random.normal(
        k_input, (2, cfg.num_channels, cfg.image_size, cfg.image_size),
        dtype=jnp.float32)

    fwd = jax.jit(functools.partial(distilled_vision_encoder_forward, cfg=cfg))
    last_hidden_state, pooler_output = fwd(packed, pixel_values)
    jax.block_until_ready((last_hidden_state, pooler_output))

    S = (cfg.image_size // cfg.patch_size) ** 2 + 1
    assert last_hidden_state.shape == (2, S, cfg.hidden_size)
    assert pooler_output.shape == (2, cfg.hidden_size)
    assert bool(jnp.all(jnp.isfinite(last_hidden_state)))
    assert bool(jnp.all(jnp.isfinite(pooler_output)))
    print("KERNEL_OK")
</pallas_src>

<mosaic_0001>
module attributes {stable_mosaic.version = 11 : i64} {
  func.func @fused_vit_kernel(%arg0: i32, %arg1: memref<2x5x192xbf16, #tpu.memory_space<vmem>>, %arg2: memref<2x16x32x8xbf16, #tpu.memory_space<vmem>>, %arg3: memref<2x2x64x64xbf16, #tpu.memory_space<vmem>>, %arg4: memref<224x32xbf16, #tpu.memory_space<vmem>>, %arg5: memref<46x64xf32, #tpu.memory_space<vmem>>, %arg6: memref<2x5x32xf32, #tpu.memory_space<vmem>>, %arg7: memref<2x32xf32, #tpu.memory_space<vmem>>) attributes {dimension_semantics = [#tpu.dimension_semantics<parallel>], iteration_bounds = array<i64: 1>, scalar_prefetch = 0 : i64, scratch_operands = 0 : i64, tpu.core_type = #tpu.core_type<tc>, window_params = [{transform_indices = @transform_0, window_bounds = array<i64: 2, 5, 192>}, {pipeline_mode = #tpu.pipeline_mode<synchronous>, transform_indices = @transform_1, window_bounds = array<i64: 2, 16, 32, 8>}, {pipeline_mode = #tpu.pipeline_mode<synchronous>, transform_indices = @transform_2, window_bounds = array<i64: 2, 2, 64, 64>}, {pipeline_mode = #tpu.pipeline_mode<synchronous>, transform_indices = @transform_3, window_bounds = array<i64: 224, 32>}, {pipeline_mode = #tpu.pipeline_mode<synchronous>, transform_indices = @transform_4, window_bounds = array<i64: 46, 64>}, {transform_indices = @transform_5, window_bounds = array<i64: 2, 5, 32>}, {transform_indices = @transform_6, window_bounds = array<i64: 2, 32>}]} {
    %c0 = arith.constant 0 : index
    %c0_0 = arith.constant 0 : index
    %0 = vector.load %arg4[%c0, %c0_0] : memref<224x32xbf16, #tpu.memory_space<vmem>>, vector<192x32xbf16>
    %c0_1 = arith.constant 0 : index
    %c0_2 = arith.constant 0 : index
    %1 = vector.load %arg5[%c0_1, %c0_2] : memref<46x64xf32, #tpu.memory_space<vmem>>, vector<5x32xf32>
    %c0_3 = arith.constant 0 : index
    %c0_4 = arith.constant 0 : index
    %c0_5 = arith.constant 0 : index
    %2 = vector.load %arg1[%c0_3, %c0_4, %c0_5] : memref<2x5x192xbf16, #tpu.memory_space<vmem>>, vector<2x5x192xbf16>
    "tpu.trace_start"() <{level = 10 : i32, message = "bsd,dh->bsh"}> : () -> ()
    %cst = arith.constant dense<0.000000e+00> : vector<2x5x32xf32>
    %3 = tpu.matmul %2, %0, %cst {dimension_numbers = #tpu.dot_dimension_numbers<[2], [0], [0, 1], [1], [0, 0, 0, 1, 1, 1], [], []>} : vector<2x5x192xbf16>, vector<192x32xbf16>, vector<2x5x32xf32> -> vector<2x5x32xf32>
    "tpu.trace_stop"() : () -> ()
    %4 = vector.shape_cast %1 : vector<5x32xf32> to vector<1x5x32xf32>
    %5 = vector.broadcast %4 : vector<1x5x32xf32> to vector<2x5x32xf32>
    %6 = arith.addf %3, %5 : vector<2x5x32xf32>
    %c5 = arith.constant 5 : index
    %c0_6 = arith.constant 0 : index
    %7 = vector.load %arg5[%c5, %c0_6] : memref<46x64xf32, #tpu.memory_space<vmem>>, vector<1x32xf32>
    %8 = vector.shape_cast %7 : vector<1x32xf32> to vector<32xf32>
    %c6 = arith.constant 6 : index
    %c0_7 = arith.constant 0 : index
    %9 = vector.load %arg5[%c6, %c0_7] : memref<46x64xf32, #tpu.memory_space<vmem>>, vector<1x32xf32>
    %10 = vector.shape_cast %9 : vector<1x32xf32> to vector<32xf32>
    %cst_8 = arith.constant dense<0.000000e+00> : vector<2x5xf32>
    %11 = vector.multi_reduction <add>, %6, %cst_8 [2] : vector<2x5x32xf32> to vector<2x5xf32>
    %12 = vector.shape_cast %11 : vector<2x5xf32> to vector<2x5x1xf32>
    %cst_9 = arith.constant 3.200000e+01 : f32
    %13 = vector.broadcast %cst_9 : f32 to vector<2x5x1xf32>
    %14 = arith.divf %12, %13 : vector<2x5x1xf32>
    %15 = vector.broadcast %14 : vector<2x5x1xf32> to vector<2x5x32xf32>
    %16 = arith.subf %6, %15 : vector<2x5x32xf32>
    %17 = arith.mulf %16, %16 : vector<2x5x32xf32>
    %cst_10 = arith.constant dense<0.000000e+00> : vector<2x5xf32>
    %18 = vector.multi_reduction <add>, %17, %cst_10 [2] : vector<2x5x32xf32> to vector<2x5xf32>
    %19 = vector.shape_cast %18 : vector<2x5xf32> to vector<2x5x1xf32>
    %cst_11 = arith.constant 3.200000e+01 : f32
    %20 = vector.broadcast %cst_11 : f32 to vector<2x5x1xf32>
    %21 = arith.divf %19, %20 : vector<2x5x1xf32>
    %22 = vector.broadcast %14 : vector<2x5x1xf32> to vector<2x5x32xf32>
    %23 = arith.subf %6, %22 : vector<2x5x32xf32>
    %cst_12 = arith.constant 9.99999996E-13 : f32
    %24 = vector.broadcast %cst_12 : f32 to vector<2x5x1xf32>
    %25 = arith.addf %21, %24 : vector<2x5x1xf32>
    %26 = math.rsqrt %25 : vector<2x5x1xf32>
    %27 = vector.broadcast %26 : vector<2x5x1xf32> to vector<2x5x32xf32>
    %28 = arith.mulf %23, %27 : vector<2x5x32xf32>
    %29 = vector.shape_cast %8 : vector<32xf32> to vector<1x1x32xf32>
    %30 = vector.broadcast %29 : vector<1x1x32xf32> to vector<2x5x32xf32>
    %31 = arith.mulf %28, %30 : vector<2x5x32xf32>
    %32 = vector.shape_cast %10 : vector<32xf32> to vector<1x1x32xf32>
    %33 = vector.broadcast %32 : vector<1x1x32xf32> to vector<2x5x32xf32>
    %34 = arith.addf %31, %33 : vector<2x5x32xf32>
    %35 = arith.truncf %34 : vector<2x5x32xf32> to vector<2x5x32xbf16>
    %c0_13 = arith.constant 0 : index
    %c0_14 = arith.constant 0 : index
    %c0_15 = arith.constant 0 : index
    %c0_16 = arith.constant 0 : index
    %36 = vector.load %arg2[%c0_13, %c0_14, %c0_15, %c0_16] : memref<2x16x32x8xbf16, #tpu.memory_space<vmem>>, vector<1x12x32x8xbf16>
    %37 = vector.shape_cast %36 : vector<1x12x32x8xbf16> to vector<12x32x8xbf16>
    %38 = vector.shape_cast %35 : vector<2x5x32xbf16> to vector<1x2x5x32xbf16>
    %39 = vector.shape_cast %38 : vector<1x2x5x32xbf16> to vector<1x2x5x32xbf16>
    %40 = vector.broadcast %39 : vector<1x2x5x32xbf16> to vector<12x2x5x32xbf16>
    %41 = vector.shape_cast %40 : vector<12x2x5x32xbf16> to vector<24x5x32xbf16>
    %42 = vector.shape_cast %37 : vector<12x32x8xbf16> to vector<12x1x32x8xbf16>
    %43 = vector.shape_cast %42 : vector<12x1x32x8xbf16> to vector<12x1x32x8xbf16>
    %44 = vector.broadcast %43 : vector<12x1x32x8xbf16> to vector<12x2x32x8xbf16>
    %45 = vector.shape_cast %44 : vector<12x2x32x8xbf16> to vector<24x32x8xbf16>
    "tpu.trace_start"() <{level = 10 : i32, message = "gsh,ghd->gsd"}> : () -> ()
    %cst_17 = arith.constant dense<0.000000e+00> : vector<24x5x8xf32>
    %46 = tpu.matmul %41, %45, %cst_17 {dimension_numbers = #tpu.dot_dimension_numbers<[2], [1], [1], [2], [0, 0, 0, 1, 1, 2], [0], [0]>} : vector<24x5x32xbf16>, vector<24x32x8xbf16>, vector<24x5x8xf32> -> vector<24x5x8xf32>
    "tpu.trace_stop"() : () -> ()
    %c12 = arith.constant 12 : index
    %c0_18 = arith.constant 0 : index
    %47 = vector.load %arg5[%c12, %c0_18] : memref<46x64xf32, #tpu.memory_space<vmem>>, vector<12x8xf32>
    %48 = vector.shape_cast %47 : vector<12x8xf32> to vector<12x1x8xf32>
    %49 = vector.shape_cast %48 : vector<12x1x8xf32> to vector<12x1x8xf32>
    %50 = vector.broadcast %49 : vector<12x1x8xf32> to vector<12x2x8xf32>
    %51 = vector.shape_cast %50 : vector<12x2x8xf32> to vector<24x1x8xf32>
    %52 = vector.broadcast %51 : vector<24x1x8xf32> to vector<24x5x8xf32>
    %53 = arith.addf %46, %52 : vector<24x5x8xf32>
    %54 = vector.extract_strided_slice %53 {offsets = [0, 0, 0], sizes = [8, 5, 8], strides = [1, 1, 1]} : vector<24x5x8xf32> to vector<8x5x8xf32>
    %cst_19 = arith.constant 0.353553385 : f32
    %55 = vector.broadcast %cst_19 : f32 to vector<8x5x8xf32>
    %56 = arith.mulf %54, %55 : vector<8x5x8xf32>
    %57 = arith.truncf %56 : vector<8x5x8xf32> to vector<8x5x8xbf16>
    %58 = vector.extract_strided_slice %53 {offsets = [8, 0, 0], sizes = [8, 5, 8], strides = [1, 1, 1]} : vector<24x5x8xf32> to vector<8x5x8xf32>
    %59 = arith.truncf %58 : vector<8x5x8xf32> to vector<8x5x8xbf16>
    %60 = vector.extract_strided_slice %53 {offsets = [16, 0, 0], sizes = [8, 5, 8], strides = [1, 1, 1]} : vector<24x5x8xf32> to vector<8x5x8xf32>
    %61 = arith.truncf %60 : vector<8x5x8xf32> to vector<8x5x8xbf16>
    "tpu.trace_start"() <{level = 10 : i32, message = "gqd,gkd->gqk"}> : () -> ()
    %cst_20 = arith.constant dense<0.000000e+00> : vector<8x5x5xf32>
    %62 = tpu.matmul %57, %59, %cst_20 {dimension_numbers = #tpu.dot_dimension_numbers<[2], [2], [1], [1], [0, 0, 0, 1, 1, 1], [0], [0]>} : vector<8x5x8xbf16>, vector<8x5x8xbf16>, vector<8x5x5xf32> -> vector<8x5x5xf32>
    "tpu.trace_stop"() : () -> ()
    %cst_21 = arith.constant dense<0xFF800000> : vector<8x5xf32>
    %63 = vector.multi_reduction <maximumf>, %62, %cst_21 [2] : vector<8x5x5xf32> to vector<8x5xf32>
    %64 = vector.shape_cast %63 : vector<8x5xf32> to vector<8x5x1xf32>
    %65 = vector.broadcast %64 : vector<8x5x1xf32> to vector<8x5x5xf32>
    %66 = arith.subf %62, %65 : vector<8x5x5xf32>
    %67 = math.exp %66 : vector<8x5x5xf32>
    %cst_22 = arith.constant dense<0.000000e+00> : vector<8x5xf32>
    %68 = vector.multi_reduction <add>, %67, %cst_22 [2] : vector<8x5x5xf32> to vector<8x5xf32>
    %69 = vector.shape_cast %68 : vector<8x5xf32> to vector<8x5x1xf32>
    %70 = vector.broadcast %69 : vector<8x5x1xf32> to vector<8x5x5xf32>
    %71 = arith.divf %67, %70 : vector<8x5x5xf32>
    %72 = arith.truncf %71 : vector<8x5x5xf32> to vector<8x5x5xbf16>
    "tpu.trace_start"() <{level = 10 : i32, message = "gqk,gkd->gqd"}> : () -> ()
    %cst_23 = arith.constant dense<0.000000e+00> : vector<8x5x8xf32>
    %73 = tpu.matmul %72, %61, %cst_23 {dimension_numbers = #tpu.dot_dimension_numbers<[2], [1], [1], [2], [0, 0, 0, 1, 1, 2], [0], [0]>} : vector<8x5x5xbf16>, vector<8x5x8xbf16>, vector<8x5x8xf32> -> vector<8x5x8xf32>
    "tpu.trace_stop"() : () -> ()
    %c0_24 = arith.constant 0 : index
    %c12_25 = arith.constant 12 : index
    %c0_26 = arith.constant 0 : index
    %c0_27 = arith.constant 0 : index
    %74 = vector.load %arg2[%c0_24, %c12_25, %c0_26, %c0_27] : memref<2x16x32x8xbf16, #tpu.memory_space<vmem>>, vector<1x4x32x8xbf16>
    %75 = vector.shape_cast %74 : vector<1x4x32x8xbf16> to vector<4x32x8xbf16>
    %76 = vector.shape_cast %75 : vector<4x32x8xbf16> to vector<4x1x32x8xbf16>
    %77 = vector.shape_cast %76 : vector<4x1x32x8xbf16> to vector<4x1x32x8xbf16>
    %78 = vector.broadcast %77 : vector<4x1x32x8xbf16> to vector<4x2x32x8xbf16>
    %79 = vector.shape_cast %78 : vector<4x2x32x8xbf16> to vector<8x32x8xbf16>
    %80 = arith.truncf %73 : vector<8x5x8xf32> to vector<8x5x8xbf16>
    "tpu.trace_start"() <{level = 10 : i32, message = "gqd,ghd->gqh"}> : () -> ()
    %cst_28 = arith.constant dense<0.000000e+00> : vector<8x5x32xf32>
    %81 = tpu.matmul %80, %79, %cst_28 {dimension_numbers = #tpu.dot_dimension_numbers<[2], [2], [1], [1], [0, 0, 0, 1, 1, 1], [0], [0]>} : vector<8x5x8xbf16>, vector<8x32x8xbf16>, vector<8x5x32xf32> -> vector<8x5x32xf32>
    "tpu.trace_stop"() : () -> ()
    %82 = vector.extract_strided_slice %81 {offsets = [0, 0, 0], sizes = [2, 5, 32], strides = [1, 1, 1]} : vector<8x5x32xf32> to vector<2x5x32xf32>
    %83 = vector.extract_strided_slice %81 {offsets = [2, 0, 0], sizes = [2, 5, 32], strides = [1, 1, 1]} : vector<8x5x32xf32> to vector<2x5x32xf32>
    %84 = arith.addf %82, %83 : vector<2x5x32xf32>
    %85 = vector.extract_strided_slice %81 {offsets = [4, 0, 0], sizes = [2, 5, 32], strides = [1, 1, 1]} : vector<8x5x32xf32> to vector<2x5x32xf32>
    %86 = arith.addf %84, %85 : vector<2x5x32xf32>
    %87 = vector.extract_strided_slice %81 {offsets = [6, 0, 0], sizes = [2, 5, 32], strides = [1, 1, 1]} : vector<8x5x32xf32> to vector<2x5x32xf32>
    %88 = arith.addf %86, %87 : vector<2x5x32xf32>
    %c9 = arith.constant 9 : index
    %c0_29 = arith.constant 0 : index
    %89 = vector.load %arg5[%c9, %c0_29] : memref<46x64xf32, #tpu.memory_space<vmem>>, vector<1x32xf32>
    %90 = vector.shape_cast %89 : vector<1x32xf32> to vector<32xf32>
    %91 = vector.shape_cast %90 : vector<32xf32> to vector<1x1x32xf32>
    %92 = vector.broadcast %91 : vector<1x1x32xf32> to vector<2x5x32xf32>
    %93 = arith.addf %88, %92 : vector<2x5x32xf32>
    %94 = arith.addf %6, %93 : vector<2x5x32xf32>
    %c7 = arith.constant 7 : index
    %c0_30 = arith.constant 0 : index
    %95 = vector.load %arg5[%c7, %c0_30] : memref<46x64xf32, #tpu.memory_space<vmem>>, vector<1x32xf32>
    %96 = vector.shape_cast %95 : vector<1x32xf32> to vector<32xf32>
    %c8 = arith.constant 8 : index
    %c0_31 = arith.constant 0 : index
    %97 = vector.load %arg5[%c8, %c0_31] : memref<46x64xf32, #tpu.memory_space<vmem>>, vector<1x32xf32>
    %98 = vector.shape_cast %97 : vector<1x32xf32> to vector<32xf32>
    %cst_32 = arith.constant dense<0.000000e+00> : vector<2x5xf32>
    %99 = vector.multi_reduction <add>, %94, %cst_32 [2] : vector<2x5x32xf32> to vector<2x5xf32>
    %100 = vector.shape_cast %99 : vector<2x5xf32> to vector<2x5x1xf32>
    %cst_33 = arith.constant 3.200000e+01 : f32
    %101 = vector.broadcast %cst_33 : f32 to vector<2x5x1xf32>
    %102 = arith.divf %100, %101 : vector<2x5x1xf32>
    %103 = vector.broadcast %102 : vector<2x5x1xf32> to vector<2x5x32xf32>
    %104 = arith.subf %94, %103 : vector<2x5x32xf32>
    %105 = arith.mulf %104, %104 : vector<2x5x32xf32>
    %cst_34 = arith.constant dense<0.000000e+00> : vector<2x5xf32>
    %106 = vector.multi_reduction <add>, %105, %cst_34 [2] : vector<2x5x32xf32> to vector<2x5xf32>
    %107 = vector.shape_cast %106 : vector<2x5xf32> to vector<2x5x1xf32>
    %cst_35 = arith.constant 3.200000e+01 : f32
    %108 = vector.broadcast %cst_35 : f32 to vector<2x5x1xf32>
    %109 = arith.divf %107, %108 : vector<2x5x1xf32>
    %110 = vector.broadcast %102 : vector<2x5x1xf32> to vector<2x5x32xf32>
    %111 = arith.subf %94, %110 : vector<2x5x32xf32>
    %cst_36 = arith.constant 9.99999996E-13 : f32
    %112 = vector.broadcast %cst_36 : f32 to vector<2x5x1xf32>
    %113 = arith.addf %109, %112 : vector<2x5x1xf32>
    %114 = math.rsqrt %113 : vector<2x5x1xf32>
    %115 = vector.broadcast %114 : vector<2x5x1xf32> to vector<2x5x32xf32>
    %116 = arith.mulf %111, %115 : vector<2x5x32xf32>
    %117 = vector.shape_cast %96 : vector<32xf32> to vector<1x1x32xf32>
    %118 = vector.broadcast %117 : vector<1x1x32xf32> to vector<2x5x32xf32>
    %119 = arith.mulf %116, %118 : vector<2x5x32xf32>
    %120 = vector.shape_cast %98 : vector<32xf32> to vector<1x1x32xf32>
    %121 = vector.broadcast %120 : vector<1x1x32xf32> to vector<2x5x32xf32>
    %122 = arith.addf %119, %121 : vector<2x5x32xf32>
    %123 = arith.truncf %122 : vector<2x5x32xf32> to vector<2x5x32xbf16>
    %c0_37 = arith.constant 0 : index
    %c0_38 = arith.constant 0 : index
    %c0_39 = arith.constant 0 : index
    %c0_40 = arith.constant 0 : index
    %124 = vector.load %arg3[%c0_37, %c0_38, %c0_39, %c0_40] : memref<2x2x64x64xbf16, #tpu.memory_space<vmem>>, vector<1x1x32x64xbf16>
    %125 = vector.shape_cast %124 : vector<1x1x32x64xbf16> to vector<32x64xbf16>
    %c0_41 = arith.constant 0 : index
    %c1 = arith.constant 1 : index
    %c0_42 = arith.constant 0 : index
    %c0_43 = arith.constant 0 : index
    %126 = vector.load %arg3[%c0_41, %c1, %c0_42, %c0_43] : memref<2x2x64x64xbf16, #tpu.memory_space<vmem>>, vector<1x1x64x32xbf16>
    %127 = vector.shape_cast %126 : vector<1x1x64x32xbf16> to vector<64x32xbf16>
    "tpu.trace_start"() <{level = 10 : i32, message = "bsh,hi->bsi"}> : () -> ()
    %cst_44 = arith.constant dense<0.000000e+00> : vector<2x5x64xf32>
    %128 = tpu.matmul %123, %125, %cst_44 {dimension_numbers = #tpu.dot_dimension_numbers<[2], [0], [0, 1], [1], [0, 0, 0, 1, 1, 1], [], []>} : vector<2x5x32xbf16>, vector<32x64xbf16>, vector<2x5x64xf32> -> vector<2x5x64xf32>
    "tpu.trace_stop"() : () -> ()
    %c11 = arith.constant 11 : index
    %c0_45 = arith.constant 0 : index
    %129 = vector.load %arg5[%c11, %c0_45] : memref<46x64xf32, #tpu.memory_space<vmem>>, vector<1x64xf32>
    %130 = vector.shape_cast %129 : vector<1x64xf32> to vector<64xf32>
    %131 = vector.shape_cast %130 : vector<64xf32> to vector<1x1x64xf32>
    %132 = vector.broadcast %131 : vector<1x1x64xf32> to vector<2x5x64xf32>
    %133 = arith.addf %128, %132 : vector<2x5x64xf32>
    %134 = arith.mulf %133, %133 : vector<2x5x64xf32>
    %135 = arith.mulf %133, %134 : vector<2x5x64xf32>
    %cst_46 = arith.constant 4.471500e-02 : f32
    %136 = vector.broadcast %cst_46 : f32 to vector<2x5x64xf32>
    %137 = arith.mulf %136, %135 : vector<2x5x64xf32>
    %138 = arith.addf %133, %137 : vector<2x5x64xf32>
    %cst_47 = arith.constant 0.797884583 : f32
    %139 = vector.broadcast %cst_47 : f32 to vector<2x5x64xf32>
    %140 = arith.mulf %139, %138 : vector<2x5x64xf32>
    %141 = math.tanh %140 : vector<2x5x64xf32>
    %cst_48 = arith.constant 1.000000e+00 : f32
    %142 = vector.broadcast %cst_48 : f32 to vector<2x5x64xf32>
    %143 = arith.addf %142, %141 : vector<2x5x64xf32>
    %cst_49 = arith.constant 5.000000e-01 : f32
    %144 = vector.broadcast %cst_49 : f32 to vector<2x5x64xf32>
    %145 = arith.mulf %144, %143 : vector<2x5x64xf32>
    %146 = arith.mulf %133, %145 : vector<2x5x64xf32>
    %147 = arith.truncf %146 : vector<2x5x64xf32> to vector<2x5x64xbf16>
    "tpu.trace_start"() <{level = 10 : i32, message = "bsi,ih->bsh"}> : () -> ()
    %cst_50 = arith.constant dense<0.000000e+00> : vector<2x5x32xf32>
    %148 = tpu.matmul %147, %127, %cst_50 {dimension_numbers = #tpu.dot_dimension_numbers<[2], [0], [0, 1], [1], [0, 0, 0, 1, 1, 1], [], []>} : vector<2x5x64xbf16>, vector<64x32xbf16>, vector<2x5x32xf32> -> vector<2x5x32xf32>
    "tpu.trace_stop"() : () -> ()
    %c10 = arith.constant 10 : index
    %c0_51 = arith.constant 0 : index
    %149 = vector.load %arg5[%c10, %c0_51] : memref<46x64xf32, #tpu.memory_space<vmem>>, vector<1x32xf32>
    %150 = vector.shape_cast %149 : vector<1x32xf32> to vector<32xf32>
    %151 = vector.shape_cast %150 : vector<32xf32> to vector<1x1x32xf32>
    %152 = vector.broadcast %151 : vector<1x1x32xf32> to vector<2x5x32xf32>
    %153 = arith.addf %148, %152 : vector<2x5x32xf32>
    %154 = arith.addf %94, %153 : vector<2x5x32xf32>
    %c24 = arith.constant 24 : index
    %c0_52 = arith.constant 0 : index
    %155 = vector.load %arg5[%c24, %c0_52] : memref<46x64xf32, #tpu.memory_space<vmem>>, vector<1x32xf32>
    %156 = vector.shape_cast %155 : vector<1x32xf32> to vector<32xf32>
    %c25 = arith.constant 25 : index
    %c0_53 = arith.constant 0 : index
    %157 = vector.load %arg5[%c25, %c0_53] : memref<46x64xf32, #tpu.memory_space<vmem>>, vector<1x32xf32>
    %158 = vector.shape_cast %157 : vector<1x32xf32> to vector<32xf32>
    %cst_54 = arith.constant dense<0.000000e+00> : vector<2x5xf32>
    %159 = vector.multi_reduction <add>, %154, %cst_54 [2] : vector<2x5x32xf32> to vector<2x5xf32>
    %160 = vector.shape_cast %159 : vector<2x5xf32> to vector<2x5x1xf32>
    %cst_55 = arith.constant 3.200000e+01 : f32
    %161 = vector.broadcast %cst_55 : f32 to vector<2x5x1xf32>
    %162 = arith.divf %160, %161 : vector<2x5x1xf32>
    %163 = vector.broadcast %162 : vector<2x5x1xf32> to vector<2x5x32xf32>
    %164 = arith.subf %154, %163 : vector<2x5x32xf32>
    %165 = arith.mulf %164, %164 : vector<2x5x32xf32>
    %cst_56 = arith.constant dense<0.000000e+00> : vector<2x5xf32>
    %166 = vector.multi_reduction <add>, %165, %cst_56 [2] : vector<2x5x32xf32> to vector<2x5xf32>
    %167 = vector.shape_cast %166 : vector<2x5xf32> to vector<2x5x1xf32>
    %cst_57 = arith.constant 3.200000e+01 : f32
    %168 = vector.broadcast %cst_57 : f32 to vector<2x5x1xf32>
    %169 = arith.divf %167, %168 : vector<2x5x1xf32>
    %170 = vector.broadcast %162 : vector<2x5x1xf32> to vector<2x5x32xf32>
    %171 = arith.subf %154, %170 : vector<2x5x32xf32>
    %cst_58 = arith.constant 9.99999996E-13 : f32
    %172 = vector.broadcast %cst_58 : f32 to vector<2x5x1xf32>
    %173 = arith.addf %169, %172 : vector<2x5x1xf32>
    %174 = math.rsqrt %173 : vector<2x5x1xf32>
    %175 = vector.broadcast %174 : vector<2x5x1xf32> to vector<2x5x32xf32>
    %176 = arith.mulf %171, %175 : vector<2x5x32xf32>
    %177 = vector.shape_cast %156 : vector<32xf32> to vector<1x1x32xf32>
    %178 = vector.broadcast %177 : vector<1x1x32xf32> to vector<2x5x32xf32>
    %179 = arith.mulf %176, %178 : vector<2x5x32xf32>
    %180 = vector.shape_cast %158 : vector<32xf32> to vector<1x1x32xf32>
    %181 = vector.broadcast %180 : vector<1x1x32xf32> to vector<2x5x32xf32>
    %182 = arith.addf %179, %181 : vector<2x5x32xf32>
    %183 = arith.truncf %182 : vector<2x5x32xf32> to vector<2x5x32xbf16>
    %c1_59 = arith.constant 1 : index
    %c0_60 = arith.constant 0 : index
    %c0_61 = arith.constant 0 : index
    %c0_62 = arith.constant 0 : index
    %184 = vector.load %arg2[%c1_59, %c0_60, %c0_61, %c0_62] : memref<2x16x32x8xbf16, #tpu.memory_space<vmem>>, vector<1x12x32x8xbf16>
    %185 = vector.shape_cast %184 : vector<1x12x32x8xbf16> to vector<12x32x8xbf16>
    %186 = vector.shape_cast %183 : vector<2x5x32xbf16> to vector<1x2x5x32xbf16>
    %187 = vector.shape_cast %186 : vector<1x2x5x32xbf16> to vector<1x2x5x32xbf16>
    %188 = vector.broadcast %187 : vector<1x2x5x32xbf16> to vector<12x2x5x32xbf16>
    %189 = vector.shape_cast %188 : vector<12x2x5x32xbf16> to vector<24x5x32xbf16>
    %190 = vector.shape_cast %185 : vector<12x32x8xbf16> to vector<12x1x32x8xbf16>
    %191 = vector.shape_cast %190 : vector<12x1x32x8xbf16> to vector<12x1x32x8xbf16>
    %192 = vector.broadcast %191 : vector<12x1x32x8xbf16> to vector<12x2x32x8xbf16>
    %193 = vector.shape_cast %192 : vector<12x2x32x8xbf16> to vector<24x32x8xbf16>
    "tpu.trace_start"() <{level = 10 : i32, message = "gsh,ghd->gsd"}> : () -> ()
    %cst_63 = arith.constant dense<0.000000e+00> : vector<24x5x8xf32>
    %194 = tpu.matmul %189, %193, %cst_63 {dimension_numbers = #tpu.dot_dimension_numbers<[2], [1], [1], [2], [0, 0, 0, 1, 1, 2], [0], [0]>} : vector<24x5x32xbf16>, vector<24x32x8xbf16>, vector<24x5x8xf32> -> vector<24x5x8xf32>
    "tpu.trace_stop"() : () -> ()
    %c31 = arith.constant 31 : index
    %c0_64 = arith.constant 0 : index
    %195 = vector.load %arg5[%c31, %c0_64] : memref<46x64xf32, #tpu.memory_space<vmem>>, vector<12x8xf32>
    %196 = vector.shape_cast %195 : vector<12x8xf32> to vector<12x1x8xf32>
    %197 = vector.shape_cast %196 : vector<12x1x8xf32> to vector<12x1x8xf32>
    %198 = vector.broadcast %197 : vector<12x1x8xf32> to vector<12x2x8xf32>
    %199 = vector.shape_cast %198 : vector<12x2x8xf32> to vector<24x1x8xf32>
    %200 = vector.broadcast %199 : vector<24x1x8xf32> to vector<24x5x8xf32>
    %201 = arith.addf %194, %200 : vector<24x5x8xf32>
    %202 = vector.extract_strided_slice %201 {offsets = [0, 0, 0], sizes = [8, 5, 8], strides = [1, 1, 1]} : vector<24x5x8xf32> to vector<8x5x8xf32>
    %cst_65 = arith.constant 0.353553385 : f32
    %203 = vector.broadcast %cst_65 : f32 to vector<8x5x8xf32>
    %204 = arith.mulf %202, %203 : vector<8x5x8xf32>
    %205 = arith.truncf %204 : vector<8x5x8xf32> to vector<8x5x8xbf16>
    %206 = vector.extract_strided_slice %201 {offsets = [8, 0, 0], sizes = [8, 5, 8], strides = [1, 1, 1]} : vector<24x5x8xf32> to vector<8x5x8xf32>
    %207 = arith.truncf %206 : vector<8x5x8xf32> to vector<8x5x8xbf16>
    %208 = vector.extract_strided_slice %201 {offsets = [16, 0, 0], sizes = [8, 5, 8], strides = [1, 1, 1]} : vector<24x5x8xf32> to vector<8x5x8xf32>
    %209 = arith.truncf %208 : vector<8x5x8xf32> to vector<8x5x8xbf16>
    "tpu.trace_start"() <{level = 10 : i32, message = "gqd,gkd->gqk"}> : () -> ()
    %cst_66 = arith.constant dense<0.000000e+00> : vector<8x5x5xf32>
    %210 = tpu.matmul %205, %207, %cst_66 {dimension_numbers = #tpu.dot_dimension_numbers<[2], [2], [1], [1], [0, 0, 0, 1, 1, 1], [0], [0]>} : vector<8x5x8xbf16>, vector<8x5x8xbf16>, vector<8x5x5xf32> -> vector<8x5x5xf32>
    "tpu.trace_stop"() : () -> ()
    %cst_67 = arith.constant dense<0xFF800000> : vector<8x5xf32>
    %211 = vector.multi_reduction <maximumf>, %210, %cst_67 [2] : vector<8x5x5xf32> to vector<8x5xf32>
    %212 = vector.shape_cast %211 : vector<8x5xf32> to vector<8x5x1xf32>
    %213 = vector.broadcast %212 : vector<8x5x1xf32> to vector<8x5x5xf32>
    %214 = arith.subf %210, %213 : vector<8x5x5xf32>
    %215 = math.exp %214 : vector<8x5x5xf32>
    %cst_68 = arith.constant dense<0.000000e+00> : vector<8x5xf32>
    %216 = vector.multi_reduction <add>, %215, %cst_68 [2] : vector<8x5x5xf32> to vector<8x5xf32>
    %217 = vector.shape_cast %216 : vector<8x5xf32> to vector<8x5x1xf32>
    %218 = vector.broadcast %217 : vector<8x5x1xf32> to vector<8x5x5xf32>
    %219 = arith.divf %215, %218 : vector<8x5x5xf32>
    %220 = arith.truncf %219 : vector<8x5x5xf32> to vector<8x5x5xbf16>
    "tpu.trace_start"() <{level = 10 : i32, message = "gqk,gkd->gqd"}> : () -> ()
    %cst_69 = arith.constant dense<0.000000e+00> : vector<8x5x8xf32>
    %221 = tpu.matmul %220, %209, %cst_69 {dimension_numbers = #tpu.dot_dimension_numbers<[2], [1], [1], [2], [0, 0, 0, 1, 1, 2], [0], [0]>} : vector<8x5x5xbf16>, vector<8x5x8xbf16>, vector<8x5x8xf32> -> vector<8x5x8xf32>
    "tpu.trace_stop"() : () -> ()
    %c1_70 = arith.constant 1 : index
    %c12_71 = arith.constant 12 : index
    %c0_72 = arith.constant 0 : index
    %c0_73 = arith.constant 0 : index
    %222 = vector.load %arg2[%c1_70, %c12_71, %c0_72, %c0_73] : memref<2x16x32x8xbf16, #tpu.memory_space<vmem>>, vector<1x4x32x8xbf16>
    %223 = vector.shape_cast %222 : vector<1x4x32x8xbf16> to vector<4x32x8xbf16>
    %224 = vector.shape_cast %223 : vector<4x32x8xbf16> to vector<4x1x32x8xbf16>
    %225 = vector.shape_cast %224 : vector<4x1x32x8xbf16> to vector<4x1x32x8xbf16>
    %226 = vector.broadcast %225 : vector<4x1x32x8xbf16> to vector<4x2x32x8xbf16>
    %227 = vector.shape_cast %226 : vector<4x2x32x8xbf16> to vector<8x32x8xbf16>
    %228 = arith.truncf %221 : vector<8x5x8xf32> to vector<8x5x8xbf16>
    "tpu.trace_start"() <{level = 10 : i32, message = "gqd,ghd->gqh"}> : () -> ()
    %cst_74 = arith.constant dense<0.000000e+00> : vector<8x5x32xf32>
    %229 = tpu.matmul %228, %227, %cst_74 {dimension_numbers = #tpu.dot_dimension_numbers<[2], [2], [1], [1], [0, 0, 0, 1, 1, 1], [0], [0]>} : vector<8x5x8xbf16>, vector<8x32x8xbf16>, vector<8x5x32xf32> -> vector<8x5x32xf32>
    "tpu.trace_stop"() : () -> ()
    %230 = vector.extract_strided_slice %229 {offsets = [0, 0, 0], sizes = [2, 5, 32], strides = [1, 1, 1]} : vector<8x5x32xf32> to vector<2x5x32xf32>
    %231 = vector.extract_strided_slice %229 {offsets = [2, 0, 0], sizes = [2, 5, 32], strides = [1, 1, 1]} : vector<8x5x32xf32> to vector<2x5x32xf32>
    %232 = arith.addf %230, %231 : vector<2x5x32xf32>
    %233 = vector.extract_strided_slice %229 {offsets = [4, 0, 0], sizes = [2, 5, 32], strides = [1, 1, 1]} : vector<8x5x32xf32> to vector<2x5x32xf32>
    %234 = arith.addf %232, %233 : vector<2x5x32xf32>
    %235 = vector.extract_strided_slice %229 {offsets = [6, 0, 0], sizes = [2, 5, 32], strides = [1, 1, 1]} : vector<8x5x32xf32> to vector<2x5x32xf32>
    %236 = arith.addf %234, %235 : vector<2x5x32xf32>
    %c28 = arith.constant 28 : index
    %c0_75 = arith.constant 0 : index
    %237 = vector.load %arg5[%c28, %c0_75] : memref<46x64xf32, #tpu.memory_space<vmem>>, vector<1x32xf32>
    %238 = vector.shape_cast %237 : vector<1x32xf32> to vector<32xf32>
    %239 = vector.shape_cast %238 : vector<32xf32> to vector<1x1x32xf32>
    %240 = vector.broadcast %239 : vector<1x1x32xf32> to vector<2x5x32xf32>
    %241 = arith.addf %236, %240 : vector<2x5x32xf32>
    %242 = arith.addf %154, %241 : vector<2x5x32xf32>
    %c26 = arith.constant 26 : index
    %c0_76 = arith.constant 0 : index
    %243 = vector.load %arg5[%c26, %c0_76] : memref<46x64xf32, #tpu.memory_space<vmem>>, vector<1x32xf32>
    %244 = vector.shape_cast %243 : vector<1x32xf32> to vector<32xf32>
    %c27 = arith.constant 27 : index
    %c0_77 = arith.constant 0 : index
    %245 = vector.load %arg5[%c27, %c0_77] : memref<46x64xf32, #tpu.memory_space<vmem>>, vector<1x32xf32>
    %246 = vector.shape_cast %245 : vector<1x32xf32> to vector<32xf32>
    %cst_78 = arith.constant dense<0.000000e+00> : vector<2x5xf32>
    %247 = vector.multi_reduction <add>, %242, %cst_78 [2] : vector<2x5x32xf32> to vector<2x5xf32>
    %248 = vector.shape_cast %247 : vector<2x5xf32> to vector<2x5x1xf32>
    %cst_79 = arith.constant 3.200000e+01 : f32
    %249 = vector.broadcast %cst_79 : f32 to vector<2x5x1xf32>
    %250 = arith.divf %248, %249 : vector<2x5x1xf32>
    %251 = vector.broadcast %250 : vector<2x5x1xf32> to vector<2x5x32xf32>
    %252 = arith.subf %242, %251 : vector<2x5x32xf32>
    %253 = arith.mulf %252, %252 : vector<2x5x32xf32>
    %cst_80 = arith.constant dense<0.000000e+00> : vector<2x5xf32>
    %254 = vector.multi_reduction <add>, %253, %cst_80 [2] : vector<2x5x32xf32> to vector<2x5xf32>
    %255 = vector.shape_cast %254 : vector<2x5xf32> to vector<2x5x1xf32>
    %cst_81 = arith.constant 3.200000e+01 : f32
    %256 = vector.broadcast %cst_81 : f32 to vector<2x5x1xf32>
    %257 = arith.divf %255, %256 : vector<2x5x1xf32>
    %258 = vector.broadcast %250 : vector<2x5x1xf32> to vector<2x5x32xf32>
    %259 = arith.subf %242, %258 : vector<2x5x32xf32>
    %cst_82 = arith.constant 9.99999996E-13 : f32
    %260 = vector.broadcast %cst_82 : f32 to vector<2x5x1xf32>
    %261 = arith.addf %257, %260 : vector<2x5x1xf32>
    %262 = math.rsqrt %261 : vector<2x5x1xf32>
    %263 = vector.broadcast %262 : vector<2x5x1xf32> to vector<2x5x32xf32>
    %264 = arith.mulf %259, %263 : vector<2x5x32xf32>
    %265 = vector.shape_cast %244 : vector<32xf32> to vector<1x1x32xf32>
    %266 = vector.broadcast %265 : vector<1x1x32xf32> to vector<2x5x32xf32>
    %267 = arith.mulf %264, %266 : vector<2x5x32xf32>
    %268 = vector.shape_cast %246 : vector<32xf32> to vector<1x1x32xf32>
    %269 = vector.broadcast %268 : vector<1x1x32xf32> to vector<2x5x32xf32>
    %270 = arith.addf %267, %269 : vector<2x5x32xf32>
    %271 = arith.truncf %270 : vector<2x5x32xf32> to vector<2x5x32xbf16>
    %c1_83 = arith.constant 1 : index
    %c0_84 = arith.constant 0 : index
    %c0_85 = arith.constant 0 : index
    %c0_86 = arith.constant 0 : index
    %272 = vector.load %arg3[%c1_83, %c0_84, %c0_85, %c0_86] : memref<2x2x64x64xbf16, #tpu.memory_space<vmem>>, vector<1x1x32x64xbf16>
    %273 = vector.shape_cast %272 : vector<1x1x32x64xbf16> to vector<32x64xbf16>
    %c1_87 = arith.constant 1 : index
    %c1_88 = arith.constant 1 : index
    %c0_89 = arith.constant 0 : index
    %c0_90 = arith.constant 0 : index
    %274 = vector.load %arg3[%c1_87, %c1_88, %c0_89, %c0_90] : memref<2x2x64x64xbf16, #tpu.memory_space<vmem>>, vector<1x1x64x32xbf16>
    %275 = vector.shape_cast %274 : vector<1x1x64x32xbf16> to vector<64x32xbf16>
    "tpu.trace_start"() <{level = 10 : i32, message = "bsh,hi->bsi"}> : () -> ()
    %cst_91 = arith.constant dense<0.000000e+00> : vector<2x5x64xf32>
    %276 = tpu.matmul %271, %273, %cst_91 {dimension_numbers = #tpu.dot_dimension_numbers<[2], [0], [0, 1], [1], [0, 0, 0, 1, 1, 1], [], []>} : vector<2x5x32xbf16>, vector<32x64xbf16>, vector<2x5x64xf32> -> vector<2x5x64xf32>
    "tpu.trace_stop"() : () -> ()
    %c30 = arith.constant 30 : index
    %c0_92 = arith.constant 0 : index
    %277 = vector.load %arg5[%c30, %c0_92] : memref<46x64xf32, #tpu.memory_space<vmem>>, vector<1x64xf32>
    %278 = vector.shape_cast %277 : vector<1x64xf32> to vector<64xf32>
    %279 = vector.shape_cast %278 : vector<64xf32> to vector<1x1x64xf32>
    %280 = vector.broadcast %279 : vector<1x1x64xf32> to vector<2x5x64xf32>
    %281 = arith.addf %276, %280 : vector<2x5x64xf32>
    %282 = arith.mulf %281, %281 : vector<2x5x64xf32>
    %283 = arith.mulf %281, %282 : vector<2x5x64xf32>
    %cst_93 = arith.constant 4.471500e-02 : f32
    %284 = vector.broadcast %cst_93 : f32 to vector<2x5x64xf32>
    %285 = arith.mulf %284, %283 : vector<2x5x64xf32>
    %286 = arith.addf %281, %285 : vector<2x5x64xf32>
    %cst_94 = arith.constant 0.797884583 : f32
    %287 = vector.broadcast %cst_94 : f32 to vector<2x5x64xf32>
    %288 = arith.mulf %287, %286 : vector<2x5x64xf32>
    %289 = math.tanh %288 : vector<2x5x64xf32>
    %cst_95 = arith.constant 1.000000e+00 : f32
    %290 = vector.broadcast %cst_95 : f32 to vector<2x5x64xf32>
    %291 = arith.addf %290, %289 : vector<2x5x64xf32>
    %cst_96 = arith.constant 5.000000e-01 : f32
    %292 = vector.broadcast %cst_96 : f32 to vector<2x5x64xf32>
    %293 = arith.mulf %292, %291 : vector<2x5x64xf32>
    %294 = arith.mulf %281, %293 : vector<2x5x64xf32>
    %295 = arith.truncf %294 : vector<2x5x64xf32> to vector<2x5x64xbf16>
    "tpu.trace_start"() <{level = 10 : i32, message = "bsi,ih->bsh"}> : () -> ()
    %cst_97 = arith.constant dense<0.000000e+00> : vector<2x5x32xf32>
    %296 = tpu.matmul %295, %275, %cst_97 {dimension_numbers = #tpu.dot_dimension_numbers<[2], [0], [0, 1], [1], [0, 0, 0, 1, 1, 1], [], []>} : vector<2x5x64xbf16>, vector<64x32xbf16>, vector<2x5x32xf32> -> vector<2x5x32xf32>
    "tpu.trace_stop"() : () -> ()
    %c29 = arith.constant 29 : index
    %c0_98 = arith.constant 0 : index
    %297 = vector.load %arg5[%c29, %c0_98] : memref<46x64xf32, #tpu.memory_space<vmem>>, vector<1x32xf32>
    %298 = vector.shape_cast %297 : vector<1x32xf32> to vector<32xf32>
    %299 = vector.shape_cast %298 : vector<32xf32> to vector<1x1x32xf32>
    %300 = vector.broadcast %299 : vector<1x1x32xf32> to vector<2x5x32xf32>
    %301 = arith.addf %296, %300 : vector<2x5x32xf32>
    %302 = arith.addf %242, %301 : vector<2x5x32xf32>
    %c43 = arith.constant 43 : index
    %c0_99 = arith.constant 0 : index
    %303 = vector.load %arg5[%c43, %c0_99] : memref<46x64xf32, #tpu.memory_space<vmem>>, vector<1x32xf32>
    %304 = vector.shape_cast %303 : vector<1x32xf32> to vector<32xf32>
    %c44 = arith.constant 44 : index
    %c0_100 = arith.constant 0 : index
    %305 = vector.load %arg5[%c44, %c0_100] : memref<46x64xf32, #tpu.memory_space<vmem>>, vector<1x32xf32>
    %306 = vector.shape_cast %305 : vector<1x32xf32> to vector<32xf32>
    %cst_101 = arith.constant dense<0.000000e+00> : vector<2x5xf32>
    %307 = vector.multi_reduction <add>, %302, %cst_101 [2] : vector<2x5x32xf32> to vector<2x5xf32>
    %308 = vector.shape_cast %307 : vector<2x5xf32> to vector<2x5x1xf32>
    %cst_102 = arith.constant 3.200000e+01 : f32
    %309 = vector.broadcast %cst_102 : f32 to vector<2x5x1xf32>
    %310 = arith.divf %308, %309 : vector<2x5x1xf32>
    %311 = vector.broadcast %310 : vector<2x5x1xf32> to vector<2x5x32xf32>
    %312 = arith.subf %302, %311 : vector<2x5x32xf32>
    %313 = arith.mulf %312, %312 : vector<2x5x32xf32>
    %cst_103 = arith.constant dense<0.000000e+00> : vector<2x5xf32>
    %314 = vector.multi_reduction <add>, %313, %cst_103 [2] : vector<2x5x32xf32> to vector<2x5xf32>
    %315 = vector.shape_cast %314 : vector<2x5xf32> to vector<2x5x1xf32>
    %cst_104 = arith.constant 3.200000e+01 : f32
    %316 = vector.broadcast %cst_104 : f32 to vector<2x5x1xf32>
    %317 = arith.divf %315, %316 : vector<2x5x1xf32>
    %318 = vector.broadcast %310 : vector<2x5x1xf32> to vector<2x5x32xf32>
    %319 = arith.subf %302, %318 : vector<2x5x32xf32>
    %cst_105 = arith.constant 9.99999996E-13 : f32
    %320 = vector.broadcast %cst_105 : f32 to vector<2x5x1xf32>
    %321 = arith.addf %317, %320 : vector<2x5x1xf32>
    %322 = math.rsqrt %321 : vector<2x5x1xf32>
    %323 = vector.broadcast %322 : vector<2x5x1xf32> to vector<2x5x32xf32>
    %324 = arith.mulf %319, %323 : vector<2x5x32xf32>
    %325 = vector.shape_cast %304 : vector<32xf32> to vector<1x1x32xf32>
    %326 = vector.broadcast %325 : vector<1x1x32xf32> to vector<2x5x32xf32>
    %327 = arith.mulf %324, %326 : vector<2x5x32xf32>
    %328 = vector.shape_cast %306 : vector<32xf32> to vector<1x1x32xf32>
    %329 = vector.broadcast %328 : vector<1x1x32xf32> to vector<2x5x32xf32>
    %330 = arith.addf %327, %329 : vector<2x5x32xf32>
    %c0_106 = arith.constant 0 : index
    %c0_107 = arith.constant 0 : index
    %c0_108 = arith.constant 0 : index
    %331 = vector.load %arg6[%c0_106, %c0_107, %c0_108] : memref<2x5x32xf32, #tpu.memory_space<vmem>>, vector<2x5x32xf32>
    tpu.vector_store %arg6[%c0_106, %c0_107, %c0_108], %330 {strides = array<i32>} : memref<2x5x32xf32, #tpu.memory_space<vmem>>, vector<2x5x32xf32>,
    %332 = vector.extract_strided_slice %330 {offsets = [0, 0, 0], sizes = [2, 1, 32], strides = [1, 1, 1]} : vector<2x5x32xf32> to vector<2x1x32xf32>
    %333 = vector.shape_cast %332 : vector<2x1x32xf32> to vector<2x32xf32>
    %334 = arith.truncf %333 : vector<2x32xf32> to vector<2x32xbf16>
    %c192 = arith.constant 192 : index
    %c0_109 = arith.constant 0 : index
    %335 = vector.load %arg4[%c192, %c0_109] : memref<224x32xbf16, #tpu.memory_space<vmem>>, vector<32x32xbf16>
    %cst_110 = arith.constant dense<0.000000e+00> : vector<2x32xf32>
    %336 = tpu.matmul %334, %335, %cst_110 {dimension_numbers = #tpu.dot_dimension_numbers<[1], [0], [0], [1], [0, 0, 1, 1], [], []>} : vector<2x32xbf16>, vector<32x32xbf16>, vector<2x32xf32> -> vector<2x32xf32>
    %c45 = arith.constant 45 : index
    %c0_111 = arith.constant 0 : index
    %337 = vector.load %arg5[%c45, %c0_111] : memref<46x64xf32, #tpu.memory_space<vmem>>, vector<1x32xf32>
    %338 = vector.shape_cast %337 : vector<1x32xf32> to vector<32xf32>
    %339 = vector.shape_cast %338 : vector<32xf32> to vector<1x32xf32>
    %340 = vector.broadcast %339 : vector<1x32xf32> to vector<2x32xf32>
    %341 = arith.addf %336, %340 : vector<2x32xf32>
    %342 = math.tanh %341 : vector<2x32xf32>
    %c0_112 = arith.constant 0 : index
    %c0_113 = arith.constant 0 : index
    %343 = vector.load %arg7[%c0_112, %c0_113] : memref<2x32xf32, #tpu.memory_space<vmem>>, vector<2x32xf32>
    tpu.vector_store %arg7[%c0_112, %c0_113], %342 {strides = array<i32>} : memref<2x32xf32, #tpu.memory_space<vmem>>, vector<2x32xf32>,
    return
  }
  func.func @transform_0(%arg0: i32) -> (i32, i32, i32) {
    %c0_i32 = arith.constant 0 : i32
    %c0_i32_0 = arith.constant 0 : i32
    %c0_i32_1 = arith.constant 0 : i32
    return %arg0, %c0_i32, %c0_i32_0 : i32, i32, i32
  }
  func.func @transform_1(%arg0: i32) -> (i32, i32, i32, i32) {
    %c0_i32 = arith.constant 0 : i32
    %c0_i32_0 = arith.constant 0 : i32
    %c0_i32_1 = arith.constant 0 : i32
    %c0_i32_2 = arith.constant 0 : i32
    %c0_i32_3 = arith.constant 0 : i32
    return %c0_i32, %c0_i32_0, %c0_i32_1, %c0_i32_2 : i32, i32, i32, i32
  }
  func.func @transform_2(%arg0: i32) -> (i32, i32, i32, i32) {
    %c0_i32 = arith.constant 0 : i32
    %c0_i32_0 = arith.constant 0 : i32
    %c0_i32_1 = arith.constant 0 : i32
    %c0_i32_2 = arith.constant 0 : i32
    %c0_i32_3 = arith.constant 0 : i32
    return %c0_i32, %c0_i32_0, %c0_i32_1, %c0_i32_2 : i32, i32, i32, i32
  }
  func.func @transform_3(%arg0: i32) -> (i32, i32) {
    %c0_i32 = arith.constant 0 : i32
    %c0_i32_0 = arith.constant 0 : i32
    %c0_i32_1 = arith.constant 0 : i32
    return %c0_i32, %c0_i32_0 : i32, i32
  }
  func.func @transform_4(%arg0: i32) -> (i32, i32) {
    %c0_i32 = arith.constant 0 : i32
    %c0_i32_0 = arith.constant 0 : i32
    %c0_i32_1 = arith.constant 0 : i32
    return %c0_i32, %c0_i32_0 : i32, i32
  }
  func.func @transform_5(%arg0: i32) -> (i32, i32, i32) {
    %c0_i32 = arith.constant 0 : i32
    %c0_i32_0 = arith.constant 0 : i32
    %c0_i32_1 = arith.constant 0 : i32
    return %arg0, %c0_i32, %c0_i32_0 : i32, i32, i32
  }
  func.func @transform_6(%arg0: i32) -> (i32, i32) {
    %c0_i32 = arith.constant 0 : i32
    %c0_i32_0 = arith.constant 0 : i32
    return %arg0, %c0_i32 : i32, i32
  }
}

</mosaic_0001>

<bundles_post_ra>
// kernel: distilled_vision_encoder_forward.1
= control target key start
LH: loop header
LB: loop body
LE: loop exit
PB: predicated region body
PF: predicated region fallthrough
CT: control target
= control target key end

     0   :  { %v12910_v1 = vmov 0   ;;  %v64_v4 = vlaneseq  ;;  %v12911_v9 = vmov 1966171168   ;;  %vm349_vm0 = vcmask 523264   ;;  %s15585_s0 = inlined_call_operand.vmem [shape: bf16[2,5,192], index: 0, kind: input, shape index: {}]   ;;  %s15586_s1 = inlined_call_operand.vmem [shape: bf16[2,16,32,8], index: 1, kind: input, shape index: {}]   ;;  %s15587_s2 = inlined_call_operand.vmem [shape: bf16[2,2,64,64], index: 2, kind: input, shape index: {}]   ;;  %s15588_s3 = inlined_call_operand.vmem [shape: bf16[224,32], index: 3, kind: input, shape index: {}]   ;;  %s15589_s4 = inlined_call_operand.vmem [shape: f32[46,64], index: 4, kind: input, shape index: {}]   ;;  %s15590_s5 = inlined_call_operand.vmem [shape: f32[2,5,32], index: 5, kind: output, shape index: {0}]   ;;  %s15591_s6 = inlined_call_operand.hbm [shape: f32[2,32], index: 6, kind: output, shape index: {1}]  }
   0x1   :  { %v12667_v0 = vld [vmem:[%s15588_s3] sm:$0xff]   ;;  %353 = vmatprep.subr.bf16.mxu0 %v12910_v1  ;;  %v12668_v2 = vld [vmem:[%s15588_s3 + $0x8] sm:$0xff]   ;;  %v12669_v3 = vld [vmem:[%s15588_s3 + $0x10] sm:$0xff]   ;;  %v62_v10 = vunpack.c.l.s4 %v12911_v9 }
   0x2   :  { %354 = vmatpush1.bf16.msra.mxu0 %v12667_v0  ;;  %v12670_v5 = vld [vmem:[%s15588_s3 + $0x18] sm:$0xff]   ;;  %v11300_v6 = vld.sshfl [vmem:[%s15585_s0] sm:$0x5f pattern:$0x75316420]  ;;  %v12976_v11 = vshrl.u32 %v64_v4, 7 }
   0x3   :  { %355 = vmatprep.subr.bf16.mxu0 %v12910_v1  ;;  %v12671_v7 = vld [vmem:[%s15588_s3 + $0x20] sm:$0xff]   ;;  %v11301_v8 = vld.sshfl [vmem:[%s15585_s0 + $0x8] sm:$0x5f pattern:$0x75316420]  ;;  %v60_v12 = vcombine.high %v11300_v6, %v11300_v6  ;;  %v63_v13 = vunpack.c.0.s8 %v62_v10  ;;  %v12673_v21 = vld [vmem:[%s15588_s3 + $0x30] sm:$0xff]  }
   0x4   :  { %v83_v14 = vcombine.high %v11301_v8, %v11301_v8  ;;  %v12672_v15 = vld [vmem:[%s15588_s3 + $0x28] sm:$0xff]   ;;  %v12674_v30 = vld [vmem:[%s15588_s3 + $0x38] sm:$0xff]   ;;  %v12675_v36 = vld [vmem:[%s15588_s3 + $0x40] sm:$0xff]  }
   0x5   :  { %v12983_v16 = vsub.s32 %v63_v13, %v12976_v11  ;;  %v12676_v40 = vld [vmem:[%s15588_s3 + $0x48] sm:$0xff]   ;;  %v12677_v42 = vld [vmem:[%s15588_s3 + $0x50] sm:$0xff]   ;;  %v12678_v44 = vld [vmem:[%s15588_s3 + $0x58] sm:$0xff]  }
   0x6   :  { %356 = vmatpush1.bf16.msra.mxu0 %v12668_v2 }
   0x7   :  { %357 = vmatprep.subr.bf16.mxu0 %v12910_v1  ;;  %v67_v17 = vrot.slane %v11300_v6, %v12983_v16  ;;  %v74_v18 = vrot.slane %v60_v12, %v12983_v16  ;;  %v90_v19 = vrot.slane %v11301_v8, %v12983_v16  ;;  %v97_v20 = vrot.slane %v83_v14, %v12983_v16 }
   0x9   :  { %v75_v22 = vcombine.high %v67_v17, %v67_v17  ;;  %v98_v23 = vcombine.high %v90_v19, %v90_v19  ;;  %v105_v24 = vunpack.i.h.s16 %v90_v19  ;;  %v107_v25 = vunpack.i.h.s16 %v97_v20 }
   0xa   :  { %358 = vmatpush1.bf16.msra.mxu0 %v12669_v3  ;;  %v154_v26 = vcombine.low %v67_v17, %v74_v18 }
   0xb   :  { %359 = vmatprep.subr.bf16.mxu0 %v12910_v1  ;;  %v11302_v27 = vpack.i.b16 %v90_v19, %v75_v22  ;;  %v11303_v28 = vpack.i.b16 %v97_v20, %v105_v24  ;;  %v11304_v29 = vpack.i.b16 %v98_v23, %v107_v25 }
   0xc   :  { %v162_v32 = vrot.slane %v154_v26, %v12983_v16 }
   0xd   :  { %v155_v31 = vcombine.low %v11302_v27, %v11303_v28  ;;  %v176_v33 = vrot.slane %v11304_v29, %v12983_v16 }
   0xe   :  { %360 = vmatpush1.bf16.msra.mxu0 %v12670_v5 }
   0xf   :  { %361 = vmatprep.subr.bf16.mxu0 %v12910_v1  ;;  %v169_v34 = vrot.slane %v155_v31, %v12983_v16  ;;  %v179_v35 = vcombine.high %v176_v33, %v176_v33  ;;  %v200_v46 = vrot.slane %v176_v33, %v12983_v16 }
  0x11   :  { %v178_v37 = vcombine.high %v162_v32, %v169_v34  ;;  %v207_v38 = vrot.slane %v179_v35, %v12983_v16  ;;  %v177_v43 = vcombine.low %v162_v32, %v169_v34 }
  0x12   :  { %362 = vmatpush1.bf16.msra.mxu0 %v12671_v7 }
  0x13   :  { %363 = vmatprep.subr.bf16.mxu0 %v12910_v1  ;;  %v193_v39 = vrot.slane %v178_v37, %v12983_v16  ;;  %v186_v45 = vrot.slane %v177_v43, %v12983_v16 }
  0x15   :  { %v209_v41 = vcombine.low %v193_v39, %v207_v38  ;;  %v208_v47 = vcombine.low %v186_v45, %v200_v46 }
  0x16   :  { %364 = vmatpush1.bf16.msra.mxu0 %v12672_v15 }
  0x17   :  { %365 = vmatprep.subr.bf16.mxu0 %v12910_v1  ;;  %11318 = vmatprep.mubr.msk.bf16.mxu0 %vm349_vm0, %v209_v41 }
  0x1a   :  { %366 = vmatpush1.bf16.msra.mxu0 %v12673_v21 }
  0x1b   :  { %367 = vmatprep.subr.bf16.mxu0 %v12910_v1 }
  0x1e   :  { %368 = vmatpush1.bf16.msra.mxu0 %v12674_v30 }
  0x1f   :  { %369 = vmatprep.subr.bf16.mxu0 %v12910_v1 }
  0x22   :  { %370 = vmatpush1.bf16.msra.mxu0 %v12675_v36 }
  0x23   :  { %371 = vmatprep.subr.bf16.mxu0 %v12910_v1 }
  0x26   :  { %372 = vmatpush1.bf16.msra.mxu0 %v12676_v40 }
  0x27   :  { %373 = vmatprep.subr.bf16.mxu0 %v12910_v1 }
  0x2a   :  { %374 = vmatpush1.bf16.msra.mxu0 %v12677_v42 }
  0x2b   :  { %375 = vmatprep.subr.bf16.mxu0 %v12910_v1 }
  0x2e   :  { %376 = vmatpush1.bf16.msra.mxu0 %v12678_v44 }
  0x31   :  { %386 = vmatmul.mubr.bf16.vlgmr.msra.gmra.mrb[0].mxu0 %v208_v47 }
  0x32   :  { %12 = vsyncpa [#allocation3], 0  ;;  %v48_v48 = vld [vmem:[%s15589_s4] sm:$0x1f]  ;;  %vm559_vm1 = vcmask 258048   ;;  %vm12913_vm2 = vmmov 0  }
  0x33   :  { %v110_v49 = vcombine.high %v48_v48, %v48_v48  ;;  %v117_v50 = vrot.slane %v48_v48, %v12983_v16  ;;  %vm1584_vm3 = vcmask 261120   ;;  %vm2715_vm4 = vcmask 64512   ;;  %s12915_s24 = smov [#allocation2]  }
  0x34   :  { %vm3185_vm5 = vcmask 1041408   ;;  %vm3186_vm6 = vcmask 1042432   ;;  %vm3084_vm7 = vcmask 36864   ;;  %vm3181_vm8 = vcmask 39936   ;;  %s11290_s25 = sshll.u32 %s12915_s24, 4  ;;  %s11291_s25 = int_to_ptr.vmem [resolvable:$true] %s11290_s25 }
  0x35   :  { %v124_v51 = vrot.slane %v110_v49, %v12983_v16  ;;  %v125_v52 = vcombine.high %v117_v50, %v117_v50  ;;  %v132_v53 = vrot.slane %v117_v50, %v12983_v16  ;;  %vm11221_vm9 = vcmask 1041409   ;;  %s12886_s26 = scalar_lea.vmem %s11291_s25, 32  ;;  %p12891_p1 = scmp.lt.s32.totalorder %s11291_s25, %s11291_s25 }
  0x36   :  { %vm11280_vm10 = vcmask 254976   ;;  %p12887_p0 = scmp.ne.s32.totalorder %s11291_s25, %s12886_s26  ;;  %p12892_p2 = scmp.lt.s32.totalorder %s12886_s26, %s12886_s26 }
  0x37   :  { %v139_v54 = vrot.slane %v124_v51, %v12983_v16  ;;  %v146_v55 = vrot.slane %v125_v52, %v12983_v16  ;;  %v147_v56 = vcombine.high %v132_v53, %v132_v53 }
  0x38   :  { %p12893_p3 = por %p12892_p2, %p12891_p1 }
  0x39   :  { %v283_v57 = vcombine.low %v132_v53, %v146_v55  ;;  %v11317_v58 = vcombine.high %v132_v53, %v146_v55  ;;  %v285_v59 = vcombine.low %v139_v54, %v132_v53  ;;  %v286_v60 = vcombine.low %v146_v55, %v147_v56 }
  0x3a   :  { %v148_v1 = vcombine.high %v146_v55, %v146_v55  ;;  %v13090_v53 = vsub.s32 0, %v12976_v11  ;;  %v13096_v55 = vsub.s32 2, %v12976_v11  ;;  %v13099_v56 = vsub.s32 3, %v12976_v11  ;;  %p12894_p4 = pnand %p12893_p3, %p12887_p0 }
  0x3b   :  { %v293_v61 = vrot.slane %v283_v57, %v12983_v16  ;;  %v300_v62 = vrot.slane %v11317_v58, %v12983_v16  ;;  %v307_v63 = vrot.slane %v285_v59, %v12983_v16  ;;  %v314_v0 = vrot.slane %v286_v60, %v12983_v16 }
  0x3c   :  { %v332_v4 = vcombine.low %v148_v1, %v139_v54  ;;  %v13093_v54 = vsub.s32 1, %v12976_v11  ;;  %v13102_v58 = vsub.s32 4, %v12976_v11 }
  0x3d   :  { %v315_v2 = vcombine.low %v293_v61, %v300_v62  ;;  %v316_v3 = vcombine.low %v307_v63, %v314_v0 }
  0x3e   :  { %v339_v7 = vrot.slane %v332_v4, %v12983_v16 }
  0x3f   :  { %v323_v5 = vrot.slane %v315_v2, %v12983_v16  ;;  %v330_v6 = vrot.slane %v316_v3, %v12983_v16 }
  0x40   :  { %v346_v9 = vrot.slane %v339_v7, %v12983_v16 }
  0x41   :  { %v331_v8 = vcombine.low %v323_v5, %v330_v6 }
 0x104   :  { %v387_v10 = vpop.f32.mrb[0].mxu0 }
 0x105   :  { %v388_v12 = vadd.f32 %v387_v10, %v331_v8  ;;  %v389_v13 = vpop.f32.mrb[1].mxu0 }
 0x106   :  { %v390_v14 = vpop.f32.mrb[2].mxu0 }
 0x107   :  { %v396_v15 = vcombine.high %v388_v12, %v388_v12  ;;  %v403_v17 = vrot.slane %v388_v12, %v12983_v16  ;;  %v391_v18 = vadd.f32 %v390_v14, %v346_v9  ;;  %v392_v19 = vpop.f32.mrb[3].mxu0 }
 0x109   :  { %v410_v20 = vrot.slane %v396_v15, %v12983_v16  ;;  %v411_v21 = vcombine.high %v403_v17, %v403_v17  ;;  %v451_v22 = vrot.slane %v391_v18, %v12983_v16  ;;  %v13042_v23 = vrot.slane %v403_v17, %v12983_v16 }
 0x10b   :  { %v412_v24 = vcombine.high %v410_v20, %v410_v20  ;;  %v13045_v25 = vrot.slane %v410_v20, %v12983_v16  ;;  %v13048_v26 = vrot.slane %v411_v21, %v12983_v16  ;;  %v452_v27 = vcombine.high %v451_v22, %v451_v22 }
 0x10c   :  { %v13060_v31 = vrot.slane %v451_v22, %v12983_v16  ;;  %v13106_v60 = vcombine.high %v13042_v23, %v13042_v23 }
 0x10d   :  { %v13051_v28 = vrot.slane %v412_v24, %v12983_v16  ;;  %v13055_v29 = vcombine.high %v13045_v25, %v13045_v25  ;;  %v479_v30 = vcombine.low %v13042_v23, %v13048_v26  ;;  %v11319_v32 = vcombine.high %v13042_v23, %v13048_v26 }
 0x10e   :  { %v13069_v34 = vrot.slane %v452_v27, %v12983_v16  ;;  %v501_v38 = vrot.slane %v13045_v25, %v12983_v16  ;;  %v13114_v2 = vcombine.high %v13048_v26, %v13048_v26 }
 0x10f   :  { %v13066_v33 = vcombine.high %v13051_v28, %v13051_v28  ;;  %v487_v35 = vrot.slane %v479_v30, %v12983_v16  ;;  %v518_v36 = vcombine.low %v13051_v28, %v13055_v29  ;;  %v494_v37 = vrot.slane %v11319_v32, %v12983_v16 }
 0x110   :  { %v540_v43 = vrot.slane %v13069_v34, %v12983_v16  ;;  %v516_v45 = vrot.slane %v501_v38, %v12983_v16 }
 0x111   :  { %v519_v39 = vcombine.low %v13066_v33, %v13060_v31  ;;  %v502_v40 = vcombine.low %v487_v35, %v494_v37  ;;  %v526_v41 = vrot.slane %v518_v36, %v12983_v16 }
 0x112   :  { %v555_v49 = vrot.slane %v540_v43, %v12983_v16 }
 0x113   :  { %v533_v42 = vrot.slane %v519_v39, %v12983_v16  ;;  %v509_v44 = vrot.slane %v502_v40, %v12983_v16 }
 0x115   :  { %v541_v46 = vcombine.low %v526_v41, %v533_v42  ;;  %v517_v47 = vcombine.low %v509_v44, %v516_v45 }
 0x117   :  { %v548_v48 = vrot.slane %v541_v46, %v12983_v16  ;;  %v560_v50 = vsel %vm559_vm1, %v517_v47, 0.0 }
 0x118   :  { %561 = vadd.xlane.f32.xlu0 %v560_v50 }
 0x119   :  { %v556_v51 = vcombine.low %v548_v48, %v555_v49 }
 0x11b   :  { %v563_v52 = vsel %vm559_vm1, %v556_v51, 0.0 }
 0x11c   :  { %564 = vadd.xlane.f32.xlu0 %v563_v52 }
 0x1a5   :  { %v562_v57 = vpop.xlane.xlu0 %561 }
 0x1a6   :  { %v567_v59 = vmul.f32 0.03125, %v562_v57 }
 0x1a8   :  { %v574_v61 = vrot.slane %v567_v59, %v13090_v53  ;;  %v578_v62 = vrot.slane %v567_v59, %v13093_v54  ;;  %v582_v63 = vrot.slane %v567_v59, %v13096_v55  ;;  %v586_v0 = vrot.slane %v567_v59, %v13099_v56 }
 0x1a9   :  { %v565_v1 = vpop.xlane.xlu0 %564  ;;  %v590_v11 = vrot.slane %v567_v59, %v13102_v58 }
 0x1aa   :  { %v568_v3 = vmul.f32 0.03125, %v565_v1  ;;  %v13118_v4 = vsub.f32 %v13042_v23, %v574_v61  ;;  %v13121_v5 = vsub.f32 %v13048_v26, %v578_v62  ;;  %v13124_v6 = vsub.f32 %v13106_v60, %v582_v63  ;;  %v13187_v1 = vld [vmem:[%s15586_s1] sm:$0xff]  }
 0x1ab   :  { %v13127_v7 = vsub.f32 %v13114_v2, %v586_v0  ;;  %v13130_v8 = vsub.f32 %v13045_v25, %v590_v11  ;;  %v13192_v11 = vld [vmem:[%s15586_s1 + $0x30] sm:$0xff]  }
 0x1ac   :  { %v594_v9 = vrot.slane %v568_v3, %v13090_v53  ;;  %v598_v10 = vrot.slane %v568_v3, %v13093_v54  ;;  %v602_v12 = vrot.slane %v568_v3, %v13096_v55  ;;  %v606_v13 = vrot.slane %v568_v3, %v13099_v56 }
 0x1ad   :  { %v631_v14 = vmul.f32 %v13118_v4, %v13118_v4  ;;  %v632_v15 = vmul.f32 %v13121_v5, %v13121_v5  ;;  %v633_v17 = vmul.f32 %v13124_v6, %v13124_v6  ;;  %v634_v18 = vmul.f32 %v13127_v7, %v13127_v7 }
 0x1ae   :  { %v635_v19 = vmul.f32 %v13130_v8, %v13130_v8  ;;  %v610_v20 = vrot.slane %v568_v3, %v13102_v58  ;;  %v13148_v21 = vsub.f32 %v13051_v28, %v594_v9  ;;  %v13151_v22 = vsub.f32 %v13055_v29, %v598_v10  ;;  %v13201_v9 = vld [vmem:[%s15586_s1 + $0x8] sm:$0xff]   ;;  %v13206_v10 = vld [vmem:[%s15586_s1 + $0x38] sm:$0xff]  }
 0x1af   :  { %v651_v24 = vcombine.low %v631_v14, %v632_v15  ;;  %v652_v27 = vcombine.low %v633_v17, %v634_v18  ;;  %v13154_v30 = vsub.f32 %v13066_v33, %v602_v12  ;;  %v13157_v32 = vsub.f32 %v13060_v31, %v606_v13  ;;  %v11320_v12 = vld [vmem:[%s15589_s4 + $0x5] ss:$0 sm:$0xff]  ;;  %v11321_v15 = vld [vmem:[%s15589_s4 + $0x6] ss:$0 sm:$0xff] }
 0x1b0   :  { %v673_v35 = vrot.slane %v635_v19, %v12983_v16  ;;  %v13161_v36 = vsub.f32 %v13069_v34, %v610_v20  ;;  %v636_v37 = vmul.f32 %v13148_v21, %v13148_v21  ;;  %v637_v38 = vmul.f32 %v13151_v22, %v13151_v22 }
 0x1b1   :  { %v659_v39 = vrot.slane %v651_v24, %v12983_v16  ;;  %v666_v40 = vrot.slane %v652_v27, %v12983_v16  ;;  %v638_v41 = vmul.f32 %v13154_v30, %v13154_v30  ;;  %v639_v42 = vmul.f32 %v13157_v32, %v13157_v32 }
 0x1b2   :  { %v640_v43 = vmul.f32 %v13161_v36, %v13161_v36  ;;  %v690_v44 = vcombine.low %v636_v37, %v637_v38  ;;  %v688_v49 = vrot.slane %v673_v35, %v12983_v16  ;;  %v12912_v3 = vmov 0.0  }
 0x1b3   :  { %v674_v45 = vcombine.low %v659_v39, %v666_v40  ;;  %v691_v46 = vcombine.low %v638_v41, %v639_v42  ;;  %11909 = vmatprep.subr.bf16.mxu1 %v12912_v3  ;;  %11957 = vmatprep.subr.bf16.mxu0 %v12912_v3  ;;  %v817_v17 = vrot.slane %v11320_v12, %v12983_v16 }
 0x1b4   :  { %v698_v47 = vrot.slane %v690_v44, %v12983_v16  ;;  %v712_v51 = vrot.slane %v640_v43, %v12983_v16  ;;  %11910 = vmatpush3.bf16.msra.mxu1 %v13187_v1  ;;  %11958 = vmatpush3.bf16.msra.mxu0 %v13192_v11  ;;  %v876_v20 = vrot.slane %v11321_v15, %v12983_v16 }
 0x1b5   :  { %v681_v48 = vrot.slane %v674_v45, %v12983_v16  ;;  %v705_v50 = vrot.slane %v691_v46, %v12983_v16  ;;  %11911 = vmatprep.subr.bf16.mxu1 %v12912_v3  ;;  %11959 = vmatprep.subr.bf16.mxu0 %v12912_v3  ;;  %v825_v27 = vcombine.high %v817_v17, %v817_v17 }
 0x1b6   :  { %v727_v62 = vrot.slane %v712_v51, %v12983_v16  ;;  %11913 = vmatprep.mubr.msk.bf16.mxu1 %vm12913_vm2, %v12912_v3  ;;  %11961 = vmatprep.mubr.msk.bf16.mxu0 %vm12913_vm2, %v12912_v3  ;;  %v810_v37 = vcombine.high %v11320_v12, %v11320_v12  ;;  %v884_v38 = vcombine.high %v876_v20, %v876_v20 }
 0x1b7   :  { %v689_v52 = vcombine.low %v681_v48, %v688_v49  ;;  %v713_v57 = vcombine.low %v698_v47, %v705_v50  ;;  %v832_v39 = vrot.slane %v817_v17, %v12983_v16  ;;  %v846_v40 = vrot.slane %v825_v27, %v12983_v16 }
 0x1b8   :  { %11912 = vmatpush3.bf16.msra.mxu1 %v13201_v9  ;;  %11960 = vmatpush3.bf16.msra.mxu0 %v13206_v10  ;;  %v869_v41 = vcombine.high %v11321_v15, %v11321_v15  ;;  %v824_v42 = vrot.slane %v810_v37, %v12983_v16  ;;  %v891_v43 = vrot.slane %v876_v20, %v12983_v16 }
 0x1b9   :  { %v731_v59 = vsel %vm559_vm1, %v689_v52, 0.0  ;;  %v720_v61 = vrot.slane %v713_v57, %v12983_v16  ;;  %11917 = vmatprep.subr.bf16.mxu1 %v12912_v3  ;;  %11973 = vmatprep.subr.bf16.mxu0 %v12912_v3  ;;  %v905_v44 = vrot.slane %v884_v38, %v12983_v16  ;;  %v847_v46 = vcombine.high %v832_v39, %v832_v39 }
 0x1ba   :  { %732 = vadd.xlane.f32.xlu1 %v731_v59  ;;  %v848_v47 = vcombine.high %v846_v40, %v846_v40  ;;  %v883_v48 = vrot.slane %v869_v41, %v12983_v16  ;;  %v839_v57 = vrot.slane %v824_v42, %v12983_v16  ;;  %v906_v59 = vcombine.high %v891_v43, %v891_v43 }
 0x1bb   :  { %v728_v63 = vcombine.low %v720_v61, %v727_v62  ;;  %v907_v61 = vcombine.high %v905_v44, %v905_v44 }
 0x1bc   :  { %v898_v15 = vrot.slane %v883_v48, %v12983_v16 }
 0x1bd   :  { %v734_v0 = vsel %vm559_vm1, %v728_v63, 0.0 }
 0x1be   :  { %735 = vadd.xlane.f32.xlu1 %v734_v0 }
 0x247   :  { %v733_v13 = vpop.xlane.xlu1 %732 }
 0x248   :  { %v737_v14 = vmul.f32 0.03125, %v733_v13 }
 0x24a   :  { %v739_v18 = vadd.f32 1e-12, %v737_v14 }
 0x24b   :  { %v736_v19 = vpop.xlane.xlu1 %735 }
 0x24c   :  { %12760 = vrsqrt.f32 %v739_v18  ;;  %v738_v24 = vmul.f32 0.03125, %v736_v19 }
 0x24e   :  { %v740_v35 = vadd.f32 1e-12, %v738_v24 }
 0x250   :  { %12762 = vrsqrt.f32 %v740_v35 }
 0x256   :  { %v12761_v45 = vpop.eup %12760 }
 0x257   :  { %v748_v49 = vrot.slane %v12761_v45, %v13090_v53  ;;  %v752_v50 = vrot.slane %v12761_v45, %v13093_v54  ;;  %v756_v51 = vrot.slane %v12761_v45, %v13096_v55  ;;  %v760_v52 = vrot.slane %v12761_v45, %v13099_v56 }
 0x258   :  { %v764_v62 = vrot.slane %v12761_v45, %v13102_v58 }
 0x259   :  { %v795_v63 = vmul.f32 %v748_v49, %v13118_v4  ;;  %v796_v0 = vmul.f32 %v752_v50, %v13121_v5  ;;  %v797_v12 = vmul.f32 %v756_v51, %v13124_v6  ;;  %v798_v13 = vmul.f32 %v760_v52, %v13127_v7 }
 0x25a   :  { %v12763_v14 = vpop.eup %12762  ;;  %v799_v17 = vmul.f32 %v764_v62, %v13130_v8 }
 0x25b   :  { %v854_v18 = vmul.f32 %v832_v39, %v795_v63  ;;  %v855_v19 = vmul.f32 %v846_v40, %v796_v0  ;;  %v856_v20 = vmul.f32 %v847_v46, %v797_v12  ;;  %v857_v24 = vmul.f32 %v848_v47, %v798_v13 }
 0x25c   :  { %v858_v27 = vmul.f32 %v839_v57, %v799_v17  ;;  %v768_v35 = vrot.slane %v12763_v14, %v13090_v53  ;;  %v772_v4 = vrot.slane %v12763_v14, %v13093_v54  ;;  %v776_v5 = vrot.slane %v12763_v14, %v13096_v55 }
 0x25d   :  { %v913_v37 = vadd.f32 %v891_v43, %v854_v18  ;;  %v914_v6 = vadd.f32 %v905_v44, %v855_v19  ;;  %v915_v38 = vadd.f32 %v906_v59, %v856_v20  ;;  %v916_v7 = vadd.f32 %v907_v61, %v857_v24 }
 0x25e   :  { %v917_v41 = vadd.f32 %v898_v15, %v858_v27  ;;  %v780_v42 = vrot.slane %v12763_v14, %v13099_v56  ;;  %v784_v8 = vrot.slane %v12763_v14, %v13102_v58  ;;  %v800_v45 = vmul.f32 %v768_v35, %v13148_v21 }
 0x25f   :  { %v933_v48 = vcombine.low %v913_v37, %v914_v6  ;;  %v934_v49 = vcombine.low %v915_v38, %v916_v7  ;;  %v801_v50 = vmul.f32 %v772_v4, %v13151_v22  ;;  %v802_v51 = vmul.f32 %v776_v5, %v13154_v30  ;;  %v12686_v5 = vld [vmem:[%s15586_s1 + $0x10] sm:$0xff]   ;;  %v13313_v38 = vld [vmem:[%s15586_s1 + $0x58] sm:$0xff]   ;;  %v13325_v7 = vld [vmem:[%s15586_s1 + $0x60] sm:$0xff]  }
 0x260   :  { %v803_v52 = vmul.f32 %v780_v42, %v13157_v32  ;;  %v804_v62 = vmul.f32 %v784_v8, %v13161_v36  ;;  %v859_v63 = vmul.f32 %v832_v39, %v800_v45  ;;  %v955_v0 = vrot.slane %v917_v41, %v12983_v16  ;;  %v13296_v37 = vld [vmem:[%s15586_s1 + $0x50] sm:$0xff]   ;;  %v13337_v41 = vld [vmem:[%s15586_s1 + $0x68] sm:$0xff]   ;;  %v12692_v42 = vld [vmem:[%s15586_s1 + $0x20] sm:$0xff]  }
 0x261   :  { %v860_v12 = vmul.f32 %v846_v40, %v801_v50  ;;  %v861_v13 = vmul.f32 %v847_v46, %v802_v51  ;;  %v941_v17 = vrot.slane %v933_v48, %v12983_v16  ;;  %v948_v14 = vrot.slane %v934_v49, %v12983_v16  ;;  %v13352_v8 = vld [vmem:[%s15586_s1 + $0x70] sm:$0xff]   ;;  %v12694_v45 = vld [vmem:[%s15586_s1 + $0x28] sm:$0xff]   ;;  %v13367_v48 = vld [vmem:[%s15586_s1 + $0x78] sm:$0xff]  }
 0x262   :  { %v862_v21 = vmul.f32 %v848_v47, %v803_v52  ;;  %v863_v18 = vmul.f32 %v839_v57, %v804_v62  ;;  %v918_v19 = vadd.f32 %v891_v43, %v859_v63  ;;  %v970_v39 = vrot.slane %v955_v0, %v12983_v16  ;;  %v13263_v47 = vld [vmem:[%s15586_s1 + $0x40] sm:$0xff]   ;;  %v13391_v50 = vld [vmem:[%s15586_s1 + $0x88] sm:$0xff]   ;;  %v13403_v51 = vld [vmem:[%s15586_s1 + $0x90] sm:$0xff]  }
 0x263   :  { %v919_v20 = vadd.f32 %v905_v44, %v860_v12  ;;  %v920_v22 = vadd.f32 %v906_v59, %v861_v13  ;;  %v956_v24 = vcombine.low %v941_v17, %v948_v14  ;;  %v13379_v49 = vld [vmem:[%s15586_s1 + $0x80] sm:$0xff]   ;;  %v12699_v52 = vld [vmem:[%s15586_s1 + $0x98] sm:$0xff]   ;;  %v12702_v62 = vld [vmem:[%s15586_s1 + $0xb0] sm:$0xff]  }
 0x264   :  { %v921_v30 = vadd.f32 %v907_v61, %v862_v21  ;;  %v922_v27 = vadd.f32 %v898_v15, %v863_v18  ;;  %v13278_v61 = vld [vmem:[%s15586_s1 + $0x48] sm:$0xff]   ;;  %v12703_v63 = vld [vmem:[%s15586_s1 + $0xb8] sm:$0xff]  }
 0x265   :  { %v972_v32 = vcombine.low %v918_v19, %v919_v20  ;;  %v963_v36 = vrot.slane %v956_v24, %v12983_v16  ;;  %v1063_v0 = vld [vmem:[%s15589_s4 + $0xc] sm:$0xff] }
 0x266   :  { %v973_v35 = vcombine.low %v920_v22, %v921_v30  ;;  %v994_v44 = vrot.slane %v922_v27, %v12983_v16  ;;  %v1067_v12 = vcombine.high %v1063_v0, %v1063_v0  ;;  %v1074_v17 = vrot.slane %v1063_v0, %v12983_v16 }
 0x267   :  { %v971_v40 = vcombine.low %v963_v36, %v970_v39  ;;  %v980_v46 = vrot.slane %v972_v32, %v12983_v16 }
 0x268   :  { %v987_v43 = vrot.slane %v973_v35, %v12983_v16  ;;  %v1009_v4 = vrot.slane %v994_v44, %v12983_v16  ;;  %v1081_v13 = vrot.slane %v1067_v12, %v12983_v16  ;;  %v1090_v21 = vrot.slane %v1074_v17, %v12983_v16 }
 0x269   :  { %v13267_v57 = vpack.c.bf16 %v971_v40, %v971_v40  ;;  %v1082_v24 = vcombine.high %v1074_v17, %v1074_v17 }
 0x26a   :  { %v995_v59 = vcombine.low %v980_v46, %v987_v43  ;;  %v1097_v14 = vrot.slane %v1081_v13, %v12983_v16  ;;  %v1083_v18 = vcombine.high %v1081_v13, %v1081_v13  ;;  %v1143_v20 = vrot.slane %v1090_v21, %v13090_v53 }
 0x26b   :  { %11914 = vmatmul.mubr.msk.bf16.vlgmr.msra.gmra.mrb[0].mxu1 %vm1584_vm3, %v13267_v57  ;;  %11962 = vmatmul.mubr.msk.bf16.vlgmr.msra.gmra.mrb[4].mxu0 %vm1584_vm3, %v13267_v57  ;;  %v1104_v35 = vrot.slane %v1082_v24, %v12983_v16  ;;  %v1112_v12 = vcombine.high %v1090_v21, %v1090_v21 }
 0x26c   :  { %11918 = vmatpush3.bf16.msra.mxu1 %v13187_v1  ;;  %11974 = vmatpush3.bf16.msra.mxu0 %v13263_v47  ;;  %v1002_v15 = vrot.slane %v995_v59, %v12983_v16  ;;  %v1159_v19 = vrot.slane %v1097_v14, %v13090_v53  ;;  %v1111_v22 = vrot.slane %v1083_v18, %v12983_v16 }
 0x26d   :  { %11919 = vmatprep.subr.bf16.mxu1 %v12912_v3  ;;  %11975 = vmatprep.subr.bf16.mxu0 %v12912_v3  ;;  %v13530_v27 = vrot.slane %v1143_v20, %v12983_v16  ;;  %v1114_v18 = vcombine.high %v1104_v35, %v1104_v35 }
 0x26e   :  { %11921 = vmatprep.mubr.msk.bf16.mxu1 %vm12913_vm2, %v12912_v3  ;;  %11977 = vmatprep.mubr.msk.bf16.mxu0 %vm12913_vm2, %v12912_v3  ;;  %v1010_v1 = vcombine.low %v1002_v15, %v1009_v4  ;;  %v13527_v30 = vrot.slane %v1159_v19, %v12983_v16  ;;  %v1163_v39 = vrot.slane %v1111_v22, %v13090_v53 }
 0x26f   :  { %v1147_v15 = vrot.slane %v1104_v35, %v13090_v53  ;;  %v1115_v13 = vcombine.high %v1111_v22, %v1111_v22  ;;  %v11322_v22 = vld.sshfl [vmem:[%s15589_s4 + $0x14] sm:$0x33 pattern:$0x75316420] }
 0x270   :  { %11920 = vmatpush3.bf16.msra.mxu1 %v13201_v9  ;;  %11976 = vmatpush3.bf16.msra.mxu0 %v13278_v61  ;;  %v13298_v6 = vpack.c.bf16 %v1010_v1, %v1010_v1  ;;  %v12688_v9 = vld [vmem:[%s15586_s1 + $0x18] sm:$0xff]   ;;  %v13542_v4 = vrot.slane %v1163_v39, %v12983_v16 }
 0x271   :  { %11925 = vmatprep.subr.bf16.mxu1 %v12912_v3  ;;  %11989 = vmatprep.subr.bf16.mxu0 %v12912_v3  ;;  %v1171_v21 = vrot.slane %v1115_v13, %v13090_v53 }
 0x273   :  { %11922 = vmatmul.mubr.msk.bf16.vlgmr.msra.gmra.mrb[4].mxu1 %vm1584_vm3, %v13298_v6  ;;  %11978 = vmatmul.mubr.msk.bf16.vlgmr.msra.gmra.mrb[8].mxu0 %vm1584_vm3, %v13267_v57 }
 0x274   :  { %11926 = vmatpush3.bf16.msra.mxu1 %v12686_v5  ;;  %11990 = vmatpush3.bf16.msra.mxu0 %v13296_v37 }
 0x275   :  { %11927 = vmatprep.subr.bf16.mxu1 %v12912_v3  ;;  %11991 = vmatprep.subr.bf16.mxu0 %v12912_v3 }
 0x276   :  { %11929 = vmatprep.mubr.msk.bf16.mxu1 %vm12913_vm2, %v12912_v3  ;;  %11993 = vmatprep.mubr.msk.bf16.mxu0 %vm12913_vm2, %v12912_v3 }
 0x278   :  { %11928 = vmatpush3.bf16.msra.mxu1 %v12688_v9  ;;  %11992 = vmatpush3.bf16.msra.mxu0 %v13313_v38 }
 0x279   :  { %11933 = vmatprep.subr.bf16.mxu1 %v12912_v3  ;;  %12005 = vmatprep.subr.bf16.mxu0 %v12912_v3 }
 0x27b   :  { %11930 = vmatmul.mubr.msk.bf16.vlgmr.msra.gmra.mrb[8].mxu1 %vm1584_vm3, %v13267_v57  ;;  %11994 = vmatmul.mubr.msk.bf16.vlgmr.msra.gmra.mrb[12].mxu0 %vm1584_vm3, %v13267_v57 }
 0x27c   :  { %11934 = vmatpush3.bf16.msra.mxu1 %v12686_v5  ;;  %12006 = vmatpush3.bf16.msra.mxu0 %v13325_v7  ;;  %v1113_v5 = vcombine.high %v1097_v14, %v1097_v14 }
 0x27d   :  { %11935 = vmatprep.subr.bf16.mxu1 %v12912_v3  ;;  %12007 = vmatprep.subr.bf16.mxu0 %v12912_v3 }
 0x27e   :  { %11937 = vmatprep.mubr.msk.bf16.mxu1 %vm12913_vm2, %v12912_v3  ;;  %12009 = vmatprep.mubr.msk.bf16.mxu0 %vm12913_vm2, %v12912_v3 }
 0x280   :  { %11936 = vmatpush3.bf16.msra.mxu1 %v12688_v9  ;;  %12008 = vmatpush3.bf16.msra.mxu0 %v13337_v41 }
 0x281   :  { %11941 = vmatprep.subr.bf16.mxu1 %v12912_v3  ;;  %12021 = vmatprep.subr.bf16.mxu0 %v12912_v3 }
 0x283   :  { %11938 = vmatmul.mubr.msk.bf16.vlgmr.msra.gmra.mrb[12].mxu1 %vm1584_vm3, %v13298_v6  ;;  %12010 = vmatmul.mubr.msk.bf16.vlgmr.msra.gmra.mrb[16].mxu0 %vm1584_vm3, %v13267_v57 }
 0x284   :  { %11942 = vmatpush3.bf16.msra.mxu1 %v12692_v42  ;;  %12022 = vmatpush3.bf16.msra.mxu0 %v13352_v8 }
 0x285   :  { %11943 = vmatprep.subr.bf16.mxu1 %v12912_v3  ;;  %12023 = vmatprep.subr.bf16.mxu0 %v12912_v3 }
 0x286   :  { %11945 = vmatprep.mubr.msk.bf16.mxu1 %vm12913_vm2, %v12912_v3  ;;  %12025 = vmatprep.mubr.msk.bf16.mxu0 %vm12913_vm2, %v12912_v3 }
 0x288   :  { %11944 = vmatpush3.bf16.msra.mxu1 %v12694_v45  ;;  %12024 = vmatpush3.bf16.msra.mxu0 %v13367_v48 }
 0x289   :  { %11949 = vmatprep.subr.bf16.mxu1 %v12912_v3  ;;  %12037 = vmatprep.subr.bf16.mxu0 %v12912_v3 }
 0x28b   :  { %11946 = vmatmul.mubr.msk.bf16.vlgmr.msra.gmra.mrb[16].mxu1 %vm1584_vm3, %v13267_v57  ;;  %12026 = vmatmul.mubr.msk.bf16.vlgmr.msra.gmra.mrb[20].mxu0 %vm1584_vm3, %v13267_v57 }
 0x28c   :  { %11950 = vmatpush3.bf16.msra.mxu1 %v12692_v42  ;;  %12038 = vmatpush3.bf16.msra.mxu0 %v13379_v49 }
 0x28d   :  { %11951 = vmatprep.subr.bf16.mxu1 %v12912_v3  ;;  %12039 = vmatprep.subr.bf16.mxu0 %v12912_v3 }
 0x28e   :  { %11953 = vmatprep.mubr.msk.bf16.mxu1 %vm12913_vm2, %v12912_v3  ;;  %12041 = vmatprep.mubr.msk.bf16.mxu0 %vm12913_vm2, %v12912_v3 }
 0x290   :  { %11952 = vmatpush3.bf16.msra.mxu1 %v12694_v45  ;;  %12040 = vmatpush3.bf16.msra.mxu0 %v13391_v50  ;;  %v1167_v45 = vrot.slane %v1113_v5, %v13090_v53 }
 0x291   :  { %11965 = vmatprep.subr.bf16.mxu1 %v12912_v3  ;;  %12053 = vmatprep.subr.bf16.mxu0 %v12912_v3 }
 0x292   :  { %v13559_v0 = vrot.slane %v1167_v45, %v12983_v16 }
 0x293   :  { %11954 = vmatmul.mubr.msk.bf16.vlgmr.msra.gmra.mrb[20].mxu1 %vm1584_vm3, %v13298_v6  ;;  %12042 = vmatmul.mubr.msk.bf16.vlgmr.msra.gmra.mrb[24].mxu0 %vm1584_vm3, %v13267_v57 }
 0x294   :  { %11966 = vmatpush3.bf16.msra.mxu1 %v13192_v11  ;;  %12054 = vmatpush3.bf16.msra.mxu0 %v13403_v51  ;;  %v12700_v11 = vld [vmem:[%s15586_s1 + $0xa0] sm:$0xff]  }
 0x295   :  { %11967 = vmatprep.subr.bf16.mxu1 %v12912_v3  ;;  %12055 = vmatprep.subr.bf16.mxu0 %v12912_v3 }
 0x296   :  { %11969 = vmatprep.mubr.msk.bf16.mxu1 %vm12913_vm2, %v12912_v3  ;;  %12057 = vmatprep.mubr.msk.bf16.mxu0 %vm12913_vm2, %v12912_v3 }
 0x298   :  { %11968 = vmatpush3.bf16.msra.mxu1 %v13206_v10  ;;  %12056 = vmatpush3.bf16.msra.mxu0 %v12699_v52  ;;  %v12701_v10 = vld [vmem:[%s15586_s1 + $0xa8] sm:$0xff]  }
 0x299   :  { %11981 = vmatprep.subr.bf16.mxu1 %v12912_v3  ;;  %12069 = vmatprep.subr.bf16.mxu0 %v12912_v3 }
 0x29b   :  { %11970 = vmatmul.mubr.msk.bf16.vlgmr.msra.gmra.mrb[24].mxu1 %vm1584_vm3, %v13298_v6  ;;  %12058 = vmatmul.mubr.msk.bf16.vlgmr.msra.gmra.mrb[28].mxu0 %vm1584_vm3, %v13267_v57 }
 0x29c   :  { %11982 = vmatpush3.bf16.msra.mxu1 %v13263_v47  ;;  %12070 = vmatpush3.bf16.msra.mxu0 %v12700_v11  ;;  %v1290_v47 = vrot.slane %v13527_v30, %v12983_v16 }
 0x29d   :  { %11983 = vmatprep.subr.bf16.mxu1 %v12912_v3  ;;  %12071 = vmatprep.subr.bf16.mxu0 %v12912_v3 }
 0x29e   :  { %11985 = vmatprep.mubr.msk.bf16.mxu1 %vm12913_vm2, %v12912_v3  ;;  %12073 = vmatprep.mubr.msk.bf16.mxu0 %vm12913_vm2, %v12912_v3  ;;  %v1487_v1 = vrot.slane %v1290_v47, %v13090_v53 }
 0x2a0   :  { %11984 = vmatpush3.bf16.msra.mxu1 %v13278_v61  ;;  %12072 = vmatpush3.bf16.msra.mxu0 %v12701_v10 }
 0x2a1   :  { %11997 = vmatprep.subr.bf16.mxu1 %v12912_v3  ;;  %12085 = vmatprep.subr.bf16.mxu0 %v12912_v3 }
 0x2a3   :  { %11986 = vmatmul.mubr.msk.bf16.vlgmr.msra.gmra.mrb[28].mxu1 %vm1584_vm3, %v13298_v6  ;;  %12074 = vmatmul.mubr.msk.bf16.vlgmr.msra.gmra.mrb[32].mxu0 %vm1584_vm3, %v13267_v57 }
 0x2a4   :  { %11998 = vmatpush3.bf16.msra.mxu1 %v13296_v37  ;;  %12086 = vmatpush3.bf16.msra.mxu0 %v12702_v62 }
 0x2a5   :  { %11999 = vmatprep.subr.bf16.mxu1 %v12912_v3  ;;  %12087 = vmatprep.subr.bf16.mxu0 %v12912_v3 }
 0x2a6   :  { %12001 = vmatprep.mubr.msk.bf16.mxu1 %vm12913_vm2, %v12912_v3  ;;  %12089 = vmatprep.mubr.msk.bf16.mxu0 %vm12913_vm2, %v12912_v3 }
 0x2a8   :  { %12000 = vmatpush3.bf16.msra.mxu1 %v13313_v38  ;;  %12088 = vmatpush3.bf16.msra.mxu0 %v12703_v63 }
 0x2a9   :  { %12013 = vmatprep.subr.bf16.mxu1 %v12912_v3  ;;  %12101 = vmatprep.subr.bf16.mxu0 %v12912_v3 }
 0x2ab   :  { %12002 = vmatmul.mubr.msk.bf16.vlgmr.msra.gmra.mrb[32].mxu1 %vm1584_vm3, %v13298_v6  ;;  %12090 = vmatmul.mubr.msk.bf16.vlgmr.msra.gmra.mrb[36].mxu0 %vm1584_vm3, %v13267_v57  ;;  %v1202_v57 = vrot.slane %v13530_v27, %v12983_v16 }
 0x2ac   :  { %12014 = vmatpush3.bf16.msra.mxu1 %v13325_v7  ;;  %12017 = vmatprep.mubr.msk.bf16.mxu1 %vm12913_vm2, %v12912_v3  ;;  %v1312_v7 = vrot.slane %v13542_v4, %v12983_v16 }
 0x2ad   :  { %12015 = vmatprep.subr.bf16.mxu1 %v12912_v3  ;;  %12103 = vmatprep.mubr.msk.bf16.mxu0 %vm12913_vm2, %v12912_v3  ;;  %v1455_v37 = vrot.slane %v1202_v57, %v13090_v53 }
 0x2b0   :  { %12016 = vmatpush3.bf16.msra.mxu1 %v13337_v41 }
 0x2b1   :  { %12029 = vmatprep.subr.bf16.mxu1 %v12912_v3 }
 0x2b3   :  { %12018 = vmatmul.mubr.msk.bf16.vlgmr.msra.gmra.mrb[36].mxu1 %vm1584_vm3, %v13298_v6 }
 0x2b4   :  { %12030 = vmatpush3.bf16.msra.mxu1 %v13352_v8  ;;  %12033 = vmatprep.mubr.msk.bf16.mxu1 %vm12913_vm2, %v12912_v3 }
 0x2b5   :  { %12031 = vmatprep.subr.bf16.mxu1 %v12912_v3 }
 0x2b8   :  { %12032 = vmatpush3.bf16.msra.mxu1 %v13367_v48 }
 0x2b9   :  { %12045 = vmatprep.subr.bf16.mxu1 %v12912_v3 }
 0x2bb   :  { %12034 = vmatmul.mubr.msk.bf16.vlgmr.msra.gmra.mrb[40].mxu1 %vm1584_vm3, %v13298_v6 }
 0x2bc   :  { %12046 = vmatpush3.bf16.msra.mxu1 %v13379_v49  ;;  %12049 = vmatprep.mubr.msk.bf16.mxu1 %vm12913_vm2, %v12912_v3 }
 0x2bd   :  { %12047 = vmatprep.subr.bf16.mxu1 %v12912_v3 }
 0x2c0   :  { %12048 = vmatpush3.bf16.msra.mxu1 %v13391_v50 }
 0x2c1   :  { %12061 = vmatprep.subr.bf16.mxu1 %v12912_v3 }
 0x2c3   :  { %12050 = vmatmul.mubr.msk.bf16.vlgmr.msra.gmra.mrb[44].mxu1 %vm1584_vm3, %v13298_v6 }
 0x2c4   :  { %12062 = vmatpush3.bf16.msra.mxu1 %v13403_v51  ;;  %12065 = vmatprep.mubr.msk.bf16.mxu1 %vm12913_vm2, %v12912_v3 }
 0x2c5   :  { %12063 = vmatprep.subr.bf16.mxu1 %v12912_v3 }
 0x2c8   :  { %12064 = vmatpush3.bf16.msra.mxu1 %v12699_v52 }
 0x2c9   :  { %12077 = vmatprep.subr.bf16.mxu1 %v12912_v3 }
 0x2cb   :  { %12066 = vmatmul.mubr.msk.bf16.vlgmr.msra.gmra.mrb[48].mxu1 %vm1584_vm3, %v13298_v6 }
 0x2cc   :  { %12078 = vmatpush3.bf16.msra.mxu1 %v12700_v11  ;;  %12081 = vmatprep.mubr.msk.bf16.mxu1 %vm12913_vm2, %v12912_v3 }
 0x2cd   :  { %12079 = vmatprep.subr.bf16.mxu1 %v12912_v3 }
 0x2d0   :  { %12080 = vmatpush3.bf16.msra.mxu1 %v12701_v10 }
 0x2d1   :  { %12093 = vmatprep.subr.bf16.mxu1 %v12912_v3 }
 0x2d3   :  { %12082 = vmatmul.mubr.msk.bf16.vlgmr.msra.gmra.mrb[52].mxu1 %vm1584_vm3, %v13298_v6 }
 0x2d4   :  { %12094 = vmatpush3.bf16.msra.mxu1 %v12702_v62  ;;  %12097 = vmatprep.mubr.msk.bf16.mxu1 %vm12913_vm2, %v12912_v3  ;;  %v1495_v62 = vrot.slane %v1312_v7, %v13090_v53  ;;  %v13581_v7 = vrot.slane %v1171_v21, %v12983_v16 }
 0x2d5   :  { %12095 = vmatprep.subr.bf16.mxu1 %v12912_v3 }
 0x2d8   :  { %12096 = vmatpush3.bf16.msra.mxu1 %v12703_v63 }
 0x2d9   :  { %12107 = vmatprep.subr.bf16.mxu1 %v12912_v3 }
 0x2db   :  { %12098 = vmatmul.mubr.msk.bf16.vlgmr.msra.gmra.mrb[56].mxu1 %vm1584_vm3, %v13298_v6  ;;  %v13547_v6 = vrot.slane %v1147_v15, %v12983_v16  ;;  %v1155_v15 = vrot.slane %v1114_v18, %v13090_v53 }
 0x2dc   :  { %12109 = vmatprep.mubr.msk.bf16.mxu1 %vm12913_vm2, %v12912_v3 }
 0x2dd   :  { %v1224_v10 = vrot.slane %v13547_v6, %v12983_v16 }
 0x2df   :  { %v1463_v14 = vrot.slane %v1224_v10, %v13090_v53  ;;  %v1356_v10 = vrot.slane %v13581_v7, %v12983_v16 }
 0x33e   :  { %v1622_v32 = vpop.f32.mrb[0].mxu1  ;;  %v13532_v36 = vpop.f32.mrb[4].mxu0 }
 0x33f   :  { %v11915_v40 = vpop.f32.mrb[1].mxu1  ;;  %v11963_v46 = vpop.f32.mrb[5].mxu0  ;;  %v1623_v50 = vadd.f32 %v1622_v32, %v1455_v37 }
 0x340   :  { %v1625_v43 = vpop.f32.mrb[2].mxu1  ;;  %v1904_v44 = vpop.f32.mrb[6].mxu0  ;;  %v1334_v40 = vrot.slane %v13559_v0, %v12983_v16  ;;  %v1151_v46 = vrot.slane %v1112_v12, %v13090_v53 }
 0x341   :  { %v11916_v59 = vpop.f32.mrb[3].mxu1  ;;  %v11964_v61 = vpop.f32.mrb[7].mxu0  ;;  %v2683_v17 = vmul.f32 0.35355338, %v1623_v50 }
 0x342   :  { %v1503_v37 = vrot.slane %v1334_v40, %v13090_v53 }
 0x343   :  { %v2691_v44 = vpack.c.bf16 %v2683_v17, %v2683_v17 }
 0x346   :  { %v13549_v9 = vpop.f32.mrb[4].mxu1  ;;  %v1993_v38 = vpop.f32.mrb[8].mxu0 }
 0x347   :  { %v1994_v41 = vadd.f32 %v1993_v38, %v1487_v1  ;;  %v11923_v42 = vpop.f32.mrb[5].mxu1  ;;  %v11979_v8 = vpop.f32.mrb[9].mxu0  ;;  %v13572_v1 = vrot.slane %v11322_v22, %v12983_v16  ;;  %v13578_v38 = vrot.slane %v1151_v46, %v12983_v16 }
 0x348   :  { %v1668_v48 = vpop.f32.mrb[6].mxu1  ;;  %v1996_v49 = vpop.f32.mrb[10].mxu0 }
 0x349   :  { %v2699_v51 = vpack.c.bf16 %v1994_v41, %v1994_v41  ;;  %v11924_v52 = vpop.f32.mrb[7].mxu1  ;;  %v11980_v11 = vpop.f32.mrb[11].mxu0  ;;  %v1175_v45 = vrot.slane %v13572_v1, %v13090_v53  ;;  %v1123_v48 = vcombine.high %v11322_v22, %v11322_v22  ;;  %v13591_v49 = vrot.slane %v1155_v15, %v12983_v16 }
 0x34a   :  { %v1246_v11 = vrot.slane %v13578_v38, %v12983_v16 }
 0x34b   :  { %v2720_v63 = vsel %vm2715_vm4, %v2699_v51, 0  ;;  %v13598_v18 = vrot.slane %v1175_v45, %v12983_v16 }
 0x34c   :  { %12102 = vmatpush3.bf16.xpose.msra.mxu0 %v2720_v63 }
 0x34d   :  { %12113 = vmatprep.subr.bf16.mxu0 %v12912_v3  ;;  %v1378_v21 = vrot.slane %v13598_v18, %v12983_v16 }
 0x34e   :  { %v1717_v19 = vpop.f32.mrb[8].mxu1  ;;  %v2085_v20 = vpop.f32.mrb[12].mxu0 }
 0x34f   :  { %v2086_v24 = vadd.f32 %v2085_v20, %v1495_v62  ;;  %v11931_v32 = vpop.f32.mrb[9].mxu1  ;;  %v11995_v39 = vpop.f32.mrb[13].mxu0  ;;  %v1718_v35 = vadd.f32 %v1717_v19, %v1463_v14  ;;  %v13601_v19 = vrot.slane %v1123_v48, %v12983_v16  ;;  %v1268_v20 = vrot.slane %v13591_v49, %v12983_v16 }
 0x350   :  { %v1720_v47 = vpop.f32.mrb[10].mxu1  ;;  %v2088_v43 = vpop.f32.mrb[14].mxu0  ;;  %v1471_v32 = vrot.slane %v1246_v11, %v13090_v53  ;;  %v1511_v39 = vrot.slane %v1356_v10, %v13090_v53  ;;  %v12914_v11 = vmov 65535  }
 0x351   :  { %v2701_v57 = vpack.c.bf16 %v2086_v24, %v2086_v24  ;;  %v11932_v59 = vpop.f32.mrb[11].mxu1  ;;  %v11996_v61 = vpop.f32.mrb[15].mxu0  ;;  %v2685_v41 = vmul.f32 0.35355338, %v1718_v35  ;;  %v1179_v22 = vrot.slane %v13601_v19, %v13090_v53  ;;  %v1479_v47 = vrot.slane %v1268_v20, %v13090_v53 }
 0x352   :  { %v3187_v10 = vsel %vm3185_vm5, 4294967295, %v12914_v11 }
 0x353   :  { %v2812_v5 = vsel %vm2715_vm4, %v2701_v57, 0  ;;  %12104 = vmatmul.mubr.msk.bf16.vlgmr.msra.gmra.mrb[40].mxu0 %vm2715_vm4, %v2691_v44  ;;  %v2693_v12 = vpack.c.bf16 %v2685_v41, %v2685_v41  ;;  %v13619_v45 = vrot.slane %v1179_v22, %v12983_v16  ;;  %v1902_v48 = vadd.f32 %v13532_v36, %v1479_v47 }
 0x354   :  { %12114 = vmatpush3.bf16.xpose.msra.mxu0 %v2812_v5  ;;  %12115 = vmatprep.mubr.msk.bf16.mxu0 %vm12913_vm2, %v12912_v3  ;;  %v13634_v20 = vsel %vm3186_vm6, %v3187_v10, 0  ;;  %v1283_v22 = vcombine.high %v13527_v30, %v13527_v30  ;;  %v1305_v10 = vcombine.high %v13542_v4, %v13542_v4 }
 0x355   :  { %12125 = vmatprep.subr.bf16.mxu0 %v12912_v3  ;;  %v1400_v36 = vrot.slane %v13619_v45, %v12983_v16 }
 0x356   :  { %v13586_v42 = vpop.f32.mrb[12].mxu1  ;;  %v2177_v8 = vpop.f32.mrb[16].mxu0 }
 0x357   :  { %v2178_v50 = vadd.f32 %v2177_v8, %v1503_v37  ;;  %v11939_v51 = vpop.f32.mrb[13].mxu1  ;;  %v12011_v52 = vpop.f32.mrb[17].mxu0  ;;  %v1519_v8 = vrot.slane %v1378_v21, %v13090_v53  ;;  %v1527_v21 = vrot.slane %v1400_v36, %v13090_v53 }
 0x358   :  { %v1760_v62 = vpop.f32.mrb[14].mxu1  ;;  %v2180_v63 = vpop.f32.mrb[18].mxu0  ;;  %v1138_v52 = vcombine.high %v13572_v1, %v13572_v1 }
 0x359   :  { %v2703_v13 = vpack.c.bf16 %v2178_v50, %v2178_v50  ;;  %v11940_v17 = vpop.f32.mrb[15].mxu1  ;;  %v12012_v14 = vpop.f32.mrb[19].mxu0 }
 0x35a   :  { %v1183_v1 = vrot.slane %v1138_v52, %v13090_v53 }
 0x35b   :  { %v2904_v24 = vsel %vm2715_vm4, %v2703_v13, 0  ;;  %12116 = vmatmul.mubr.msk.bf16.vlgmr.msra.gmra.mrb[44].mxu0 %vm2715_vm4, %v2693_v12  ;;  %v2689_v12 = vmul.f32 0.35355338, %v1902_v48 }
 0x35c   :  { %12126 = vmatpush3.bf16.xpose.msra.mxu0 %v2904_v24  ;;  %12127 = vmatprep.mubr.msk.bf16.mxu0 %vm12913_vm2, %v12912_v3 }
 0x35d   :  { %12137 = vmatprep.subr.bf16.mxu0 %v12912_v3  ;;  %v2697_v47 = vpack.c.bf16 %v2689_v12, %v2689_v12  ;;  %v1217_v12 = vcombine.high %v13547_v6, %v13547_v6 }
 0x35e   :  { %v1809_v40 = vpop.f32.mrb[16].mxu1  ;;  %v2269_v46 = vpop.f32.mrb[20].mxu0 }
 0x35f   :  { %v1810_v43 = vadd.f32 %v1809_v40, %v1471_v32  ;;  %v2270_v44 = vadd.f32 %v2269_v46, %v1511_v39  ;;  %v11947_v35 = vpop.f32.mrb[17].mxu1  ;;  %v12027_v57 = vpop.f32.mrb[21].mxu0 }
 0x360   :  { %v1812_v59 = vpop.f32.mrb[18].mxu1  ;;  %v2272_v61 = vpop.f32.mrb[22].mxu0  ;;  %v1139_v35 = vcombine.high %v13601_v19, %v13601_v19  ;;  %v1195_v57 = vcombine.high %v13530_v27, %v13530_v27 }
 0x361   :  { %v2687_v15 = vmul.f32 0.35355338, %v1810_v43  ;;  %v2705_v5 = vpack.c.bf16 %v2270_v44, %v2270_v44  ;;  %v11948_v37 = vpop.f32.mrb[19].mxu1  ;;  %v12028_v41 = vpop.f32.mrb[23].mxu0  ;;  %v13641_v44 = vrot.slane %v1183_v1, %v12983_v16 }
 0x362   :  { %v1297_v37 = vrot.slane %v1283_v22, %v12983_v16  ;;  %v1187_v27 = vrot.slane %v1139_v35, %v13090_v53  ;;  %v1209_v48 = vrot.slane %v1195_v57, %v12983_v16  ;;  %v1231_v22 = vrot.slane %v1217_v12, %v12983_v16 }
 0x363   :  { %v2695_v50 = vpack.c.bf16 %v2687_v15, %v2687_v15  ;;  %v2996_v51 = vsel %vm2715_vm4, %v2705_v5, 0  ;;  %v1422_v19 = vrot.slane %v13641_v44, %v12983_v16 }
 0x364   :  { %v1491_v52 = vrot.slane %v1297_v37, %v13090_v53  ;;  %v1459_v36 = vrot.slane %v1209_v48, %v13090_v53  ;;  %v1467_v37 = vrot.slane %v1231_v22, %v13090_v53 }
 0x365   :  { %12128 = vmatmul.mubr.msk.bf16.vlgmr.msra.gmra.mrb[48].mxu0 %vm2715_vm4, %v2695_v50  ;;  %v1535_v11 = vrot.slane %v1422_v19, %v13090_v53 }
 0x366   :  { %12138 = vmatpush3.bf16.xpose.msra.mxu0 %v2996_v51  ;;  %v13626_v62 = vpop.f32.mrb[20].mxu1  ;;  %v2361_v63 = vpop.f32.mrb[24].mxu0  ;;  %12139 = vmatprep.mubr.msk.bf16.mxu0 %vm12913_vm2, %v12912_v3 }
 0x367   :  { %v2362_v13 = vadd.f32 %v2361_v63, %v1519_v8  ;;  %v11955_v17 = vpop.f32.mrb[21].mxu1  ;;  %v12043_v14 = vpop.f32.mrb[25].mxu0  ;;  %12149 = vmatprep.subr.bf16.mxu0 %v12912_v3  ;;  %v13665_v63 = vrot.slane %v1187_v27, %v12983_v16 }
 0x368   :  { %v1852_v24 = vpop.f32.mrb[22].mxu1  ;;  %v2364_v32 = vpop.f32.mrb[26].mxu0 }
 0x369   :  { %v2707_v39 = vpack.c.bf16 %v2362_v13, %v2362_v13  ;;  %v11956_v40 = vpop.f32.mrb[23].mxu1  ;;  %v12044_v46 = vpop.f32.mrb[27].mxu0  ;;  %v1444_v4 = vrot.slane %v13665_v63, %v12983_v16 }
 0x36b   :  { %v3190_v43 = vand.u32 %v13634_v20, %v2707_v39  ;;  %v1319_v39 = vrot.slane %v1305_v10, %v12983_v16  ;;  %v1758_v10 = vadd.f32 %v13586_v42, %v1467_v37 }
 0x36d   :  { %12140 = vmatmul.mubr.msk.bf16.vlgmr.msra.gmra.mrb[52].mxu0 %vm2715_vm4, %v2697_v47  ;;  %v1499_v57 = vrot.slane %v1319_v39, %v13090_v53  ;;  %v1261_v39 = vcombine.high %v13591_v49, %v13591_v49 }
 0x36e   :  { %12150 = vmatpush3.bf16.msra.mxu0 %v3190_v43  ;;  %v13648_v59 = vpop.f32.mrb[24].mxu1  ;;  %v2453_v61 = vpop.f32.mrb[28].mxu0  ;;  %12151 = vmatprep.mubr.msk.bf16.mxu0 %vm12913_vm2, %v12912_v3 }
 0x36f   :  { %v13652_v30 = vadd.f32 %v2453_v61, %v1527_v21  ;;  %v11971_v15 = vpop.f32.mrb[25].mxu1  ;;  %v12059_v5 = vpop.f32.mrb[29].mxu0  ;;  %12161 = vmatprep.subr.bf16.mxu0 %v12912_v3  ;;  %v1666_v21 = vadd.f32 %v13549_v9, %v1459_v36  ;;  %v1543_v61 = vrot.slane %v1444_v4, %v13090_v53  ;;  %v1239_v9 = vcombine.high %v13578_v38, %v13578_v38 }
 0x370   :  { %v1944_v41 = vpop.f32.mrb[26].mxu1  ;;  %v2456_v8 = vpop.f32.mrb[30].mxu0  ;;  %v1327_v15 = vcombine.high %v13559_v0, %v13559_v0 }
 0x371   :  { %v11972_v50 = vpop.f32.mrb[27].mxu1  ;;  %v12060_v51 = vpop.f32.mrb[31].mxu0  ;;  %v2684_v5 = vmul.f32 0.35355338, %v1666_v21  ;;  %v1253_v36 = vrot.slane %v1239_v9, %v12983_v16 }
 0x372   :  { %v1341_v51 = vrot.slane %v1327_v15, %v12983_v16 }
 0x373   :  { %v1475_v42 = vrot.slane %v1253_v36, %v13090_v53 }
 0x376   :  { %v2033_v13 = vpop.f32.mrb[28].mxu1  ;;  %v2545_v17 = vpop.f32.mrb[32].mxu0 }
 0x377   :  { %v2034_v14 = vadd.f32 %v2033_v13, %v1491_v52  ;;  %v13670_v1 = vadd.f32 %v2545_v17, %v1535_v11  ;;  %v11987_v24 = vpop.f32.mrb[29].mxu1  ;;  %v12075_v32 = vpop.f32.mrb[33].mxu0  ;;  %v2692_v11 = vpack.c.bf16 %v2684_v5, %v2684_v5 }
 0x378   :  { %v2036_v40 = vpop.f32.mrb[30].mxu1  ;;  %v2548_v46 = vpop.f32.mrb[34].mxu0  ;;  %v1349_v24 = vcombine.high %v13581_v7, %v13581_v7  ;;  %v2686_v32 = vmul.f32 0.35355338, %v1758_v10  ;;  %v1850_v7 = vadd.f32 %v13626_v62, %v1475_v42 }
 0x379   :  { %v2700_v47 = vpack.c.bf16 %v2034_v14, %v2034_v14  ;;  %v11988_v6 = vpop.f32.mrb[31].mxu1  ;;  %v12076_v43 = vpop.f32.mrb[35].mxu0  ;;  %v1507_v14 = vrot.slane %v1341_v51, %v13090_v53 }
 0x37a   :  { %v1363_v21 = vrot.slane %v1349_v24, %v12983_v16  ;;  %v1275_v6 = vrot.slane %v1261_v39, %v12983_v16  ;;  %v2688_v15 = vmul.f32 0.35355338, %v1850_v7 }
 0x37b   :  { %v2766_v35 = vsel %vm2715_vm4, %v2700_v47, 0  ;;  %v2694_v47 = vpack.c.bf16 %v2686_v32, %v2686_v32  ;;  %v1415_v32 = vcombine.high %v13641_v44, %v13641_v44 }
 0x37c   :  { %12108 = vmatpush3.bf16.xpose.msra.mxu1 %v2766_v35  ;;  %v1515_v49 = vrot.slane %v1363_v21, %v13090_v53  ;;  %v1483_v62 = vrot.slane %v1275_v6, %v13090_v53 }
 0x37d   :  { %12119 = vmatprep.subr.bf16.mxu1 %v12912_v3 }
 0x37e   :  { %v2125_v19 = vpop.f32.mrb[32].mxu1  ;;  %v2637_v27 = vpop.f32.mrb[36].mxu0 }
 0x37f   :  { %v2126_v41 = vadd.f32 %v2125_v19, %v1499_v57  ;;  %v13686_v8 = vadd.f32 %v2637_v27, %v1543_v61  ;;  %v12003_v48 = vpop.f32.mrb[33].mxu1  ;;  %v12091_v50 = vpop.f32.mrb[37].mxu0  ;;  %v1371_v61 = vcombine.high %v13598_v18, %v13598_v18 }
 0x380   :  { %v2128_v52 = vpop.f32.mrb[34].mxu1  ;;  %v2640_v0 = vpop.f32.mrb[38].mxu0  ;;  %v1942_v48 = vadd.f32 %v13648_v59, %v1483_v62 }
 0x381   :  { %v2702_v12 = vpack.c.bf16 %v2126_v41, %v2126_v41  ;;  %v12004_v38 = vpop.f32.mrb[35].mxu1  ;;  %v12092_v13 = vpop.f32.mrb[39].mxu0  ;;  %v1385_v19 = vrot.slane %v1371_v61, %v12983_v16  ;;  %v2696_v41 = vpack.c.bf16 %v2688_v15, %v2688_v15  ;;  %v1393_v0 = vcombine.high %v13619_v45, %v13619_v45 }
 0x383   :  { %v2858_v17 = vsel %vm2715_vm4, %v2702_v12, 0  ;;  %12110 = vmatmul.mubr.msk.bf16.vlgmr.msra.gmra.mrb[60].mxu1 %vm2715_vm4, %v2692_v11  ;;  %v1523_v52 = vrot.slane %v1385_v19, %v13090_v53  ;;  %v2690_v11 = vmul.f32 0.35355338, %v1942_v48  ;;  %v1407_v12 = vrot.slane %v1393_v0, %v12983_v16 }
 0x384   :  { %12120 = vmatpush3.bf16.xpose.msra.mxu1 %v2858_v17  ;;  %12121 = vmatprep.mubr.msk.bf16.mxu1 %vm12913_vm2, %v12912_v3 }
 0x385   :  { %12131 = vmatprep.subr.bf16.mxu1 %v12912_v3  ;;  %v2698_v13 = vpack.c.bf16 %v2690_v11, %v2690_v11  ;;  %v1531_v45 = vrot.slane %v1407_v12, %v13090_v53 }
 0x386   :  { %v2217_v4 = vpop.f32.mrb[36].mxu1 }
 0x387   :  { %v2218_v40 = vadd.f32 %v2217_v4, %v1507_v14  ;;  %v12019_v46 = vpop.f32.mrb[37].mxu1 }
 0x388   :  { %v2220_v22 = vpop.f32.mrb[38].mxu1 }
 0x389   :  { %v2704_v43 = vpack.c.bf16 %v2218_v40, %v2218_v40  ;;  %v12020_v35 = vpop.f32.mrb[39].mxu1  ;;  %v1429_v40 = vrot.slane %v1415_v32, %v12983_v16 }
 0x38b   :  { %v2950_v57 = vsel %vm2715_vm4, %v2704_v43, 0  ;;  %12122 = vmatmul.mubr.msk.bf16.vlgmr.msra.gmra.mrb[64].mxu1 %vm2715_vm4, %v2694_v47  ;;  %v1539_v22 = vrot.slane %v1429_v40, %v13090_v53  ;;  %v1437_v47 = vcombine.high %v13665_v63, %v13665_v63 }
 0x38c   :  { %12132 = vmatpush3.bf16.xpose.msra.mxu1 %v2950_v57  ;;  %12133 = vmatprep.mubr.msk.bf16.mxu1 %vm12913_vm2, %v12912_v3 }
 0x38d   :  { %12143 = vmatprep.subr.bf16.mxu1 %v12912_v3  ;;  %v1451_v43 = vrot.slane %v1437_v47, %v12983_v16 }
 0x38e   :  { %v2309_v5 = vpop.f32.mrb[40].mxu1 }
 0x38f   :  { %v2310_v37 = vadd.f32 %v2309_v5, %v1515_v49  ;;  %v12035_v9 = vpop.f32.mrb[41].mxu1  ;;  %v1547_v49 = vrot.slane %v1451_v43, %v13090_v53 }
 0x390   :  { %v2312_v27 = vpop.f32.mrb[42].mxu1 }
 0x391   :  { %v2706_v50 = vpack.c.bf16 %v2310_v37, %v2310_v37  ;;  %v12036_v18 = vpop.f32.mrb[43].mxu1 }
 0x393   :  { %v3042_v51 = vsel %vm2715_vm4, %v2706_v50, 0  ;;  %12134 = vmatmul.mubr.msk.bf16.vlgmr.msra.gmra.mrb[68].mxu1 %vm2715_vm4, %v2696_v41 }
 0x394   :  { %12144 = vmatpush3.bf16.xpose.msra.mxu1 %v3042_v51  ;;  %12145 = vmatprep.mubr.msk.bf16.mxu1 %vm12913_vm2, %v12912_v3 }
 0x395   :  { %12155 = vmatprep.subr.bf16.mxu1 %v12912_v3 }
 0x396   :  { %v2401_v10 = vpop.f32.mrb[44].mxu1 }
 0x397   :  { %v2402_v59 = vadd.f32 %v2401_v10, %v1523_v52  ;;  %v12051_v36 = vpop.f32.mrb[45].mxu1 }
 0x398   :  { %v2404_v38 = vpop.f32.mrb[46].mxu1 }
 0x399   :  { %v2708_v17 = vpack.c.bf16 %v2402_v59, %v2402_v59  ;;  %v12052_v14 = vpop.f32.mrb[47].mxu1 }
 0x39b   :  { %v3236_v24 = vand.u32 %v13634_v20, %v2708_v17  ;;  %12146 = vmatmul.mubr.msk.bf16.vlgmr.msra.gmra.mrb[72].mxu1 %vm2715_vm4, %v2698_v13 }
 0x39c   :  { %12157 = vmatprep.mubr.msk.bf16.mxu1 %vm12913_vm2, %v12912_v3 }
 0x39d   :  { %12156 = vmatpush3.bf16.msra.mxu1 %v3236_v24 }
 0x39e   :  { %v2493_v42 = vpop.f32.mrb[48].mxu1  ;;  %12167 = vmatprep.subr.bf16.mxu1 %v12912_v3 }
 0x39f   :  { %v13733_v39 = vadd.f32 %v2493_v42, %v1531_v45  ;;  %v12067_v4 = vpop.f32.mrb[49].mxu1 }
 0x3a0   :  { %v2496_v46 = vpop.f32.mrb[50].mxu1 }
 0x3a1   :  { %v12068_v21 = vpop.f32.mrb[51].mxu1 }
 0x3a6   :  { %v2585_v44 = vpop.f32.mrb[52].mxu1 }
 0x3a7   :  { %v13739_v7 = vadd.f32 %v2585_v44, %v1539_v22  ;;  %v12083_v6 = vpop.f32.mrb[53].mxu1 }
 0x3a8   :  { %v2588_v35 = vpop.f32.mrb[54].mxu1 }
 0x3a9   :  { %v12084_v57 = vpop.f32.mrb[55].mxu1 }
 0x3ae   :  { %v2677_v61 = vpop.f32.mrb[56].mxu1 }
 0x3af   :  { %v13743_v15 = vadd.f32 %v2677_v61, %v1547_v49  ;;  %v12099_v62 = vpop.f32.mrb[57].mxu1 }
 0x3b0   :  { %v2680_v5 = vpop.f32.mrb[58].mxu1 }
 0x3b1   :  { %v12100_v37 = vpop.f32.mrb[59].mxu1 }
 0x426   :  { %v2756_v9 = vpop.f32.mrb[40].mxu0 }
 0x427   :  { %v12105_v19 = vpop.f32.mrb[41].mxu0  ;;  %v3085_v63 = vsel %vm3084_vm7, %v2756_v9, -inf }
 0x428   :  { %v2759_v27 = vpop.f32.mrb[42].mxu0  ;;  %3086 = vmax.xlane.f32.xlu0 %v3085_v63 }
 0x429   :  { %v12106_v41 = vpop.f32.mrb[43].mxu0 }
 0x42e   :  { %v2848_v48 = vpop.f32.mrb[44].mxu0 }
 0x42f   :  { %v12117_v50 = vpop.f32.mrb[45].mxu0  ;;  %v3091_v18 = vsel %vm3084_vm7, %v2848_v48, -inf }
 0x430   :  { %3092 = vmax.xlane.f32.xlu0 %v3091_v18  ;;  %v2851_v51 = vpop.f32.mrb[46].mxu0 }
 0x431   :  { %v12118_v52 = vpop.f32.mrb[47].mxu0 }
 0x438   :  { %v2940_v0 = vpop.f32.mrb[48].mxu0 }
 0x439   :  { %v12129_v11 = vpop.f32.mrb[49].mxu0  ;;  %v3097_v10 = vsel %vm3084_vm7, %v2940_v0, -inf }
 0x43a   :  { %3098 = vmax.xlane.f32.xlu0 %v3097_v10  ;;  %v2943_v59 = vpop.f32.mrb[50].mxu0 }
 0x43b   :  { %v12130_v36 = vpop.f32.mrb[51].mxu0 }
 0x440   :  { %v3032_v12 = vpop.f32.mrb[52].mxu0 }
 0x441   :  { %v12141_v38 = vpop.f32.mrb[53].mxu0  ;;  %v3103_v13 = vsel %vm3084_vm7, %v3032_v12, -inf }
 0x442   :  { %3104 = vmax.xlane.f32.xlu0 %v3103_v13  ;;  %v3035_v17 = vpop.f32.mrb[54].mxu0 }
 0x443   :  { %v12142_v14 = vpop.f32.mrb[55].mxu0 }
 0x456   :  { %v2802_v24 = vpop.f32.mrb[60].mxu1 }
 0x457   :  { %v12111_v45 = vpop.f32.mrb[61].mxu1  ;;  %v3088_v32 = vsel %vm3084_vm7, %v2802_v24, -inf }
 0x458   :  { %3089 = vmax.xlane.f32.xlu1 %v3088_v32  ;;  %v2805_v42 = vpop.f32.mrb[62].mxu1 }
 0x459   :  { %v12112_v4 = vpop.f32.mrb[63].mxu1 }
 0x45e   :  { %v2894_v40 = vpop.f32.mrb[64].mxu1 }
 0x45f   :  { %v12123_v46 = vpop.f32.mrb[65].mxu1  ;;  %v3094_v21 = vsel %vm3084_vm7, %v2894_v40, -inf }
 0x460   :  { %3095 = vmax.xlane.f32.xlu1 %v3094_v21  ;;  %v2897_v22 = vpop.f32.mrb[66].mxu1 }
 0x461   :  { %v12124_v47 = vpop.f32.mrb[67].mxu1 }
 0x466   :  { %v2986_v44 = vpop.f32.mrb[68].mxu1 }
 0x467   :  { %v12135_v6 = vpop.f32.mrb[69].mxu1  ;;  %v3100_v43 = vsel %vm3084_vm7, %v2986_v44, -inf }
 0x468   :  { %3101 = vmax.xlane.f32.xlu1 %v3100_v43  ;;  %v2989_v35 = vpop.f32.mrb[70].mxu1 }
 0x469   :  { %v12136_v57 = vpop.f32.mrb[71].mxu1 }
 0x46e   :  { %v3078_v49 = vpop.f32.mrb[72].mxu1 }
 0x46f   :  { %v12147_v61 = vpop.f32.mrb[73].mxu1  ;;  %v3106_v62 = vsel %vm3084_vm7, %v3078_v49, -inf }
 0x470   :  { %3107 = vmax.xlane.f32.xlu1 %v3106_v62  ;;  %v3081_v5 = vpop.f32.mrb[74].mxu1 }
 0x471   :  { %v12148_v37 = vpop.f32.mrb[75].mxu1 }
 0x4b5   :  { %v3087_v19 = vpop.xlane.xlu0 %3086 }
 0x4b6   :  { %v3109_v63 = vsub.f32 %v2756_v9, %v3087_v19 }
 0x4b8   :  { %v3117_v27 = vmul.f32 1.442695, %v3109_v63 }
 0x4ba   :  { %12764 = vpow2.f32 %v3117_v27 }
 0x4bd   :  { %v3093_v41 = vpop.xlane.xlu0 %3092 }
 0x4be   :  { %v3111_v50 = vsub.f32 %v2848_v48, %v3093_v41  ;;  %v2709_v41 = vpack.c.bf16 %v13652_v30, %v13652_v30 }
 0x4c0   :  { %v3121_v18 = vmul.f32 1.442695, %v3111_v50 }
 0x4c2   :  { %12766 = vpow2.f32 %v3121_v18 }
 0x4c4   :  { %v12765_v51 = vpop.eup %12764 }
 0x4c5   :  { %v3133_v52 = vsel %vm3084_vm7, %v12765_v51, 0.0 }
 0x4c6   :  { %3134 = vadd.xlane.f32.xlu0 %v3133_v52  ;;  %v3282_v52 = vand.u32 %v13634_v20, %v2709_v41 }
 0x4c7   :  { %v3099_v11 = vpop.xlane.xlu0 %3098 }
 0x4c8   :  { %v3113_v10 = vsub.f32 %v2940_v0, %v3099_v11 }
 0x4ca   :  { %v3125_v59 = vmul.f32 1.442695, %v3113_v10 }
 0x4cc   :  { %v12767_v36 = vpop.eup %12766  ;;  %12768 = vpow2.f32 %v3125_v59  ;;  %v2711_v59 = vpack.c.bf16 %v13670_v1, %v13670_v1 }
 0x4cd   :  { %v3139_v38 = vsel %vm3084_vm7, %v12767_v36, 0.0 }
 0x4ce   :  { %3140 = vadd.xlane.f32.xlu0 %v3139_v38  ;;  %v3374_v38 = vand.u32 %v13634_v20, %v2711_v59  ;;  %v12708_v59 = vld [vmem:[%s15586_s1 + $0xd8] sm:$0xff]  }
 0x4cf   :  { %v3105_v13 = vpop.xlane.xlu0 %3104 }
 0x4d0   :  { %v3115_v9 = vsub.f32 %v3032_v12, %v3105_v13 }
 0x4d2   :  { %v3129_v17 = vmul.f32 1.442695, %v3115_v9 }
 0x4d4   :  { %12770 = vpow2.f32 %v3129_v17  ;;  %v2713_v17 = vpack.c.bf16 %v13686_v8, %v13686_v8 }
 0x4d6   :  { %v13755_v14 = vpop.eup %12768 }
 0x4d7   :  { %v3145_v48 = vsel %vm3084_vm7, %v13755_v14, 0.0 }
 0x4d8   :  { %3146 = vadd.xlane.f32.xlu0 %v3145_v48  ;;  %v3466_v48 = vand.u32 %v13634_v20, %v2713_v17  ;;  %v12709_v17 = vld [vmem:[%s15586_s1 + $0xe0] sm:$0xff]  }
 0x4de   :  { %v13759_v45 = vpop.eup %12770 }
 0x4df   :  { %v3151_v0 = vsel %vm3084_vm7, %v13759_v45, 0.0 }
 0x4e0   :  { %3152 = vadd.xlane.f32.xlu0 %v3151_v0 }
 0x4e5   :  { %v3090_v32 = vpop.xlane.xlu1 %3089 }
 0x4e6   :  { %v3110_v42 = vsub.f32 %v2802_v24, %v3090_v32  ;;  %v12705_v32 = vld [vmem:[%s15586_s1 + $0xc0] sm:$0xff]  }
 0x4e8   :  { %v3119_v4 = vmul.f32 1.442695, %v3110_v42 }
 0x4ea   :  { %12772 = vpow2.f32 %v3119_v4  ;;  %v12706_v4 = vld [vmem:[%s15586_s1 + $0xc8] sm:$0xff]  }
 0x4ed   :  { %v3096_v46 = vpop.xlane.xlu1 %3095 }
 0x4ee   :  { %v3112_v12 = vsub.f32 %v2894_v40, %v3096_v46 }
 0x4f0   :  { %v3123_v21 = vmul.f32 1.442695, %v3112_v12  ;;  %v3596_v12 = vsel %vm2715_vm4, %v12706_v4, 0 }
 0x4f2   :  { %12774 = vpow2.f32 %v3123_v21 }
 0x4f4   :  { %v13763_v22 = vpop.eup %12772 }
 0x4f5   :  { %v3102_v47 = vpop.xlane.xlu1 %3101  ;;  %v3136_v6 = vsel %vm3084_vm7, %v13763_v22, 0.0 }
 0x4f6   :  { %v3114_v43 = vsub.f32 %v2986_v44, %v3102_v47  ;;  %3137 = vadd.xlane.f32.xlu1 %v3136_v6  ;;  %v2710_v47 = vpack.c.bf16 %v13733_v39, %v13733_v39 }
 0x4f8   :  { %v3127_v35 = vmul.f32 1.442695, %v3114_v43 }
 0x4fa   :  { %12776 = vpow2.f32 %v3127_v35  ;;  %v3328_v35 = vand.u32 %v13634_v20, %v2710_v47 }
 0x4fc   :  { %v13767_v57 = vpop.eup %12774 }
 0x4fd   :  { %v3108_v61 = vpop.xlane.xlu1 %3107  ;;  %v3142_v24 = vsel %vm3084_vm7, %v13767_v57, 0.0 }
 0x4fe   :  { %v3116_v62 = vsub.f32 %v3078_v49, %v3108_v61  ;;  %3143 = vadd.xlane.f32.xlu1 %v3142_v24 }
 0x500   :  { %v3131_v40 = vmul.f32 1.442695, %v3116_v62  ;;  %v2712_v62 = vpack.c.bf16 %v13739_v7, %v13739_v7 }
 0x502   :  { %12778 = vpow2.f32 %v3131_v40  ;;  %v3420_v40 = vand.u32 %v13634_v20, %v2712_v62 }
 0x504   :  { %v13771_v5 = vpop.eup %12776 }
 0x505   :  { %v3148_v37 = vsel %vm3084_vm7, %v13771_v5, 0.0 }
 0x506   :  { %3149 = vadd.xlane.f32.xlu1 %v3148_v37 }
 0x50c   :  { %v13775_v44 = vpop.eup %12778 }
 0x50d   :  { %v3154_v19 = vsel %vm3084_vm7, %v13775_v44, 0.0 }
 0x50e   :  { %3155 = vadd.xlane.f32.xlu1 %v3154_v19 }
 0x553   :  { %v3135_v63 = vpop.xlane.xlu0 %3134 }
 0x554   :  { %12780 = vrcp.f32 %v3135_v63  ;;  %v2714_v63 = vpack.c.bf16 %v13743_v15, %v13743_v15  ;;  %v12707_v15 = vld [vmem:[%s15586_s1 + $0xd0] sm:$0xff]  }
 0x55b   :  { %v3141_v27 = vpop.xlane.xlu0 %3140 }
 0x55c   :  { %12782 = vrcp.f32 %v3141_v27  ;;  %v3512_v27 = vand.u32 %v13634_v20, %v2714_v63 }
 0x55e   :  { %v12781_v49 = vpop.eup %12780 }
 0x55f   :  { %v3158_v50 = vmul.f32 %v12781_v49, %v12765_v51 }
 0x561   :  { %v3173_v18 = vpack.c.bf16 %v3158_v50, %v3158_v50 }
 0x563   :  { %12152 = vmatmul.mubr.msk.bf16.vlgmr.msra.gmra.mrb[56].mxu0 %vm3181_vm8, %v3173_v18 }
 0x564   :  { %12162 = vmatpush3.bf16.msra.mxu0 %v3282_v52  ;;  %12163 = vmatprep.mubr.msk.bf16.mxu0 %vm12913_vm2, %v12912_v3 }
 0x565   :  { %v3147_v11 = vpop.xlane.xlu0 %3146  ;;  %12173 = vmatprep.subr.bf16.mxu0 %v12912_v3 }
 0x566   :  { %v12783_v10 = vpop.eup %12782  ;;  %12784 = vrcp.f32 %v3147_v11 }
 0x567   :  { %v3162_v30 = vmul.f32 %v12783_v10, %v12767_v36 }
 0x569   :  { %v3175_v51 = vpack.c.bf16 %v3162_v30, %v3162_v30 }
 0x56b   :  { %12164 = vmatmul.mubr.msk.bf16.vlgmr.msra.gmra.mrb[60].mxu0 %vm3181_vm8, %v3175_v51 }
 0x56c   :  { %12174 = vmatpush3.bf16.msra.mxu0 %v3374_v38  ;;  %12175 = vmatprep.mubr.msk.bf16.mxu0 %vm12913_vm2, %v12912_v3  ;;  %v3698_v38 = vsel %vm2715_vm4, %v12708_v59, 0 }
 0x56d   :  { %v3153_v13 = vpop.xlane.xlu0 %3152  ;;  %12185 = vmatprep.subr.bf16.mxu0 %v12912_v3 }
 0x56e   :  { %12786 = vrcp.f32 %v3153_v13 }
 0x570   :  { %v12785_v9 = vpop.eup %12784 }
 0x571   :  { %v3166_v1 = vmul.f32 %v12785_v9, %v13755_v14  ;;  %v3593_v14 = vsel %vm2715_vm4, %v12705_v32, 0 }
 0x573   :  { %v3177_v36 = vpack.c.bf16 %v3166_v1, %v3166_v1 }
 0x575   :  { %12176 = vmatmul.mubr.msk.bf16.vlgmr.msra.gmra.mrb[64].mxu0 %vm3181_vm8, %v3177_v36  ;;  %v3797_v36 = vsel %vm2715_vm4, %v12709_v17, 0 }
 0x576   :  { %12186 = vmatpush3.bf16.msra.mxu0 %v3466_v48  ;;  %12187 = vmatprep.mubr.msk.bf16.mxu0 %vm12913_vm2, %v12912_v3 }
 0x577   :  { %12197 = vmatprep.subr.bf16.mxu0 %v12912_v3 }
 0x578   :  { %v12787_v0 = vpop.eup %12786 }
 0x579   :  { %v3170_v8 = vmul.f32 %v12787_v0, %v13759_v45 }
 0x57b   :  { %v3179_v42 = vpack.c.bf16 %v3170_v8, %v3170_v8 }
 0x57d   :  { %12188 = vmatmul.mubr.msk.bf16.vlgmr.msra.gmra.mrb[68].mxu0 %vm3181_vm8, %v3179_v42  ;;  %v12710_v42 = vld [vmem:[%s15586_s1 + $0xe8] sm:$0xff]  }
 0x57e   :  { %12201 = vmatprep.mubr.msk.bf16.mxu0 %vm12913_vm2, %v12912_v3 }
 0x57f   :  { %12198 = vmatpush3.bf16.xpose.msra.mxu0 %v3593_v14 }
 0x580   :  { %12199 = vmatprep.subr.bf16.mxu0 %v12912_v3 }
 0x583   :  { %v3138_v46 = vpop.xlane.xlu1 %3137 }
 0x584   :  { %12788 = vrcp.f32 %v3138_v46 }
 0x587   :  { %12200 = vmatpush3.bf16.xpose.msra.mxu0 %v3596_v12 }
 0x588   :  { %12213 = vmatprep.subr.bf16.mxu0 %v12912_v3 }
 0x58b   :  { %v3144_v45 = vpop.xlane.xlu1 %3143 }
 0x58c   :  { %12790 = vrcp.f32 %v3144_v45 }
 0x58e   :  { %v12789_v21 = vpop.eup %12788 }
 0x58f   :  { %v3160_v6 = vmul.f32 %v12789_v21, %v13763_v22  ;;  %v12711_v21 = vld [vmem:[%s15586_s1 + $0xf0] sm:$0xff]  }
 0x591   :  { %v3174_v43 = vpack.c.bf16 %v3160_v6, %v3160_v6  ;;  %v3899_v6 = vsel %vm2715_vm4, %v12711_v21, 0 }
 0x593   :  { %12158 = vmatmul.mubr.msk.bf16.vlgmr.msra.gmra.mrb[76].mxu1 %vm3181_vm8, %v3174_v43  ;;  %v3150_v61 = vpop.xlane.xlu1 %3149  ;;  %v12712_v43 = vld [vmem:[%s15586_s1 + $0xf8] sm:$0xff]  }
 0x594   :  { %12168 = vmatpush3.bf16.msra.mxu1 %v3328_v35  ;;  %12792 = vrcp.f32 %v3150_v61  ;;  %12169 = vmatprep.mubr.msk.bf16.mxu1 %vm12913_vm2, %v12912_v3  ;;  %v3902_v35 = vsel %vm2715_vm4, %v12712_v43, 0 }
 0x595   :  { %12179 = vmatprep.subr.bf16.mxu1 %v12912_v3 }
 0x596   :  { %v12791_v24 = vpop.eup %12790 }
 0x597   :  { %v3164_v39 = vmul.f32 %v12791_v24, %v13767_v57 }
 0x599   :  { %v3176_v22 = vpack.c.bf16 %v3164_v39, %v3164_v39 }
 0x59b   :  { %12170 = vmatmul.mubr.msk.bf16.vlgmr.msra.gmra.mrb[80].mxu1 %vm3181_vm8, %v3176_v22  ;;  %v3156_v37 = vpop.xlane.xlu1 %3155 }
 0x59c   :  { %12180 = vmatpush3.bf16.msra.mxu1 %v3420_v40  ;;  %12794 = vrcp.f32 %v3156_v37  ;;  %12181 = vmatprep.mubr.msk.bf16.mxu1 %vm12913_vm2, %v12912_v3 }
 0x59d   :  { %12191 = vmatprep.subr.bf16.mxu1 %v12912_v3 }
 0x59e   :  { %v12793_v19 = vpop.eup %12792 }
 0x59f   :  { %v3168_v7 = vmul.f32 %v12793_v19, %v13771_v5 }
 0x5a1   :  { %v3178_v57 = vpack.c.bf16 %v3168_v7, %v3168_v7 }
 0x5a3   :  { %12182 = vmatmul.mubr.msk.bf16.vlgmr.msra.gmra.mrb[84].mxu1 %vm3181_vm8, %v3178_v57 }
 0x5a4   :  { %12192 = vmatpush3.bf16.msra.mxu1 %v3512_v27  ;;  %12193 = vmatprep.mubr.msk.bf16.mxu1 %vm12913_vm2, %v12912_v3 }
 0x5a5   :  { %12205 = vmatprep.subr.bf16.mxu1 %v12912_v3 }
 0x5a6   :  { %v12795_v49 = vpop.eup %12794 }
 0x5a7   :  { %v3172_v41 = vmul.f32 %v12795_v49, %v13775_v44  ;;  %v3695_v44 = vsel %vm2715_vm4, %v12707_v15, 0 }
 0x5a9   :  { %v3180_v50 = vpack.c.bf16 %v3172_v41, %v3172_v41 }
 0x5ab   :  { %12194 = vmatmul.mubr.msk.bf16.vlgmr.msra.gmra.mrb[88].mxu1 %vm3181_vm8, %v3180_v50 }
 0x5ac   :  { %12209 = vmatprep.mubr.msk.bf16.mxu1 %vm12913_vm2, %v12912_v3 }
 0x5ad   :  { %12206 = vmatpush3.bf16.xpose.msra.mxu1 %v3593_v14  ;;  %v3800_v14 = vsel %vm2715_vm4, %v12710_v42, 0 }
 0x5ae   :  { %12207 = vmatprep.subr.bf16.mxu1 %v12912_v3 }
 0x5b5   :  { %12208 = vmatpush3.bf16.xpose.msra.mxu1 %v3596_v12 }
 0x5b6   :  { %12221 = vmatprep.subr.bf16.mxu1 %v12912_v3 }
 0x636   :  { %v3226_v5 = vpop.f32.mrb[56].mxu0 }
 0x637   :  { %v3571_v18 = vpack.c.bf16 %v3226_v5, %v3226_v5  ;;  %v12153_v52 = vpop.f32.mrb[57].mxu0 }
 0x638   :  { %v3229_v11 = vpop.f32.mrb[58].mxu0 }
 0x639   :  { %v12154_v10 = vpop.f32.mrb[59].mxu0  ;;  %12202 = vmatmul.mubr.msk.bf16.vlgmr.msra.gmra.mrb[72].mxu0 %vm2715_vm4, %v3571_v18 }
 0x63a   :  { %12214 = vmatpush3.bf16.xpose.msra.mxu0 %v3695_v44  ;;  %12217 = vmatprep.mubr.msk.bf16.mxu0 %vm12913_vm2, %v12912_v3 }
 0x63b   :  { %12215 = vmatprep.subr.bf16.mxu0 %v12912_v3 }
 0x63e   :  { %v3318_v30 = vpop.f32.mrb[60].mxu0 }
 0x63f   :  { %v12165_v51 = vpop.f32.mrb[61].mxu0  ;;  %v3573_v1 = vpack.c.bf16 %v3318_v30, %v3318_v30 }
 0x640   :  { %v3321_v13 = vpop.f32.mrb[62].mxu0 }
 0x641   :  { %v12166_v9 = vpop.f32.mrb[63].mxu0 }
 0x642   :  { %12216 = vmatpush3.bf16.xpose.msra.mxu0 %v3698_v38 }
 0x643   :  { %12229 = vmatprep.subr.bf16.mxu0 %v12912_v3 }
 0x648   :  { %v3410_v48 = vpop.f32.mrb[64].mxu0 }
 0x649   :  { %12218 = vmatmul.mubr.msk.bf16.vlgmr.msra.gmra.mrb[76].mxu0 %vm2715_vm4, %v3573_v1  ;;  %v12177_v0 = vpop.f32.mrb[65].mxu0  ;;  %v3575_v47 = vpack.c.bf16 %v3410_v48, %v3410_v48 }
 0x64a   :  { %12230 = vmatpush3.bf16.xpose.msra.mxu0 %v3797_v36  ;;  %v3413_v32 = vpop.f32.mrb[66].mxu0  ;;  %12233 = vmatprep.mubr.msk.bf16.mxu0 %vm12913_vm2, %v12912_v3 }
 0x64b   :  { %v12178_v8 = vpop.f32.mrb[67].mxu0  ;;  %12231 = vmatprep.subr.bf16.mxu0 %v12912_v3 }
 0x650   :  { %v3502_v4 = vpop.f32.mrb[68].mxu0 }
 0x651   :  { %v12189_v46 = vpop.f32.mrb[69].mxu0  ;;  %v3577_v24 = vpack.c.bf16 %v3502_v4, %v3502_v4 }
 0x652   :  { %12232 = vmatpush3.bf16.xpose.msra.mxu0 %v3800_v14  ;;  %v3505_v12 = vpop.f32.mrb[70].mxu0 }
 0x653   :  { %v12190_v45 = vpop.f32.mrb[71].mxu0  ;;  %12245 = vmatprep.subr.bf16.mxu0 %v12912_v3 }
 0x659   :  { %12234 = vmatmul.mubr.msk.bf16.vlgmr.msra.gmra.mrb[80].mxu0 %vm2715_vm4, %v3575_v47 }
 0x65a   :  { %12246 = vmatpush3.bf16.xpose.msra.mxu0 %v3899_v6  ;;  %12249 = vmatprep.mubr.msk.bf16.mxu0 %vm12913_vm2, %v12912_v3 }
 0x65b   :  { %12247 = vmatprep.subr.bf16.mxu0 %v12912_v3 }
 0x662   :  { %12248 = vmatpush3.bf16.xpose.msra.mxu0 %v3902_v35 }
 0x663   :  { %12261 = vmatprep.subr.bf16.mxu0 %v12912_v3 }
 0x666   :  { %v3272_v61 = vpop.f32.mrb[76].mxu1 }
 0x667   :  { %v3572_v62 = vpack.c.bf16 %v3272_v61, %v3272_v61  ;;  %v12159_v39 = vpop.f32.mrb[77].mxu1 }
 0x668   :  { %v3275_v22 = vpop.f32.mrb[78].mxu1 }
 0x669   :  { %12250 = vmatmul.mubr.msk.bf16.vlgmr.msra.gmra.mrb[84].mxu0 %vm2715_vm4, %v3577_v24  ;;  %v12160_v40 = vpop.f32.mrb[79].mxu1  ;;  %12210 = vmatmul.mubr.msk.bf16.vlgmr.msra.gmra.mrb[92].mxu1 %vm2715_vm4, %v3572_v62 }
 0x66a   :  { %12222 = vmatpush3.bf16.xpose.msra.mxu1 %v3695_v44  ;;  %12225 = vmatprep.mubr.msk.bf16.mxu1 %vm12913_vm2, %v12912_v3 }
 0x66b   :  { %12223 = vmatprep.subr.bf16.mxu1 %v12912_v3  ;;  %12265 = vmatprep.mubr.msk.bf16.mxu0 %vm12913_vm2, %v12912_v3 }
 0x66e   :  { %v3364_v37 = vpop.f32.mrb[80].mxu1 }
 0x66f   :  { %v12171_v19 = vpop.f32.mrb[81].mxu1  ;;  %v3574_v27 = vpack.c.bf16 %v3364_v37, %v3364_v37 }
 0x670   :  { %v3367_v63 = vpop.f32.mrb[82].mxu1 }
 0x671   :  { %v12172_v7 = vpop.f32.mrb[83].mxu1 }
 0x672   :  { %12224 = vmatpush3.bf16.xpose.msra.mxu1 %v3698_v38 }
 0x673   :  { %12237 = vmatprep.subr.bf16.mxu1 %v12912_v3 }
 0x676   :  { %v3456_v57 = vpop.f32.mrb[84].mxu1 }
 0x677   :  { %v12183_v49 = vpop.f32.mrb[85].mxu1  ;;  %v3576_v44 = vpack.c.bf16 %v3456_v57, %v3456_v57 }
 0x678   :  { %v3459_v41 = vpop.f32.mrb[86].mxu1 }
 0x679   :  { %12226 = vmatmul.mubr.msk.bf16.vlgmr.msra.gmra.mrb[96].mxu1 %vm2715_vm4, %v3574_v27  ;;  %v12184_v50 = vpop.f32.mrb[87].mxu1 }
 0x67a   :  { %12238 = vmatpush3.bf16.xpose.msra.mxu1 %v3797_v36  ;;  %12241 = vmatprep.mubr.msk.bf16.mxu1 %vm12913_vm2, %v12912_v3 }
 0x67b   :  { %12239 = vmatprep.subr.bf16.mxu1 %v12912_v3 }
 0x67e   :  { %v3548_v15 = vpop.f32.mrb[88].mxu1 }
 0x67f   :  { %v12195_v5 = vpop.f32.mrb[89].mxu1  ;;  %v3578_v11 = vpack.c.bf16 %v3548_v15, %v3548_v15 }
 0x680   :  { %v3551_v18 = vpop.f32.mrb[90].mxu1 }
 0x681   :  { %v12196_v52 = vpop.f32.mrb[91].mxu1 }
 0x682   :  { %12240 = vmatpush3.bf16.xpose.msra.mxu1 %v3800_v14  ;;  %v11419_v14 = vld [vmem:[%s15589_s4 + $0x9] ss:$0 sm:$0xff] }
 0x683   :  { %12253 = vmatprep.subr.bf16.mxu1 %v12912_v3 }
 0x689   :  { %12242 = vmatmul.mubr.msk.bf16.vlgmr.msra.gmra.mrb[100].mxu1 %vm2715_vm4, %v3576_v44 }
 0x68a   :  { %12254 = vmatpush3.bf16.xpose.msra.mxu1 %v3899_v6  ;;  %12257 = vmatprep.mubr.msk.bf16.mxu1 %vm12913_vm2, %v12912_v3 }
 0x68b   :  { %12255 = vmatprep.subr.bf16.mxu1 %v12912_v3 }
 0x692   :  { %12256 = vmatpush3.bf16.xpose.msra.mxu1 %v3902_v35 }
 0x693   :  { %12269 = vmatprep.subr.bf16.mxu1 %v12912_v3 }
 0x699   :  { %12258 = vmatmul.mubr.msk.bf16.vlgmr.msra.gmra.mrb[104].mxu1 %vm2715_vm4, %v3578_v11 }
 0x69a   :  { %12277 = vmatprep.mubr.msk.bf16.mxu1 %vm12913_vm2, %v12912_v3 }
 0x70c   :  { %v3632_v10 = vpop.f32.mrb[72].mxu0 }
 0x70d   :  { %v12203_v59 = vpop.f32.mrb[73].mxu0 }
 0x70e   :  { %v3635_v30 = vpop.f32.mrb[74].mxu0 }
 0x70f   :  { %v12204_v51 = vpop.f32.mrb[75].mxu0 }
 0x71c   :  { %v3734_v38 = vpop.f32.mrb[76].mxu0 }
 0x71d   :  { %v3987_v13 = vadd.f32 %v3734_v38, %v3632_v10  ;;  %v12219_v9 = vpop.f32.mrb[77].mxu0 }
 0x71e   :  { %v3737_v17 = vpop.f32.mrb[78].mxu0 }
 0x71f   :  { %v12220_v1 = vpop.f32.mrb[79].mxu0 }
 0x72c   :  { %v3836_v36 = vpop.f32.mrb[80].mxu0 }
 0x72d   :  { %v3989_v48 = vadd.f32 %v3987_v13, %v3836_v36  ;;  %v12235_v0 = vpop.f32.mrb[81].mxu0 }
 0x72e   :  { %v3839_v32 = vpop.f32.mrb[82].mxu0 }
 0x72f   :  { %v12236_v8 = vpop.f32.mrb[83].mxu0 }
 0x73c   :  { %v3938_v42 = vpop.f32.mrb[84].mxu0  ;;  %v3675_v4 = vpop.f32.mrb[92].mxu1 }
 0x73d   :  { %v3991_v46 = vadd.f32 %v3989_v48, %v3938_v42  ;;  %v12251_v12 = vpop.f32.mrb[85].mxu0  ;;  %v12211_v45 = vpop.f32.mrb[93].mxu1 }
 0x73e   :  { %v3941_v21 = vpop.f32.mrb[86].mxu0  ;;  %v3678_v47 = vpop.f32.mrb[94].mxu1 }
 0x73f   :  { %v3998_v6 = vadd.f32 %v11419_v14, %v3991_v46  ;;  %v12252_v43 = vpop.f32.mrb[87].mxu0  ;;  %v12212_v35 = vpop.f32.mrb[95].mxu1 }
 0x741   :  { %v4002_v61 = vcombine.high %v3998_v6, %v3998_v6  ;;  %v4009_v24 = vrot.slane %v3998_v6, %v12983_v16 }
 0x743   :  { %v4016_v62 = vrot.slane %v4002_v61, %v12983_v16  ;;  %v4017_v39 = vcombine.high %v4009_v24, %v4009_v24  ;;  %v4024_v22 = vrot.slane %v4009_v24, %v12983_v16 }
 0x745   :  { %v4031_v40 = vrot.slane %v4016_v62, %v12983_v16  ;;  %v4038_v37 = vrot.slane %v4017_v39, %v12983_v16  ;;  %v4039_v19 = vcombine.high %v4024_v22, %v4024_v22  ;;  %v13914_v7 = vadd.f32 %v4024_v22, %v13042_v23 }
 0x747   :  { %v4040_v63 = vcombine.high %v4038_v37, %v4038_v37  ;;  %v13917_v57 = vadd.f32 %v4038_v37, %v13048_v26  ;;  %v13920_v27 = vadd.f32 %v4039_v19, %v13106_v60  ;;  %v13926_v41 = vadd.f32 %v4031_v40, %v13045_v25 }
 0x749   :  { %v13923_v49 = vadd.f32 %v4040_v63, %v13114_v2  ;;  %v4112_v50 = vcombine.low %v13914_v7, %v13917_v57  ;;  %v4134_v2 = vrot.slane %v13926_v41, %v12983_v16 }
 0x74b   :  { %v4113_v15 = vcombine.low %v13920_v27, %v13923_v49  ;;  %v4120_v26 = vrot.slane %v4112_v50, %v12983_v16  ;;  %v4149_v10 = vrot.slane %v4134_v2, %v12983_v16 }
 0x74c   :  { %v3777_v23 = vpop.f32.mrb[96].mxu1 }
 0x74d   :  { %v3988_v5 = vadd.f32 %v3777_v23, %v3675_v4  ;;  %v12227_v18 = vpop.f32.mrb[97].mxu1  ;;  %v4127_v60 = vrot.slane %v4113_v15, %v12983_v16 }
 0x74e   :  { %v3780_v52 = vpop.f32.mrb[98].mxu1 }
 0x74f   :  { %v12228_v44 = vpop.f32.mrb[99].mxu1  ;;  %v4135_v25 = vcombine.low %v4120_v26, %v4127_v60 }
 0x751   :  { %v4142_v11 = vrot.slane %v4135_v25, %v12983_v16 }
 0x753   :  { %v4150_v59 = vcombine.low %v4142_v11, %v4149_v10 }
 0x755   :  { %v4192_v30 = vsel %vm559_vm1, %v4150_v59, 0.0 }
 0x756   :  { %4193 = vadd.xlane.f32.xlu0 %v4192_v30 }
 0x75c   :  { %v3879_v51 = vpop.f32.mrb[100].mxu1 }
 0x75d   :  { %v3990_v38 = vadd.f32 %v3988_v5, %v3879_v51  ;;  %v12243_v13 = vpop.f32.mrb[101].mxu1 }
 0x75e   :  { %v3882_v9 = vpop.f32.mrb[102].mxu1 }
 0x75f   :  { %v12244_v17 = vpop.f32.mrb[103].mxu1 }
 0x76c   :  { %v3981_v1 = vpop.f32.mrb[104].mxu1 }
 0x76d   :  { %v3992_v36 = vadd.f32 %v3990_v38, %v3981_v1  ;;  %v12259_v48 = vpop.f32.mrb[105].mxu1 }
 0x76e   :  { %v3984_v0 = vpop.f32.mrb[106].mxu1 }
 0x76f   :  { %v3999_v32 = vadd.f32 %v11419_v14, %v3992_v36  ;;  %v12260_v8 = vpop.f32.mrb[107].mxu1 }
 0x771   :  { %v4041_v42 = vcombine.high %v3999_v32, %v3999_v32  ;;  %v4048_v4 = vrot.slane %v3999_v32, %v12983_v16 }
 0x773   :  { %v4055_v46 = vrot.slane %v4041_v42, %v12983_v16  ;;  %v4056_v12 = vcombine.high %v4048_v4, %v4048_v4  ;;  %v4063_v45 = vrot.slane %v4048_v4, %v12983_v16 }
 0x775   :  { %v4070_v21 = vrot.slane %v4055_v46, %v12983_v16  ;;  %v4077_v47 = vrot.slane %v4056_v12, %v12983_v16  ;;  %v4078_v6 = vcombine.high %v4063_v45, %v4063_v45  ;;  %v13945_v35 = vadd.f32 %v4063_v45, %v13051_v28 }
 0x777   :  { %v4079_v43 = vcombine.high %v4077_v47, %v4077_v47  ;;  %v13948_v14 = vadd.f32 %v4077_v47, %v13055_v29  ;;  %v13951_v61 = vadd.f32 %v4078_v6, %v13066_v33  ;;  %v13957_v62 = vadd.f32 %v4070_v21, %v13069_v34 }
 0x779   :  { %v13954_v24 = vadd.f32 %v4079_v43, %v13060_v31  ;;  %v4151_v39 = vcombine.low %v13945_v35, %v13948_v14  ;;  %v4173_v33 = vrot.slane %v13957_v62, %v12983_v16 }
 0x77b   :  { %v4152_v22 = vcombine.low %v13951_v61, %v13954_v24  ;;  %v4159_v28 = vrot.slane %v4151_v39, %v12983_v16  ;;  %v4188_v37 = vrot.slane %v4173_v33, %v12983_v16 }
 0x77d   :  { %v4166_v29 = vrot.slane %v4152_v22, %v12983_v16 }
 0x77f   :  { %v4174_v40 = vcombine.low %v4159_v28, %v4166_v29 }
 0x781   :  { %v4181_v31 = vrot.slane %v4174_v40, %v12983_v16 }
 0x783   :  { %v4189_v34 = vcombine.low %v4181_v31, %v4188_v37 }
 0x785   :  { %v4195_v19 = vsel %vm559_vm1, %v4189_v34, 0.0 }
 0x786   :  { %4196 = vadd.xlane.f32.xlu1 %v4195_v19 }
 0x7e3   :  { %v4194_v63 = vpop.xlane.xlu0 %4193 }
 0x7e4   :  { %v4198_v50 = vmul.f32 0.03125, %v4194_v63 }
 0x7e6   :  { %v4205_v15 = vrot.slane %v4198_v50, %v13090_v53  ;;  %v4209_v23 = vrot.slane %v4198_v50, %v13093_v54  ;;  %v4213_v5 = vrot.slane %v4198_v50, %v13096_v55  ;;  %v4217_v18 = vrot.slane %v4198_v50, %v13099_v56 }
 0x7e7   :  { %v4221_v26 = vrot.slane %v4198_v50, %v13102_v58 }
 0x7e8   :  { %v13976_v60 = vsub.f32 %v13914_v7, %v4205_v15  ;;  %v13979_v2 = vsub.f32 %v13917_v57, %v4209_v23  ;;  %v13982_v52 = vsub.f32 %v13920_v27, %v4213_v5  ;;  %v13985_v44 = vsub.f32 %v13923_v49, %v4217_v18 }
 0x7e9   :  { %v13988_v25 = vsub.f32 %v13926_v41, %v4221_v26 }
 0x7ea   :  { %v4262_v11 = vmul.f32 %v13976_v60, %v13976_v60  ;;  %v4263_v10 = vmul.f32 %v13979_v2, %v13979_v2  ;;  %v4264_v59 = vmul.f32 %v13982_v52, %v13982_v52  ;;  %v4265_v30 = vmul.f32 %v13985_v44, %v13985_v44 }
 0x7eb   :  { %v4266_v51 = vmul.f32 %v13988_v25, %v13988_v25 }
 0x7ec   :  { %v4282_v38 = vcombine.low %v4262_v11, %v4263_v10  ;;  %v4283_v13 = vcombine.low %v4264_v59, %v4265_v30  ;;  %v12713_v10 = vld [vmem:[%s15587_s2] sm:$0xff]   ;;  %v12714_v59 = vld [vmem:[%s15587_s2 + $0x8] sm:$0xff]  }
 0x7ed   :  { %v4304_v1 = vrot.slane %v4266_v51, %v12983_v16  ;;  %12262 = vmatpush3.bf16.msra.mxu0 %v12713_v10 }
 0x7ee   :  { %v4290_v9 = vrot.slane %v4282_v38, %v12983_v16  ;;  %v4297_v17 = vrot.slane %v4283_v13, %v12983_v16  ;;  %12263 = vmatprep.subr.bf16.mxu0 %v12912_v3  ;;  %v11420_v13 = vld [vmem:[%s15589_s4 + $0x7] ss:$0 sm:$0xff] }
 0x7ef   :  { %v4319_v0 = vrot.slane %v4304_v1, %v12983_v16 }
 0x7f0   :  { %v4305_v36 = vcombine.low %v4290_v9, %v4297_v17  ;;  %v4448_v9 = vrot.slane %v11420_v13, %v12983_v16  ;;  %v11421_v17 = vld [vmem:[%s15589_s4 + $0x8] ss:$0 sm:$0xff] }
 0x7f1   :  { %12264 = vmatpush3.bf16.msra.mxu0 %v12714_v59 }
 0x7f2   :  { %v4312_v48 = vrot.slane %v4305_v36, %v12983_v16  ;;  %12281 = vmatprep.subr.bf16.mxu0 %v12912_v3  ;;  %v4456_v1 = vcombine.high %v4448_v9, %v4448_v9 }
 0x7f4   :  { %v4320_v32 = vcombine.low %v4312_v48, %v4319_v0  ;;  %v4507_v48 = vrot.slane %v11421_v17, %v12983_v16 }
 0x7f6   :  { %v4362_v8 = vsel %vm559_vm1, %v4320_v32, 0.0  ;;  %v4463_v32 = vrot.slane %v4448_v9, %v12983_v16 }
 0x7f7   :  { %4363 = vadd.xlane.f32.xlu0 %v4362_v8  ;;  %v4477_v8 = vrot.slane %v4456_v1, %v12983_v16 }
 0x813   :  { %v4197_v42 = vpop.xlane.xlu1 %4196 }
 0x814   :  { %v4199_v4 = vmul.f32 0.03125, %v4197_v42 }
 0x816   :  { %v4225_v46 = vrot.slane %v4199_v4, %v13090_v53  ;;  %v4229_v12 = vrot.slane %v4199_v4, %v13093_v54  ;;  %v4233_v45 = vrot.slane %v4199_v4, %v13096_v55  ;;  %v4237_v21 = vrot.slane %v4199_v4, %v13099_v56 }
 0x817   :  { %v4241_v47 = vrot.slane %v4199_v4, %v13102_v58 }
 0x818   :  { %v14012_v6 = vsub.f32 %v13945_v35, %v4225_v46  ;;  %v14015_v43 = vsub.f32 %v13948_v14, %v4229_v12  ;;  %v14018_v39 = vsub.f32 %v13951_v61, %v4233_v45  ;;  %v14021_v22 = vsub.f32 %v13954_v24, %v4237_v21 }
 0x819   :  { %v14024_v28 = vsub.f32 %v13957_v62, %v4241_v47  ;;  %v4515_v12 = vcombine.high %v4507_v48, %v4507_v48  ;;  %v4478_v21 = vcombine.high %v4463_v32, %v4463_v32  ;;  %v4479_v47 = vcombine.high %v4477_v8, %v4477_v8 }
 0x81a   :  { %v4267_v29 = vmul.f32 %v14012_v6, %v14012_v6  ;;  %v4268_v33 = vmul.f32 %v14015_v43, %v14015_v43  ;;  %v4269_v40 = vmul.f32 %v14018_v39, %v14018_v39  ;;  %v4270_v31 = vmul.f32 %v14021_v22, %v14021_v22 }
 0x81b   :  { %v4271_v37 = vmul.f32 %v14024_v28, %v14024_v28 }
 0x81c   :  { %v4321_v34 = vcombine.low %v4267_v29, %v4268_v33  ;;  %v4322_v19 = vcombine.low %v4269_v40, %v4270_v31  ;;  %v4522_v29 = vrot.slane %v4507_v48, %v12983_v16 }
 0x81d   :  { %v4343_v15 = vrot.slane %v4271_v37, %v12983_v16  ;;  %v4536_v37 = vrot.slane %v4515_v12, %v12983_v16 }
 0x81e   :  { %v4329_v63 = vrot.slane %v4321_v34, %v12983_v16  ;;  %v4336_v50 = vrot.slane %v4322_v19, %v12983_v16  ;;  %v4441_v34 = vcombine.high %v11420_v13, %v11420_v13 }
 0x81f   :  { %v4358_v18 = vrot.slane %v4343_v15, %v12983_v16 }
 0x820   :  { %v4344_v23 = vcombine.low %v4329_v63, %v4336_v50  ;;  %v4537_v63 = vcombine.high %v4522_v29, %v4522_v29 }
 0x822   :  { %v4351_v5 = vrot.slane %v4344_v23, %v12983_v16 }
 0x824   :  { %v4359_v26 = vcombine.low %v4351_v5, %v4358_v18  ;;  %v4538_v5 = vcombine.high %v4536_v37, %v4536_v37  ;;  %v4455_v18 = vrot.slane %v4441_v34, %v12983_v16 }
 0x826   :  { %v4365_v11 = vsel %vm559_vm1, %v4359_v26, 0.0  ;;  %v4500_v26 = vcombine.high %v11421_v17, %v11421_v17 }
 0x827   :  { %4366 = vadd.xlane.f32.xlu1 %v4365_v11 }
 0x828   :  { %v4514_v13 = vrot.slane %v4500_v26, %v12983_v16 }
 0x82a   :  { %v4529_v48 = vrot.slane %v4514_v13, %v12983_v16 }
 0x884   :  { %v4364_v30 = vpop.xlane.xlu0 %4363 }
 0x885   :  { %v4368_v51 = vmul.f32 0.03125, %v4364_v30 }
 0x887   :  { %v4370_v38 = vadd.f32 1e-12, %v4368_v51 }
 0x889   :  { %12796 = vrsqrt.f32 %v4370_v38  ;;  %v4470_v38 = vrot.slane %v4455_v18, %v12983_v16 }
 0x893   :  { %v12797_v36 = vpop.eup %12796 }
 0x894   :  { %v4379_v0 = vrot.slane %v12797_v36, %v13090_v53  ;;  %v4383_v42 = vrot.slane %v12797_v36, %v13093_v54  ;;  %v4387_v4 = vrot.slane %v12797_v36, %v13096_v55  ;;  %v4391_v46 = vrot.slane %v12797_v36, %v13099_v56 }
 0x896   :  { %v4426_v45 = vmul.f32 %v4379_v0, %v13976_v60  ;;  %v4427_v33 = vmul.f32 %v4383_v42, %v13979_v2  ;;  %v4428_v40 = vmul.f32 %v4387_v4, %v13982_v52  ;;  %v4429_v31 = vmul.f32 %v4391_v46, %v13985_v44 }
 0x897   :  { %v4395_v60 = vrot.slane %v12797_v36, %v13102_v58 }
 0x898   :  { %v4485_v19 = vmul.f32 %v4463_v32, %v4426_v45  ;;  %v4486_v50 = vmul.f32 %v4477_v8, %v4427_v33  ;;  %v4487_v15 = vmul.f32 %v4478_v21, %v4428_v40  ;;  %v4488_v23 = vmul.f32 %v4479_v47, %v4429_v31 }
 0x899   :  { %v4430_v51 = vmul.f32 %v4395_v60, %v13988_v25 }
 0x89a   :  { %v4544_v2 = vadd.f32 %v4522_v29, %v4485_v19  ;;  %v4545_v52 = vadd.f32 %v4536_v37, %v4486_v50  ;;  %v4546_v59 = vadd.f32 %v4537_v63, %v4487_v15  ;;  %v4547_v44 = vadd.f32 %v4538_v5, %v4488_v23 }
 0x89b   :  { %v4489_v36 = vmul.f32 %v4470_v38, %v4430_v51 }
 0x89c   :  { %v4564_v9 = vcombine.low %v4544_v2, %v4545_v52  ;;  %v4565_v1 = vcombine.low %v4546_v59, %v4547_v44 }
 0x89d   :  { %v4548_v42 = vadd.f32 %v4529_v48, %v4489_v36 }
 0x89e   :  { %v4572_v17 = vrot.slane %v4564_v9, %v12983_v16  ;;  %v4579_v0 = vrot.slane %v4565_v1, %v12983_v16 }
 0x89f   :  { %v4586_v12 = vrot.slane %v4548_v42, %v12983_v16 }
 0x8a0   :  { %v4587_v4 = vcombine.low %v4572_v17, %v4579_v0 }
 0x8a1   :  { %v4601_v18 = vrot.slane %v4586_v12, %v12983_v16 }
 0x8a2   :  { %v4594_v34 = vrot.slane %v4587_v4, %v12983_v16 }
 0x8a4   :  { %v4602_v59 = vcombine.low %v4594_v34, %v4601_v18 }
 0x8b4   :  { %v4367_v11 = vpop.xlane.xlu1 %4366 }
 0x8b5   :  { %v4369_v10 = vmul.f32 0.03125, %v4367_v11 }
 0x8b7   :  { %v4371_v30 = vadd.f32 1e-12, %v4369_v10 }
 0x8b9   :  { %12798 = vrsqrt.f32 %v4371_v30 }
 0x8c3   :  { %v12799_v46 = vpop.eup %12798 }
 0x8c4   :  { %v4399_v25 = vrot.slane %v12799_v46, %v13090_v53  ;;  %v4403_v45 = vrot.slane %v12799_v46, %v13093_v54  ;;  %v4407_v33 = vrot.slane %v12799_v46, %v13096_v55  ;;  %v4411_v40 = vrot.slane %v12799_v46, %v13099_v56 }
 0x8c5   :  { %v4415_v31 = vrot.slane %v12799_v46, %v13102_v58 }
 0x8c6   :  { %v4431_v19 = vmul.f32 %v4399_v25, %v14012_v6  ;;  %v4432_v50 = vmul.f32 %v4403_v45, %v14015_v43  ;;  %v4433_v15 = vmul.f32 %v4407_v33, %v14018_v39  ;;  %v4434_v23 = vmul.f32 %v4411_v40, %v14021_v22 }
 0x8c7   :  { %v4435_v60 = vmul.f32 %v4415_v31, %v14024_v28  ;;  %v4644_v39 = vpack.c.bf16 %v4602_v59, %v4602_v59 }
 0x8c8   :  { %v4490_v26 = vmul.f32 %v4463_v32, %v4431_v19  ;;  %v4491_v11 = vmul.f32 %v4477_v8, %v4432_v50  ;;  %v4492_v2 = vmul.f32 %v4478_v21, %v4433_v15  ;;  %v4493_v10 = vmul.f32 %v4479_v47, %v4434_v23 }
 0x8c9   :  { %v4494_v52 = vmul.f32 %v4470_v38, %v4435_v60  ;;  %v4672_v8 = vrot.slane %v4644_v39, %v12983_v16 }
 0x8ca   :  { %v4549_v44 = vadd.f32 %v4522_v29, %v4490_v26  ;;  %v4550_v30 = vadd.f32 %v4536_v37, %v4491_v11  ;;  %v4551_v51 = vadd.f32 %v4537_v63, %v4492_v2  ;;  %v4552_v6 = vadd.f32 %v4538_v5, %v4493_v10  ;;  %v12715_v26 = vld [vmem:[%s15587_s2 + $0x20] sm:$0xff]   ;;  %v12716_v11 = vld [vmem:[%s15587_s2 + $0x28] sm:$0xff]   ;;  %v12717_v2 = vld [vmem:[%s15587_s2 + $0x30] sm:$0xff]  }
 0x8cb   :  { %v4553_v13 = vadd.f32 %v4529_v48, %v4494_v52  ;;  %v4673_v37 = vcombine.high %v4672_v8, %v4672_v8  ;;  %v4680_v5 = vrot.slane %v4672_v8, %v12983_v16  ;;  %12270 = vmatpush3.bf16.msra.mxu1 %v12715_v26  ;;  %v12718_v10 = vld [vmem:[%s15587_s2 + $0x38] sm:$0xff]   ;;  %v11430_v52 = vld [vmem:[%s15589_s4 + $0xb] ss:$0 sm:$0xff] }
 0x8cc   :  { %v4603_v43 = vcombine.low %v4549_v44, %v4550_v30  ;;  %v4604_v9 = vcombine.low %v4551_v51, %v4552_v6  ;;  %12271 = vmatprep.subr.bf16.mxu1 %v12912_v3  ;;  %v4723_v59 = vcombine.high %v11430_v52, %v11430_v52  ;;  %v4730_v44 = vrot.slane %v11430_v52, %v12983_v16 }
 0x8cd   :  { %v4625_v1 = vrot.slane %v4553_v13, %v12983_v16  ;;  %v4687_v36 = vrot.slane %v4673_v37, %v12983_v16  ;;  %v4688_v0 = vcombine.high %v4680_v5, %v4680_v5 }
 0x8ce   :  { %v4611_v22 = vrot.slane %v4603_v43, %v12983_v16  ;;  %v4618_v28 = vrot.slane %v4604_v9, %v12983_v16  ;;  %v4737_v30 = vrot.slane %v4723_v59, %v12983_v16  ;;  %v4738_v51 = vcombine.high %v4730_v44, %v4730_v44 }
 0x8cf   :  { %v4640_v47 = vrot.slane %v4625_v1, %v12983_v16  ;;  %v4767_v46 = vcombine.low %v4680_v5, %v4687_v36  ;;  %12272 = vmatpush3.bf16.msra.mxu1 %v12716_v11  ;;  %v4745_v6 = vrot.slane %v4730_v44, %v12983_v16 }
 0x8d0   :  { %v4626_v32 = vcombine.low %v4611_v22, %v4618_v28  ;;  %12273 = vmatprep.subr.bf16.mxu1 %v12912_v3  ;;  %v4752_v13 = vrot.slane %v4737_v30, %v12983_v16  ;;  %v4759_v43 = vrot.slane %v4738_v51, %v12983_v16 }
 0x8d1   :  { %v4775_v34 = vrot.slane %v4767_v46, %v12983_v16  ;;  %v4760_v9 = vcombine.high %v4745_v6, %v4745_v6 }
 0x8d2   :  { %v4633_v21 = vrot.slane %v4626_v32, %v12983_v16  ;;  %v4818_v39 = vcombine.low %v4745_v6, %v4759_v43  ;;  %v11436_v22 = vcombine.high %v4745_v6, %v4759_v43  ;;  %v4820_v28 = vcombine.low %v4752_v13, %v4745_v6 }
 0x8d3   :  { %12274 = vmatpush3.bf16.msra.mxu1 %v12717_v2  ;;  %v4821_v1 = vcombine.low %v4759_v43, %v4760_v9 }
 0x8d4   :  { %v4641_v29 = vcombine.low %v4633_v21, %v4640_v47  ;;  %12275 = vmatprep.subr.bf16.mxu1 %v12912_v3  ;;  %v4828_v32 = vrot.slane %v4818_v39, %v12983_v16  ;;  %v4835_v8 = vrot.slane %v11436_v22, %v12983_v16  ;;  %v4842_v21 = vrot.slane %v4820_v28, %v12983_v16 }
 0x8d5   :  { %v4849_v47 = vrot.slane %v4821_v1, %v12983_v16 }
 0x8d6   :  { %v4645_v63 = vpack.c.bf16 %v4641_v29, %v4641_v29  ;;  %v4761_v29 = vcombine.high %v4759_v43, %v4759_v43  ;;  %v4850_v37 = vcombine.low %v4828_v32, %v4835_v8 }
 0x8d7   :  { %12276 = vmatpush3.bf16.msra.mxu1 %v12718_v10 }
 0x8d8   :  { %v4695_v38 = vrot.slane %v4645_v63, %v12983_v16  ;;  %12297 = vmatprep.subr.bf16.mxu1 %v12912_v3  ;;  %v4851_v63 = vcombine.low %v4842_v21, %v4849_v47  ;;  %v4867_v5 = vcombine.low %v4761_v29, %v4752_v13 }
 0x8da   :  { %v4696_v48 = vcombine.high %v4695_v38, %v4695_v38  ;;  %v4703_v17 = vrot.slane %v4695_v38, %v12983_v16  ;;  %v4858_v38 = vrot.slane %v4850_v37, %v12983_v16  ;;  %v4865_v36 = vrot.slane %v4851_v63, %v12983_v16 }
 0x8dc   :  { %v4710_v42 = vrot.slane %v4696_v48, %v12983_v16  ;;  %v4718_v4 = vunpack.i.h.s16 %v4703_v17  ;;  %v4711_v12 = vcombine.high %v4703_v17, %v4703_v17  ;;  %v11431_v45 = vpack.i.b16 %v4703_v17, %v4688_v0 }
 0x8dd   :  { %v4874_v48 = vrot.slane %v4867_v5, %v12983_v16  ;;  %v4866_v17 = vcombine.low %v4858_v38, %v4865_v36 }
 0x8de   :  { %v4720_v25 = vunpack.i.h.s16 %v4710_v42  ;;  %v11432_v33 = vpack.i.b16 %v4710_v42, %v4718_v4 }
 0x8df   :  { %v4881_v0 = vrot.slane %v4874_v48, %v12983_v16 }
 0x8e0   :  { %v11433_v40 = vpack.i.b16 %v4711_v12, %v4720_v25  ;;  %v4768_v31 = vcombine.low %v11431_v45, %v11432_v33 }
 0x8e2   :  { %v4782_v19 = vrot.slane %v4768_v31, %v12983_v16  ;;  %v4789_v50 = vrot.slane %v11433_v40, %v12983_v16 }
 0x8e4   :  { %v4790_v15 = vcombine.low %v4775_v34, %v4782_v19  ;;  %v4804_v60 = vrot.slane %v4789_v50, %v12983_v16 }
 0x8e6   :  { %v4797_v23 = vrot.slane %v4790_v15, %v12983_v16 }
 0x8e8   :  { %v4805_v18 = vcombine.low %v4797_v23, %v4804_v60 }
 0x8ea   :  { %12266 = vmatmul.mubr.msk.bf16.vlgmr.msra.gmra.mrb[88].mxu0 %vm1584_vm3, %v4805_v18 }
 0x8eb   :  { %12285 = vmatprep.mubr.msk.bf16.mxu0 %vm12913_vm2, %v12912_v3 }
 0x9bd   :  { %v4921_v42 = vpop.f32.mrb[88].mxu0 }
 0x9be   :  { %v4922_v4 = vadd.f32 %v4921_v42, %v4866_v17  ;;  %v12267_v46 = vpop.f32.mrb[89].mxu0 }
 0x9bf   :  { %v4924_v12 = vpop.f32.mrb[90].mxu0 }
 0x9c0   :  { %v4930_v25 = vcombine.high %v4922_v4, %v4922_v4  ;;  %v4937_v45 = vrot.slane %v4922_v4, %v12983_v16  ;;  %v4925_v33 = vadd.f32 %v4924_v12, %v4881_v0  ;;  %v12268_v40 = vpop.f32.mrb[91].mxu0 }
 0x9c2   :  { %v4944_v31 = vrot.slane %v4930_v25, %v12983_v16  ;;  %v4945_v34 = vcombine.high %v4937_v45, %v4937_v45  ;;  %v14145_v19 = vrot.slane %v4937_v45, %v12983_v16  ;;  %v4985_v50 = vrot.slane %v4925_v33, %v12983_v16 }
 0x9c4   :  { %v4946_v15 = vcombine.high %v4944_v31, %v4944_v31  ;;  %v14149_v23 = vrot.slane %v4944_v31, %v12983_v16  ;;  %v14152_v60 = vrot.slane %v4945_v34, %v12983_v16  ;;  %v14156_v18 = vcombine.high %v14145_v19, %v14145_v19 }
 0x9c5   :  { %v5011_v26 = vmul.f32 %v14145_v19, %v14145_v19  ;;  %v4986_v11 = vcombine.high %v4985_v50, %v4985_v50  ;;  %v14161_v2 = vrot.slane %v4985_v50, %v12983_v16 }
 0x9c6   :  { %v14164_v10 = vrot.slane %v4946_v15, %v12983_v16  ;;  %v14168_v52 = vcombine.high %v14149_v23, %v14149_v23  ;;  %v14172_v59 = vcombine.high %v14152_v60, %v14152_v60  ;;  %v5012_v44 = vmul.f32 %v14152_v60, %v14152_v60 }
 0x9c7   :  { %v5013_v30 = vmul.f32 %v14156_v18, %v14156_v18  ;;  %v5015_v51 = vmul.f32 %v14149_v23, %v14149_v23  ;;  %v5021_v6 = vmul.f32 %v5011_v26, %v14145_v19  ;;  %v14182_v13 = vrot.slane %v4986_v11, %v12983_v16 }
 0x9c8   :  { %v14186_v43 = vcombine.high %v14164_v10, %v14164_v10  ;;  %v5014_v9 = vmul.f32 %v14172_v59, %v14172_v59  ;;  %v5016_v39 = vmul.f32 %v14164_v10, %v14164_v10  ;;  %v5017_v22 = vmul.f32 %v14168_v52, %v14168_v52 }
 0x9c9   :  { %v5022_v28 = vmul.f32 %v5012_v44, %v14152_v60  ;;  %v5023_v1 = vmul.f32 %v5013_v30, %v14156_v18  ;;  %v5025_v32 = vmul.f32 %v5015_v51, %v14149_v23  ;;  %v5031_v8 = vmul.f32 0.044715, %v5021_v6 }
 0x9ca   :  { %v5024_v21 = vmul.f32 %v5014_v9, %v14172_v59  ;;  %v5026_v47 = vmul.f32 %v5016_v39, %v14164_v10  ;;  %v5027_v29 = vmul.f32 %v5017_v22, %v14168_v52  ;;  %v5018_v37 = vmul.f32 %v14186_v43, %v14186_v43 }
 0x9cb   :  { %v5032_v63 = vmul.f32 0.044715, %v5022_v28  ;;  %v5033_v5 = vmul.f32 0.044715, %v5023_v1  ;;  %v5035_v38 = vmul.f32 0.044715, %v5025_v32  ;;  %v5041_v36 = vadd.f32 %v5031_v8, %v14145_v19 }
 0x9cc   :  { %v5034_v48 = vmul.f32 0.044715, %v5024_v21  ;;  %v5036_v17 = vmul.f32 0.044715, %v5026_v47  ;;  %v5037_v0 = vmul.f32 0.044715, %v5027_v29  ;;  %v5019_v42 = vmul.f32 %v14161_v2, %v14161_v2 }
 0x9cd   :  { %v5042_v4 = vadd.f32 %v5032_v63, %v14152_v60  ;;  %v5043_v46 = vadd.f32 %v5033_v5, %v14156_v18  ;;  %v5045_v12 = vadd.f32 %v5035_v38, %v14149_v23  ;;  %v5051_v25 = vmul.f32 0.7978846, %v5041_v36 }
 0x9ce   :  { %v5044_v45 = vadd.f32 %v5034_v48, %v14172_v59  ;;  %v5046_v33 = vadd.f32 %v5036_v17, %v14164_v10  ;;  %v5047_v40 = vadd.f32 %v5037_v0, %v14168_v52  ;;  %v5020_v31 = vmul.f32 %v14182_v13, %v14182_v13 }
 0x9cf   :  { %v5052_v34 = vmul.f32 0.7978846, %v5042_v4  ;;  %v5053_v50 = vmul.f32 0.7978846, %v5043_v46  ;;  %12800 = vtanh.f32 %v5051_v25  ;;  %v5055_v26 = vmul.f32 0.7978846, %v5045_v12 }
 0x9d0   :  { %v5054_v15 = vmul.f32 0.7978846, %v5044_v45  ;;  %v5028_v11 = vmul.f32 %v5018_v37, %v14186_v43  ;;  %v5056_v44 = vmul.f32 0.7978846, %v5046_v33  ;;  %v5029_v30 = vmul.f32 %v5019_v42, %v14161_v2 }
 0x9d1   :  { %12802 = vtanh.f32 %v5052_v34  ;;  %v5030_v51 = vmul.f32 %v5020_v31, %v14182_v13  ;;  %v5057_v6 = vmul.f32 0.7978846, %v5047_v40 }
 0x9d2   :  { %12804 = vtanh.f32 %v5053_v50  ;;  %v5038_v9 = vmul.f32 0.044715, %v5028_v11  ;;  %v5039_v39 = vmul.f32 0.044715, %v5029_v30 }
 0x9d3   :  { %12806 = vtanh.f32 %v5054_v15  ;;  %v5040_v22 = vmul.f32 0.044715, %v5030_v51 }
 0x9d4   :  { %12808 = vtanh.f32 %v5055_v26  ;;  %v5048_v28 = vadd.f32 %v5038_v9, %v14186_v43  ;;  %v5049_v1 = vadd.f32 %v5039_v39, %v14161_v2 }
 0x9d5   :  { %12810 = vtanh.f32 %v5056_v44  ;;  %v5050_v32 = vadd.f32 %v5040_v22, %v14182_v13 }
 0x9d6   :  { %12812 = vtanh.f32 %v5057_v6  ;;  %v5058_v8 = vmul.f32 0.7978846, %v5048_v28  ;;  %v5059_v21 = vmul.f32 0.7978846, %v5049_v1 }
 0x9d7   :  { %v5060_v47 = vmul.f32 0.7978846, %v5050_v32 }
 0x9d8   :  { %12814 = vtanh.f32 %v5058_v8 }
 0x9d9   :  { %v12801_v29 = vpop.eup %12800  ;;  %12816 = vtanh.f32 %v5059_v21 }
 0x9da   :  { %v5071_v37 = vadd.f32 1.0, %v12801_v29  ;;  %12818 = vtanh.f32 %v5060_v47 }
 0x9db   :  { %v12803_v63 = vpop.eup %12802 }
 0x9dc   :  { %v12805_v5 = vpop.eup %12804  ;;  %v5072_v38 = vadd.f32 1.0, %v12803_v63  ;;  %v5081_v36 = vmul.f32 0.5, %v5071_v37 }
 0x9dd   :  { %v12807_v48 = vpop.eup %12806  ;;  %v5073_v17 = vadd.f32 1.0, %v12805_v5 }
 0x9de   :  { %v12809_v0 = vpop.eup %12808  ;;  %v5074_v42 = vadd.f32 1.0, %v12807_v48  ;;  %v5082_v4 = vmul.f32 0.5, %v5072_v38  ;;  %v5091_v31 = vmul.f32 %v5081_v36, %v14145_v19 }
 0x9df   :  { %v12811_v46 = vpop.eup %12810  ;;  %v5075_v12 = vadd.f32 1.0, %v12809_v0  ;;  %v5083_v25 = vmul.f32 0.5, %v5073_v17 }
 0x9e0   :  { %v12813_v45 = vpop.eup %12812  ;;  %v5076_v33 = vadd.f32 1.0, %v12811_v46  ;;  %v5084_v40 = vmul.f32 0.5, %v5074_v42  ;;  %v5092_v34 = vmul.f32 %v5082_v4, %v14152_v60 }
 0x9e1   :  { %v5085_v50 = vmul.f32 0.5, %v5075_v12  ;;  %v5077_v15 = vadd.f32 1.0, %v12813_v45  ;;  %v5093_v44 = vmul.f32 %v5083_v25, %v14156_v18 }
 0x9e2   :  { %v12815_v26 = vpop.eup %12814  ;;  %v5086_v11 = vmul.f32 0.5, %v5076_v33  ;;  %v5094_v30 = vmul.f32 %v5084_v40, %v14172_v59  ;;  %v5111_v51 = vcombine.low %v5091_v31, %v5092_v34 }
 0x9e3   :  { %v12817_v6 = vpop.eup %12816  ;;  %v5095_v9 = vmul.f32 %v5085_v50, %v14149_v23  ;;  %v5078_v39 = vadd.f32 1.0, %v12815_v26  ;;  %v5087_v22 = vmul.f32 0.5, %v5077_v15 }
 0x9e4   :  { %v12819_v28 = vpop.eup %12818  ;;  %v5096_v1 = vmul.f32 %v5086_v11, %v14164_v10  ;;  %v5112_v19 = vcombine.low %v5093_v44, %v5094_v30  ;;  %v5079_v32 = vadd.f32 1.0, %v12817_v6  ;;  %v5119_v47 = vrot.slane %v5111_v51, %v12983_v16 }
 0x9e5   :  { %v5080_v60 = vadd.f32 1.0, %v12819_v28  ;;  %v5088_v8 = vmul.f32 0.5, %v5078_v39  ;;  %v5097_v21 = vmul.f32 %v5087_v22, %v14168_v52  ;;  %v5133_v59 = vrot.slane %v5095_v9, %v12983_v16 }
 0x9e6   :  { %v5126_v18 = vrot.slane %v5112_v19, %v12983_v16  ;;  %v5089_v29 = vmul.f32 0.5, %v5079_v32 }
 0x9e7   :  { %v5090_v37 = vmul.f32 0.5, %v5080_v60  ;;  %v5098_v23 = vmul.f32 %v5088_v8, %v14186_v43  ;;  %v5150_v10 = vcombine.low %v5096_v1, %v5097_v21  ;;  %v5148_v52 = vrot.slane %v5133_v59, %v12983_v16 }
 0x9e8   :  { %v5134_v63 = vcombine.low %v5119_v47, %v5126_v18  ;;  %v5099_v5 = vmul.f32 %v5089_v29, %v14161_v2  ;;  %v11438_v18 = vld [vmem:[%s15589_s4 + $0xa] ss:$0 sm:$0xff] }
 0x9e9   :  { %v5100_v38 = vmul.f32 %v5090_v37, %v14182_v13  ;;  %v5158_v0 = vrot.slane %v5150_v10, %v12983_v16  ;;  %v5257_v59 = vcombine.high %v11438_v18, %v11438_v18  ;;  %v5264_v29 = vrot.slane %v11438_v18, %v12983_v16 }
 0x9ea   :  { %v5141_v36 = vrot.slane %v5134_v63, %v12983_v16  ;;  %v5151_v48 = vcombine.low %v5098_v23, %v5099_v5 }
 0x9eb   :  { %v5172_v4 = vrot.slane %v5100_v38, %v12983_v16  ;;  %v5271_v37 = vrot.slane %v5257_v59, %v12983_v16  ;;  %v5272_v23 = vcombine.high %v5264_v29, %v5264_v29  ;;  %v5279_v63 = vrot.slane %v5264_v29, %v12983_v16 }
 0x9ec   :  { %v5149_v17 = vcombine.low %v5141_v36, %v5148_v52  ;;  %v5165_v42 = vrot.slane %v5151_v48, %v12983_v16 }
 0x9ed   :  { %v5187_v2 = vrot.slane %v5172_v4, %v12983_v16  ;;  %v5286_v5 = vrot.slane %v5271_v37, %v12983_v16  ;;  %v5293_v10 = vrot.slane %v5272_v23, %v12983_v16  ;;  %v5294_v38 = vcombine.high %v5279_v63, %v5279_v63 }
 0x9ee   :  { %v5191_v46 = vpack.c.bf16 %v5149_v17, %v5149_v17  ;;  %v5173_v43 = vcombine.low %v5158_v0, %v5165_v42 }
 0x9ef   :  { %v5364_v36 = vcombine.low %v5279_v63, %v5293_v10  ;;  %v11446_v52 = vcombine.high %v5279_v63, %v5293_v10  ;;  %v5366_v48 = vcombine.low %v5286_v5, %v5279_v63  ;;  %v5367_v17 = vcombine.low %v5293_v10, %v5294_v38 }
 0x9f0   :  { %v5180_v12 = vrot.slane %v5173_v43, %v12983_v16  ;;  %v5206_v13 = vrot.slane %v5191_v46, %v12983_v16  ;;  %v5295_v43 = vcombine.high %v5293_v10, %v5293_v10 }
 0x9f1   :  { %v5374_v0 = vrot.slane %v5364_v36, %v12983_v16  ;;  %v5381_v42 = vrot.slane %v11446_v52, %v12983_v16  ;;  %v5388_v4 = vrot.slane %v5366_v48, %v12983_v16  ;;  %v5395_v46 = vrot.slane %v5367_v17, %v12983_v16 }
 0x9f2   :  { %v5188_v25 = vcombine.low %v5180_v12, %v5187_v2  ;;  %v5214_v45 = vrot.slane %v5206_v13, %v12983_v16  ;;  %v5207_v40 = vcombine.high %v5206_v13, %v5206_v13  ;;  %v5413_v13 = vcombine.low %v5295_v43, %v5286_v5 }
 0x9f3   :  { %v5396_v12 = vcombine.low %v5374_v0, %v5381_v42  ;;  %v5397_v2 = vcombine.low %v5388_v4, %v5395_v46 }
 0x9f4   :  { %v5192_v33 = vpack.c.bf16 %v5188_v25, %v5188_v25  ;;  %v5222_v34 = vcombine.high %v5214_v45, %v5214_v45  ;;  %v5221_v50 = vrot.slane %v5207_v40, %v12983_v16 }
 0x9f5   :  { %v5404_v25 = vrot.slane %v5396_v12, %v12983_v16 }
 0x9f6   :  { %v5229_v31 = vrot.slane %v5192_v33, %v12983_v16  ;;  %v5301_v39 = vcombine.low %v5214_v45, %v5221_v50  ;;  %v5411_v45 = vrot.slane %v5397_v2, %v12983_v16  ;;  %v5420_v33 = vrot.slane %v5413_v13, %v12983_v16 }
 0x9f8   :  { %v5230_v15 = vcombine.high %v5229_v31, %v5229_v31  ;;  %v5237_v26 = vrot.slane %v5229_v31, %v12983_v16  ;;  %v5309_v1 = vrot.slane %v5301_v39, %v12983_v16  ;;  %v5412_v40 = vcombine.low %v5404_v25, %v5411_v45 }
 0x9f9   :  { %v5427_v31 = vrot.slane %v5420_v33, %v12983_v16 }
 0x9fa   :  { %v5244_v11 = vrot.slane %v5230_v15, %v12983_v16  ;;  %v5252_v44 = vunpack.i.h.s16 %v5237_v26  ;;  %v11439_v30 = vpack.i.b16 %v5237_v26, %v5222_v34  ;;  %v5245_v51 = vcombine.high %v5237_v26, %v5237_v26 }
 0x9fc   :  { %v5254_v6 = vunpack.i.h.s16 %v5244_v11  ;;  %v11440_v9 = vpack.i.b16 %v5244_v11, %v5252_v44 }
 0x9fe   :  { %v11441_v22 = vpack.i.b16 %v5245_v51, %v5254_v6  ;;  %v5302_v28 = vcombine.low %v11439_v30, %v11440_v9 }
 0xa00   :  { %v5316_v19 = vrot.slane %v5302_v28, %v12983_v16  ;;  %v5323_v32 = vrot.slane %v11441_v22, %v12983_v16 }
 0xa02   :  { %v5324_v60 = vcombine.low %v5309_v1, %v5316_v19  ;;  %v5338_v21 = vrot.slane %v5323_v32, %v12983_v16 }
 0xa04   :  { %v5331_v8 = vrot.slane %v5324_v60, %v12983_v16 }
 0xa06   :  { %v5339_v47 = vcombine.low %v5331_v8, %v5338_v21 }
 0xa08   :  { %12278 = vmatmul.mubr.msk.bf16.vlgmr.msra.gmra.mrb[108].mxu1 %vm349_vm0, %v5339_v47 }
 0xa09   :  { %12301 = vmatprep.mubr.msk.bf16.mxu1 %vm12913_vm2, %v12912_v3 }
 0xadb   :  { %v5467_v34 = vpop.f32.mrb[108].mxu1 }
 0xadc   :  { %v5468_v50 = vadd.f32 %v5467_v34, %v5412_v40  ;;  %v12279_v15 = vpop.f32.mrb[109].mxu1 }
 0xadd   :  { %v5470_v26 = vpop.f32.mrb[110].mxu1 }
 0xade   :  { %v5476_v11 = vcombine.high %v5468_v50, %v5468_v50  ;;  %v5483_v44 = vrot.slane %v5468_v50, %v12983_v16  ;;  %v5471_v30 = vadd.f32 %v5470_v26, %v5427_v31  ;;  %v12280_v51 = vpop.f32.mrb[111].mxu1 }
 0xae0   :  { %v5490_v6 = vrot.slane %v5476_v11, %v12983_v16  ;;  %v5491_v9 = vcombine.high %v5483_v44, %v5483_v44  ;;  %v5499_v39 = vrot.slane %v5483_v44, %v12983_v16  ;;  %v5531_v22 = vrot.slane %v5471_v30, %v12983_v16 }
 0xae2   :  { %v5492_v28 = vcombine.high %v5490_v6, %v5490_v6  ;;  %v5506_v1 = vrot.slane %v5490_v6, %v12983_v16  ;;  %v5513_v19 = vrot.slane %v5491_v9, %v12983_v16  ;;  %v5521_v32 = vcombine.high %v5499_v39, %v5499_v39 }
 0xae3   :  { %v5532_v60 = vcombine.high %v5531_v22, %v5531_v22  ;;  %v5539_v8 = vrot.slane %v5531_v22, %v12983_v16  ;;  %v14281_v29 = vadd.f32 %v5499_v39, %v13914_v7 }
 0xae4   :  { %v5520_v21 = vrot.slane %v5492_v28, %v12983_v16  ;;  %v5522_v47 = vcombine.high %v5506_v1, %v5506_v1  ;;  %v5523_v18 = vcombine.high %v5513_v19, %v5513_v19  ;;  %v14278_v59 = vadd.f32 %v5513_v19, %v13917_v57 }
 0xae5   :  { %v14284_v37 = vadd.f32 %v5521_v32, %v13920_v27  ;;  %v14287_v23 = vadd.f32 %v5506_v1, %v13926_v41  ;;  %v5546_v63 = vrot.slane %v5532_v60, %v12983_v16  ;;  %v14300_v7 = vadd.f32 %v5539_v8, %v13954_v24 }
 0xae6   :  { %v5524_v5 = vcombine.high %v5520_v21, %v5520_v21  ;;  %v14291_v10 = vadd.f32 %v5523_v18, %v13923_v49  ;;  %v14294_v38 = vadd.f32 %v5520_v21, %v13945_v35  ;;  %v14297_v57 = vadd.f32 %v5522_v47, %v13948_v14 }
 0xae7   :  { %v5579_v27 = vcombine.low %v14281_v29, %v14278_v59  ;;  %v14308_v36 = vadd.f32 %v5546_v63, %v13957_v62  ;;  %v5601_v52 = vrot.slane %v14287_v23, %v12983_v16 }
 0xae8   :  { %v14305_v41 = vadd.f32 %v5524_v5, %v13951_v61  ;;  %v5580_v49 = vcombine.low %v14284_v37, %v14291_v10  ;;  %v5618_v35 = vcombine.low %v14294_v38, %v14297_v57 }
 0xae9   :  { %v5587_v14 = vrot.slane %v5579_v27, %v12983_v16  ;;  %v5640_v0 = vrot.slane %v14308_v36, %v12983_v16  ;;  %v5616_v4 = vrot.slane %v5601_v52, %v12983_v16 }
 0xaea   :  { %v5594_v24 = vrot.slane %v5580_v49, %v12983_v16  ;;  %v5619_v61 = vcombine.low %v14305_v41, %v14300_v7  ;;  %v5626_v62 = vrot.slane %v5618_v35, %v12983_v16 }
 0xaeb   :  { %v5655_v2 = vrot.slane %v5640_v0, %v12983_v16 }
 0xaec   :  { %v5602_v48 = vcombine.low %v5587_v14, %v5594_v24  ;;  %v5633_v17 = vrot.slane %v5619_v61, %v12983_v16 }
 0xaee   :  { %v5609_v42 = vrot.slane %v5602_v48, %v12983_v16  ;;  %v5641_v46 = vcombine.low %v5626_v62, %v5633_v17 }
 0xaf0   :  { %v5617_v43 = vcombine.low %v5609_v42, %v5616_v4  ;;  %v5648_v12 = vrot.slane %v5641_v46, %v12983_v16 }
 0xaf2   :  { %v5659_v13 = vsel %vm559_vm1, %v5617_v43, 0.0  ;;  %v5656_v25 = vcombine.low %v5648_v12, %v5655_v2 }
 0xaf3   :  { %5660 = vadd.xlane.f32.xlu0 %v5659_v13 }
 0xaf4   :  { %v5662_v45 = vsel %vm559_vm1, %v5656_v25, 0.0 }
 0xaf5   :  { %5663 = vadd.xlane.f32.xlu1 %v5662_v45 }
 0xb80   :  { %v5661_v33 = vpop.xlane.xlu0 %5660 }
 0xb81   :  { %v5665_v40 = vmul.f32 0.03125, %v5661_v33 }
 0xb82   :  { %v5664_v31 = vpop.xlane.xlu1 %5663 }
 0xb83   :  { %v5672_v34 = vrot.slane %v5665_v40, %v13090_v53  ;;  %v5676_v50 = vrot.slane %v5665_v40, %v13093_v54  ;;  %v5680_v15 = vrot.slane %v5665_v40, %v13096_v55  ;;  %v5684_v26 = vrot.slane %v5665_v40, %v13099_v56 }
 0xb84   :  { %v5666_v11 = vmul.f32 0.03125, %v5664_v31  ;;  %v5688_v44 = vrot.slane %v5665_v40, %v13102_v58 }
 0xb85   :  { %v14336_v30 = vsub.f32 %v14281_v29, %v5672_v34  ;;  %v14339_v51 = vsub.f32 %v14278_v59, %v5676_v50  ;;  %v14342_v6 = vsub.f32 %v14284_v37, %v5680_v15  ;;  %v14345_v9 = vsub.f32 %v14291_v10, %v5684_v26 }
 0xb86   :  { %v5692_v39 = vrot.slane %v5666_v11, %v13090_v53  ;;  %v5696_v22 = vrot.slane %v5666_v11, %v13093_v54  ;;  %v5700_v28 = vrot.slane %v5666_v11, %v13096_v55  ;;  %v5704_v1 = vrot.slane %v5666_v11, %v13099_v56 }
 0xb87   :  { %v14352_v19 = vsub.f32 %v14287_v23, %v5688_v44  ;;  %v5729_v32 = vmul.f32 %v14336_v30, %v14336_v30  ;;  %v5730_v60 = vmul.f32 %v14339_v51, %v14339_v51  ;;  %v5731_v8 = vmul.f32 %v14342_v6, %v14342_v6  ;;  %v14405_v44 = vld [vmem:[%s15586_s1 + $0x100] sm:$0xff]  }
 0xb88   :  { %v5732_v21 = vmul.f32 %v14345_v9, %v14345_v9  ;;  %v5708_v47 = vrot.slane %v5666_v11, %v13102_v58  ;;  %v14364_v18 = vsub.f32 %v14294_v38, %v5692_v39  ;;  %v14367_v63 = vsub.f32 %v14297_v57, %v5696_v22  ;;  %v14410_v39 = vld [vmem:[%s15586_s1 + $0x110] sm:$0xff]   ;;  %12282 = vmatpush3.bf16.msra.mxu0 %v14405_v44  ;;  %v14417_v22 = vld [vmem:[%s15586_s1 + $0x108] sm:$0xff]  }
 0xb89   :  { %v5733_v5 = vmul.f32 %v14352_v19, %v14352_v19  ;;  %v5749_v27 = vcombine.low %v5729_v32, %v5730_v60  ;;  %v14372_v49 = vsub.f32 %v14305_v41, %v5700_v28  ;;  %v14375_v35 = vsub.f32 %v14300_v7, %v5704_v1  ;;  %12298 = vmatpush3.bf16.msra.mxu1 %v14410_v39  ;;  %v14422_v28 = vld [vmem:[%s15586_s1 + $0x118] sm:$0xff]  }
 0xb8a   :  { %v5750_v14 = vcombine.low %v5731_v8, %v5732_v21  ;;  %v14378_v24 = vsub.f32 %v14308_v36, %v5708_v47  ;;  %v5734_v52 = vmul.f32 %v14364_v18, %v14364_v18  ;;  %v5735_v61 = vmul.f32 %v14367_v63, %v14367_v63  ;;  %12283 = vmatprep.subr.bf16.mxu0 %v12912_v3  ;;  %v11448_v1 = vld [vmem:[%s15589_s4 + $0x18] ss:$0 sm:$0xff]  ;;  %v11449_v8 = vld [vmem:[%s15589_s4 + $0x19] ss:$0 sm:$0xff] }
 0xb8b   :  { %v5757_v48 = vrot.slane %v5749_v27, %v12983_v16  ;;  %v5736_v62 = vmul.f32 %v14372_v49, %v14372_v49  ;;  %v5737_v17 = vmul.f32 %v14375_v35, %v14375_v35  ;;  %v5771_v42 = vrot.slane %v5733_v5, %v12983_v16  ;;  %12299 = vmatprep.subr.bf16.mxu1 %v12912_v3 }
 0xb8c   :  { %v5764_v0 = vrot.slane %v5750_v14, %v12983_v16  ;;  %v5738_v4 = vmul.f32 %v14378_v24, %v14378_v24  ;;  %v5788_v46 = vcombine.low %v5734_v52, %v5735_v61  ;;  %12284 = vmatpush3.bf16.msra.mxu0 %v14417_v22  ;;  %v5915_v21 = vrot.slane %v11448_v1, %v12983_v16 }
 0xb8d   :  { %v5789_v43 = vcombine.low %v5736_v62, %v5737_v17  ;;  %v5786_v33 = vrot.slane %v5771_v42, %v12983_v16  ;;  %12300 = vmatpush3.bf16.msra.mxu1 %v14422_v28  ;;  %12289 = vmatprep.subr.bf16.mxu0 %v12912_v3  ;;  %v5974_v14 = vrot.slane %v11449_v8, %v12983_v16 }
 0xb8e   :  { %v5772_v12 = vcombine.low %v5757_v48, %v5764_v0  ;;  %v5796_v2 = vrot.slane %v5788_v46, %v12983_v16  ;;  %v5810_v25 = vrot.slane %v5738_v4, %v12983_v16  ;;  %12313 = vmatprep.subr.bf16.mxu1 %v12912_v3  ;;  %v5908_v61 = vcombine.high %v11448_v1, %v11448_v1 }
 0xb8f   :  { %v5803_v13 = vrot.slane %v5789_v43, %v12983_v16  ;;  %v5923_v48 = vcombine.high %v5915_v21, %v5915_v21  ;;  %v5967_v62 = vcombine.high %v11449_v8, %v11449_v8  ;;  %v5982_v17 = vcombine.high %v5974_v14, %v5974_v14 }
 0xb90   :  { %v5779_v45 = vrot.slane %v5772_v12, %v12983_v16  ;;  %v5825_v50 = vrot.slane %v5810_v25, %v12983_v16  ;;  %v5922_v0 = vrot.slane %v5908_v61, %v12983_v16  ;;  %v5930_v42 = vrot.slane %v5915_v21, %v12983_v16 }
 0xb91   :  { %v5811_v40 = vcombine.low %v5796_v2, %v5803_v13  ;;  %v5944_v4 = vrot.slane %v5923_v48, %v12983_v16  ;;  %v5981_v46 = vrot.slane %v5967_v62, %v12983_v16  ;;  %v5989_v43 = vrot.slane %v5974_v14, %v12983_v16 }
 0xb92   :  { %v5787_v31 = vcombine.low %v5779_v45, %v5786_v33  ;;  %v6003_v12 = vrot.slane %v5982_v17, %v12983_v16  ;;  %v5937_v13 = vrot.slane %v5922_v0, %v12983_v16  ;;  %v5945_v25 = vcombine.high %v5930_v42, %v5930_v42 }
 0xb93   :  { %v5818_v34 = vrot.slane %v5811_v40, %v12983_v16  ;;  %v5946_v45 = vcombine.high %v5944_v4, %v5944_v4 }
 0xb94   :  { %v5829_v15 = vsel %vm559_vm1, %v5787_v31, 0.0 }
 0xb95   :  { %5830 = vadd.xlane.f32.xlu0 %v5829_v15  ;;  %v5826_v26 = vcombine.low %v5818_v34, %v5825_v50  ;;  %v5996_v50 = vrot.slane %v5981_v46, %v12983_v16  ;;  %v6004_v15 = vcombine.high %v5989_v43, %v5989_v43 }
 0xb97   :  { %v5832_v11 = vsel %vm559_vm1, %v5826_v26, 0.0  ;;  %v6005_v26 = vcombine.high %v6003_v12, %v6003_v12 }
 0xb98   :  { %5833 = vadd.xlane.f32.xlu1 %v5832_v11 }
 0xc22   :  { %v5831_v32 = vpop.xlane.xlu0 %5830 }
 0xc23   :  { %v5835_v60 = vmul.f32 0.03125, %v5831_v32 }
 0xc25   :  { %v5837_v47 = vadd.f32 1e-12, %v5835_v60  ;;  %v5834_v5 = vpop.xlane.xlu1 %5833 }
 0xc26   :  { %v5836_v27 = vmul.f32 0.03125, %v5834_v5 }
 0xc27   :  { %12820 = vrsqrt.f32 %v5837_v47 }
 0xc28   :  { %v5838_v52 = vadd.f32 1e-12, %v5836_v27 }
 0xc2a   :  { %12822 = vrsqrt.f32 %v5838_v52 }
 0xc31   :  { %v12821_v2 = vpop.eup %12820 }
 0xc32   :  { %v5846_v33 = vrot.slane %v12821_v2, %v13090_v53  ;;  %v5850_v40 = vrot.slane %v12821_v2, %v13093_v54  ;;  %v5854_v31 = vrot.slane %v12821_v2, %v13096_v55  ;;  %v5858_v34 = vrot.slane %v12821_v2, %v13099_v56 }
 0xc33   :  { %v5862_v11 = vrot.slane %v12821_v2, %v13102_v58 }
 0xc34   :  { %v12823_v1 = vpop.eup %12822  ;;  %v5893_v32 = vmul.f32 %v5846_v33, %v14336_v30  ;;  %v5894_v60 = vmul.f32 %v5850_v40, %v14339_v51  ;;  %v5895_v8 = vmul.f32 %v5854_v31, %v14342_v6  ;;  %v5896_v21 = vmul.f32 %v5858_v34, %v14345_v9 }
 0xc35   :  { %v5897_v47 = vmul.f32 %v5862_v11, %v14352_v19  ;;  %v5866_v5 = vrot.slane %v12823_v1, %v13090_v53  ;;  %v5870_v27 = vrot.slane %v12823_v1, %v13093_v54  ;;  %v5874_v14 = vrot.slane %v12823_v1, %v13096_v55 }
 0xc36   :  { %v5952_v52 = vmul.f32 %v5930_v42, %v5893_v32  ;;  %v5953_v61 = vmul.f32 %v5944_v4, %v5894_v60  ;;  %v5954_v48 = vmul.f32 %v5945_v25, %v5895_v8  ;;  %v5955_v62 = vmul.f32 %v5946_v45, %v5896_v21 }
 0xc37   :  { %v5956_v17 = vmul.f32 %v5937_v13, %v5897_v47  ;;  %v5878_v30 = vrot.slane %v12823_v1, %v13099_v56  ;;  %v5882_v51 = vrot.slane %v12823_v1, %v13102_v58  ;;  %v5898_v6 = vmul.f32 %v5866_v5, %v14364_v18 }
 0xc38   :  { %v6011_v9 = vadd.f32 %v5989_v43, %v5952_v52  ;;  %v6012_v0 = vadd.f32 %v6003_v12, %v5953_v61  ;;  %v6013_v19 = vadd.f32 %v6004_v15, %v5954_v48  ;;  %v6014_v46 = vadd.f32 %v6005_v26, %v5955_v62 }
 0xc39   :  { %v6015_v2 = vadd.f32 %v5996_v50, %v5956_v17  ;;  %v5899_v33 = vmul.f32 %v5870_v27, %v14367_v63  ;;  %v5900_v40 = vmul.f32 %v5874_v14, %v14372_v49  ;;  %v5901_v31 = vmul.f32 %v5878_v30, %v14375_v35  ;;  %v12724_v17 = vld [vmem:[%s15586_s1 + $0x128] sm:$0xff]  }
 0xc3a   :  { %v6031_v34 = vcombine.low %v6011_v9, %v6012_v0  ;;  %v6032_v11 = vcombine.low %v6013_v19, %v6014_v46  ;;  %v5902_v32 = vmul.f32 %v5882_v51, %v14378_v24  ;;  %v5957_v60 = vmul.f32 %v5930_v42, %v5898_v6  ;;  %v12729_v6 = vld [vmem:[%s15586_s1 + $0x150] sm:$0xff]   ;;  %v12730_v9 = vld [vmem:[%s15586_s1 + $0x158] sm:$0xff]   ;;  %v12731_v0 = vld [vmem:[%s15586_s1 + $0x160] sm:$0xff]  }
 0xc3b   :  { %v5958_v8 = vmul.f32 %v5944_v4, %v5899_v33  ;;  %v5959_v1 = vmul.f32 %v5945_v25, %v5900_v40  ;;  %v5960_v21 = vmul.f32 %v5946_v45, %v5901_v31  ;;  %v6053_v18 = vrot.slane %v6015_v2, %v12983_v16  ;;  %v12732_v19 = vld [vmem:[%s15586_s1 + $0x168] sm:$0xff]   ;;  %v12733_v46 = vld [vmem:[%s15586_s1 + $0x170] sm:$0xff]   ;;  %v12734_v2 = vld [vmem:[%s15586_s1 + $0x178] sm:$0xff]  }
 0xc3c   :  { %v5961_v47 = vmul.f32 %v5937_v13, %v5902_v32  ;;  %v6016_v5 = vadd.f32 %v5989_v43, %v5957_v60  ;;  %v6039_v52 = vrot.slane %v6031_v34, %v12983_v16  ;;  %v6046_v63 = vrot.slane %v6032_v11, %v12983_v16  ;;  %v12735_v33 = vld [vmem:[%s15586_s1 + $0x180] sm:$0xff]   ;;  %v12736_v40 = vld [vmem:[%s15586_s1 + $0x188] sm:$0xff]   ;;  %v12737_v31 = vld [vmem:[%s15586_s1 + $0x190] sm:$0xff]  }
 0xc3d   :  { %v6017_v27 = vadd.f32 %v6003_v12, %v5958_v8  ;;  %v6018_v49 = vadd.f32 %v6004_v15, %v5959_v1  ;;  %v6019_v14 = vadd.f32 %v6005_v26, %v5960_v21  ;;  %v6068_v42 = vrot.slane %v6053_v18, %v12983_v16  ;;  %v12723_v12 = vld [vmem:[%s15586_s1 + $0x120] sm:$0xff]   ;;  %v12738_v34 = vld [vmem:[%s15586_s1 + $0x198] sm:$0xff]   ;;  %v12740_v32 = vld [vmem:[%s15586_s1 + $0x1a8] sm:$0xff]  }
 0xc3e   :  { %v6020_v35 = vadd.f32 %v5996_v50, %v5961_v47  ;;  %v6054_v61 = vcombine.low %v6039_v52, %v6046_v63  ;;  %v12739_v11 = vld [vmem:[%s15586_s1 + $0x1a0] sm:$0xff]   ;;  %v12741_v60 = vld [vmem:[%s15586_s1 + $0x1b0] sm:$0xff]   ;;  %v12742_v8 = vld [vmem:[%s15586_s1 + $0x1b8] sm:$0xff]  }
 0xc3f   :  { %v6070_v48 = vcombine.low %v6016_v5, %v6017_v27  ;;  %v6071_v62 = vcombine.low %v6018_v49, %v6019_v14  ;;  %v6162_v1 = vld [vmem:[%s15589_s4 + $0x1f] sm:$0xff] }
 0xc40   :  { %v6061_v24 = vrot.slane %v6054_v61, %v12983_v16  ;;  %v6092_v25 = vrot.slane %v6020_v35, %v12983_v16  ;;  %v6166_v21 = vcombine.high %v6162_v1, %v6162_v1  ;;  %v6173_v61 = vrot.slane %v6162_v1, %v12983_v16 }
 0xc41   :  { %v6078_v4 = vrot.slane %v6070_v48, %v12983_v16  ;;  %v6085_v13 = vrot.slane %v6071_v62, %v12983_v16 }
 0xc42   :  { %v6069_v43 = vcombine.low %v6061_v24, %v6068_v42  ;;  %v6107_v26 = vrot.slane %v6092_v25, %v12983_v16  ;;  %v6180_v63 = vrot.slane %v6166_v21, %v12983_v16  ;;  %v6189_v62 = vrot.slane %v6173_v61, %v12983_v16 }
 0xc43   :  { %v6093_v45 = vcombine.low %v6078_v4, %v6085_v13 }
 0xc44   :  { %v14477_v50 = vpack.c.bf16 %v6069_v43, %v6069_v43  ;;  %v6196_v48 = vrot.slane %v6180_v63, %v12983_v16  ;;  %v6182_v25 = vcombine.high %v6180_v63, %v6180_v63  ;;  %v6211_v21 = vcombine.high %v6189_v62, %v6189_v62 }
 0xc45   :  { %v6100_v15 = vrot.slane %v6093_v45, %v12983_v16 }
 0xc46   :  { %12286 = vmatmul.mubr.msk.bf16.vlgmr.msra.gmra.mrb[92].mxu0 %vm1584_vm3, %v14477_v50  ;;  %12302 = vmatmul.mubr.msk.bf16.vlgmr.msra.gmra.mrb[112].mxu1 %vm1584_vm3, %v14477_v50  ;;  %v6258_v43 = vrot.slane %v6196_v48, %v13090_v53 }
 0xc47   :  { %12290 = vmatpush3.bf16.msra.mxu0 %v14405_v44  ;;  %12314 = vmatpush3.bf16.msra.mxu1 %v12723_v12  ;;  %v6108_v30 = vcombine.low %v6100_v15, %v6107_v26  ;;  %v12725_v44 = vld [vmem:[%s15586_s1 + $0x130] sm:$0xff]   ;;  %v6181_v15 = vcombine.high %v6173_v61, %v6173_v61 }
 0xc48   :  { %12291 = vmatprep.subr.bf16.mxu0 %v12912_v3  ;;  %12315 = vmatprep.subr.bf16.mxu1 %v12912_v3 }
 0xc49   :  { %12293 = vmatprep.mubr.msk.bf16.mxu0 %vm12913_vm2, %v12912_v3  ;;  %12317 = vmatprep.mubr.msk.bf16.mxu1 %vm12913_vm2, %v12912_v3  ;;  %v14499_v51 = vpack.c.bf16 %v6108_v30, %v6108_v30  ;;  %v6381_v30 = vrot.slane %v6258_v43, %v12983_v16  ;;  %v6250_v43 = vrot.slane %v6211_v21, %v13090_v53 }
 0xc4b   :  { %12292 = vmatpush3.bf16.msra.mxu0 %v14417_v22  ;;  %12316 = vmatpush3.bf16.msra.mxu1 %v12724_v17  ;;  %v12726_v22 = vld [vmem:[%s15586_s1 + $0x138] sm:$0xff]  }
 0xc4c   :  { %12305 = vmatprep.subr.bf16.mxu0 %v12912_v3  ;;  %12329 = vmatprep.subr.bf16.mxu1 %v12912_v3 }
 0xc4e   :  { %12294 = vmatmul.mubr.msk.bf16.vlgmr.msra.gmra.mrb[96].mxu0 %vm1584_vm3, %v14499_v51  ;;  %12318 = vmatmul.mubr.msk.bf16.vlgmr.msra.gmra.mrb[116].mxu1 %vm1584_vm3, %v14477_v50 }
 0xc4f   :  { %12306 = vmatpush3.bf16.msra.mxu0 %v14410_v39  ;;  %12330 = vmatpush3.bf16.msra.mxu1 %v12725_v44  ;;  %v12727_v39 = vld [vmem:[%s15586_s1 + $0x140] sm:$0xff]  }
 0xc50   :  { %12307 = vmatprep.subr.bf16.mxu0 %v12912_v3  ;;  %12331 = vmatprep.subr.bf16.mxu1 %v12912_v3 }
 0xc51   :  { %12309 = vmatprep.mubr.msk.bf16.mxu0 %vm12913_vm2, %v12912_v3  ;;  %12333 = vmatprep.mubr.msk.bf16.mxu1 %vm12913_vm2, %v12912_v3 }
 0xc53   :  { %12308 = vmatpush3.bf16.msra.mxu0 %v14422_v28  ;;  %12332 = vmatpush3.bf16.msra.mxu1 %v12726_v22  ;;  %v12728_v28 = vld [vmem:[%s15586_s1 + $0x148] sm:$0xff]  }
 0xc54   :  { %12321 = vmatprep.subr.bf16.mxu0 %v12912_v3  ;;  %12345 = vmatprep.subr.bf16.mxu1 %v12912_v3 }
 0xc56   :  { %12310 = vmatmul.mubr.msk.bf16.vlgmr.msra.gmra.mrb[100].mxu0 %vm1584_vm3, %v14499_v51  ;;  %12334 = vmatmul.mubr.msk.bf16.vlgmr.msra.gmra.mrb[120].mxu1 %vm1584_vm3, %v14477_v50 }
 0xc57   :  { %12322 = vmatpush3.bf16.msra.mxu0 %v12723_v12  ;;  %12346 = vmatpush3.bf16.msra.mxu1 %v12727_v39 }
 0xc58   :  { %12323 = vmatprep.subr.bf16.mxu0 %v12912_v3  ;;  %12347 = vmatprep.subr.bf16.mxu1 %v12912_v3 }
 0xc59   :  { %12325 = vmatprep.mubr.msk.bf16.mxu0 %vm12913_vm2, %v12912_v3  ;;  %12349 = vmatprep.mubr.msk.bf16.mxu1 %vm12913_vm2, %v12912_v3 }
 0xc5b   :  { %12324 = vmatpush3.bf16.msra.mxu0 %v12724_v17  ;;  %12348 = vmatpush3.bf16.msra.mxu1 %v12728_v28 }
 0xc5c   :  { %12337 = vmatprep.subr.bf16.mxu0 %v12912_v3  ;;  %12361 = vmatprep.subr.bf16.mxu1 %v12912_v3 }
 0xc5e   :  { %12326 = vmatmul.mubr.msk.bf16.vlgmr.msra.gmra.mrb[104].mxu0 %vm1584_vm3, %v14499_v51  ;;  %12350 = vmatmul.mubr.msk.bf16.vlgmr.msra.gmra.mrb[124].mxu1 %vm1584_vm3, %v14477_v50 }
 0xc5f   :  { %12338 = vmatpush3.bf16.msra.mxu0 %v12725_v44  ;;  %12362 = vmatpush3.bf16.msra.mxu1 %v12729_v6  ;;  %v6210_v44 = vrot.slane %v6182_v25, %v12983_v16 }
 0xc60   :  { %12339 = vmatprep.subr.bf16.mxu0 %v12912_v3  ;;  %12363 = vmatprep.subr.bf16.mxu1 %v12912_v3 }
 0xc61   :  { %12341 = vmatprep.mubr.msk.bf16.mxu0 %vm12913_vm2, %v12912_v3  ;;  %12365 = vmatprep.mubr.msk.bf16.mxu1 %vm12913_vm2, %v12912_v3 }
 0xc63   :  { %12340 = vmatpush3.bf16.msra.mxu0 %v12726_v22  ;;  %12364 = vmatpush3.bf16.msra.mxu1 %v12730_v9  ;;  %v6203_v22 = vrot.slane %v6181_v15, %v12983_v16 }
 0xc64   :  { %12353 = vmatprep.subr.bf16.mxu0 %v12912_v3  ;;  %12377 = vmatprep.subr.bf16.mxu1 %v12912_v3 }
 0xc66   :  { %12342 = vmatmul.mubr.msk.bf16.vlgmr.msra.gmra.mrb[108].mxu0 %vm1584_vm3, %v14499_v51  ;;  %12366 = vmatmul.mubr.msk.bf16.vlgmr.msra.gmra.mrb[128].mxu1 %vm1584_vm3, %v14477_v50 }
 0xc67   :  { %12354 = vmatpush3.bf16.msra.mxu0 %v12727_v39  ;;  %12378 = vmatpush3.bf16.msra.mxu1 %v12731_v0 }
 0xc68   :  { %12355 = vmatprep.subr.bf16.mxu0 %v12912_v3  ;;  %12379 = vmatprep.subr.bf16.mxu1 %v12912_v3 }
 0xc69   :  { %12357 = vmatprep.mubr.msk.bf16.mxu0 %vm12913_vm2, %v12912_v3  ;;  %12381 = vmatprep.mubr.msk.bf16.mxu1 %vm12913_vm2, %v12912_v3 }
 0xc6b   :  { %12356 = vmatpush3.bf16.msra.mxu0 %v12728_v28  ;;  %12380 = vmatpush3.bf16.msra.mxu1 %v12732_v19 }
 0xc6c   :  { %12369 = vmatprep.subr.bf16.mxu0 %v12912_v3  ;;  %12393 = vmatprep.subr.bf16.mxu1 %v12912_v3 }
 0xc6e   :  { %12358 = vmatmul.mubr.msk.bf16.vlgmr.msra.gmra.mrb[112].mxu0 %vm1584_vm3, %v14499_v51  ;;  %12382 = vmatmul.mubr.msk.bf16.vlgmr.msra.gmra.mrb[132].mxu1 %vm1584_vm3, %v14477_v50 }
 0xc6f   :  { %12370 = vmatpush3.bf16.msra.mxu0 %v12729_v6  ;;  %12394 = vmatpush3.bf16.msra.mxu1 %v12733_v46 }
 0xc70   :  { %12371 = vmatprep.subr.bf16.mxu0 %v12912_v3  ;;  %12395 = vmatprep.subr.bf16.mxu1 %v12912_v3 }
 0xc71   :  { %12373 = vmatprep.mubr.msk.bf16.mxu0 %vm12913_vm2, %v12912_v3  ;;  %12397 = vmatprep.mubr.msk.bf16.mxu1 %vm12913_vm2, %v12912_v3 }
 0xc73   :  { %12372 = vmatpush3.bf16.msra.mxu0 %v12730_v9  ;;  %12396 = vmatpush3.bf16.msra.mxu1 %v12734_v2 }
 0xc74   :  { %12385 = vmatprep.subr.bf16.mxu0 %v12912_v3  ;;  %12409 = vmatprep.subr.bf16.mxu1 %v12912_v3 }
 0xc76   :  { %12374 = vmatmul.mubr.msk.bf16.vlgmr.msra.gmra.mrb[116].mxu0 %vm1584_vm3, %v14499_v51  ;;  %12398 = vmatmul.mubr.msk.bf16.vlgmr.msra.gmra.mrb[136].mxu1 %vm1584_vm3, %v14477_v50 }
 0xc77   :  { %12386 = vmatpush3.bf16.msra.mxu0 %v12731_v0  ;;  %12410 = vmatpush3.bf16.msra.mxu1 %v12735_v33  ;;  %v6389_v0 = vrot.slane %v6381_v30, %v12983_v16 }
 0xc78   :  { %12387 = vmatprep.subr.bf16.mxu0 %v12912_v3  ;;  %12411 = vmatprep.subr.bf16.mxu1 %v12912_v3 }
 0xc79   :  { %12389 = vmatprep.mubr.msk.bf16.mxu0 %vm12913_vm2, %v12912_v3  ;;  %12413 = vmatprep.mubr.msk.bf16.mxu1 %vm12913_vm2, %v12912_v3 }
 0xc7b   :  { %12388 = vmatpush3.bf16.msra.mxu0 %v12732_v19  ;;  %12412 = vmatpush3.bf16.msra.mxu1 %v12736_v40  ;;  %v6262_v19 = vrot.slane %v6210_v44, %v13090_v53 }
 0xc7c   :  { %12401 = vmatprep.subr.bf16.mxu0 %v12912_v3  ;;  %12425 = vmatprep.subr.bf16.mxu1 %v12912_v3 }
 0xc7e   :  { %12390 = vmatmul.mubr.msk.bf16.vlgmr.msra.gmra.mrb[120].mxu0 %vm1584_vm3, %v14499_v51  ;;  %12414 = vmatmul.mubr.msk.bf16.vlgmr.msra.gmra.mrb[140].mxu1 %vm1584_vm3, %v14477_v50 }
 0xc7f   :  { %12402 = vmatpush3.bf16.msra.mxu0 %v12733_v46  ;;  %12426 = vmatpush3.bf16.msra.mxu1 %v12737_v31 }
 0xc80   :  { %12403 = vmatprep.subr.bf16.mxu0 %v12912_v3  ;;  %12427 = vmatprep.subr.bf16.mxu1 %v12912_v3 }
 0xc81   :  { %12405 = vmatprep.mubr.msk.bf16.mxu0 %vm12913_vm2, %v12912_v3  ;;  %12429 = vmatprep.mubr.msk.bf16.mxu1 %vm12913_vm2, %v12912_v3 }
 0xc83   :  { %12404 = vmatpush3.bf16.msra.mxu0 %v12734_v2  ;;  %12428 = vmatpush3.bf16.msra.mxu1 %v12738_v34 }
 0xc84   :  { %12417 = vmatprep.subr.bf16.mxu0 %v12912_v3  ;;  %12441 = vmatprep.subr.bf16.mxu1 %v12912_v3 }
 0xc86   :  { %12406 = vmatmul.mubr.msk.bf16.vlgmr.msra.gmra.mrb[124].mxu0 %vm1584_vm3, %v14499_v51  ;;  %12430 = vmatmul.mubr.msk.bf16.vlgmr.msra.gmra.mrb[144].mxu1 %vm1584_vm3, %v14477_v50 }
 0xc87   :  { %12418 = vmatpush3.bf16.msra.mxu0 %v12735_v33  ;;  %12442 = vmatpush3.bf16.msra.mxu1 %v12739_v11 }
 0xc88   :  { %12419 = vmatprep.subr.bf16.mxu0 %v12912_v3  ;;  %12443 = vmatprep.subr.bf16.mxu1 %v12912_v3 }
 0xc89   :  { %12421 = vmatprep.mubr.msk.bf16.mxu0 %vm12913_vm2, %v12912_v3  ;;  %12445 = vmatprep.mubr.msk.bf16.mxu1 %vm12913_vm2, %v12912_v3 }
 0xc8b   :  { %12420 = vmatpush3.bf16.msra.mxu0 %v12736_v40  ;;  %12444 = vmatpush3.bf16.msra.mxu1 %v12740_v32  ;;  %v6246_v40 = vrot.slane %v6203_v22, %v13090_v53 }
 0xc8c   :  { %12433 = vmatprep.subr.bf16.mxu0 %v12912_v3  ;;  %12457 = vmatprep.subr.bf16.mxu1 %v12912_v3 }
 0xc8d   :  { %v14717_v1 = vrot.slane %v6246_v40, %v12983_v16 }
 0xc8e   :  { %12422 = vmatmul.mubr.msk.bf16.vlgmr.msra.gmra.mrb[128].mxu0 %vm1584_vm3, %v14499_v51  ;;  %12446 = vmatmul.mubr.msk.bf16.vlgmr.msra.gmra.mrb[148].mxu1 %vm1584_vm3, %v14477_v50 }
 0xc8f   :  { %12434 = vmatpush3.bf16.msra.mxu0 %v12737_v31  ;;  %12458 = vmatpush3.bf16.msra.mxu1 %v12741_v60 }
 0xc90   :  { %12435 = vmatprep.subr.bf16.mxu0 %v12912_v3  ;;  %12459 = vmatprep.subr.bf16.mxu1 %v12912_v3 }
 0xc91   :  { %12437 = vmatprep.mubr.msk.bf16.mxu0 %vm12913_vm2, %v12912_v3  ;;  %12461 = vmatprep.mubr.msk.bf16.mxu1 %vm12913_vm2, %v12912_v3 }
 0xc93   :  { %12436 = vmatpush3.bf16.msra.mxu0 %v12738_v34  ;;  %12460 = vmatpush3.bf16.msra.mxu1 %v12742_v8 }
 0xc94   :  { %12449 = vmatprep.subr.bf16.mxu0 %v12912_v3  ;;  %12473 = vmatprep.subr.bf16.mxu1 %v12912_v3 }
 0xc96   :  { %12438 = vmatmul.mubr.msk.bf16.vlgmr.msra.gmra.mrb[132].mxu0 %vm1584_vm3, %v14499_v51  ;;  %12462 = vmatmul.mubr.msk.bf16.vlgmr.msra.gmra.mrb[152].mxu1 %vm1584_vm3, %v14477_v50  ;;  %v6242_v50 = vrot.slane %v6189_v62, %v13090_v53 }
 0xc97   :  { %12450 = vmatpush3.bf16.msra.mxu0 %v12739_v11  ;;  %12453 = vmatprep.mubr.msk.bf16.mxu0 %vm12913_vm2, %v12912_v3  ;;  %v6586_v11 = vrot.slane %v6389_v0, %v13090_v53 }
 0xc98   :  { %12451 = vmatprep.subr.bf16.mxu0 %v12912_v3  ;;  %12475 = vmatprep.mubr.msk.bf16.mxu1 %vm12913_vm2, %v12912_v3 }
 0xc9b   :  { %12452 = vmatpush3.bf16.msra.mxu0 %v12740_v32  ;;  %v14713_v32 = vrot.slane %v6262_v19, %v12983_v16  ;;  %v14734_v19 = vrot.slane %v6250_v43, %v12983_v16 }
 0xc9c   :  { %12465 = vmatprep.subr.bf16.mxu0 %v12912_v3 }
 0xc9e   :  { %12454 = vmatmul.mubr.msk.bf16.vlgmr.msra.gmra.mrb[136].mxu0 %vm1584_vm3, %v14499_v51 }
 0xc9f   :  { %12466 = vmatpush3.bf16.msra.mxu0 %v12741_v60  ;;  %12469 = vmatprep.mubr.msk.bf16.mxu0 %vm12913_vm2, %v12912_v3  ;;  %v6212_v60 = vcombine.high %v6196_v48, %v6196_v48 }
 0xca0   :  { %12467 = vmatprep.subr.bf16.mxu0 %v12912_v3 }
 0xca3   :  { %12468 = vmatpush3.bf16.msra.mxu0 %v12742_v8 }
 0xca4   :  { %12479 = vmatprep.subr.bf16.mxu0 %v12912_v3 }
 0xca6   :  { %12470 = vmatmul.mubr.msk.bf16.vlgmr.msra.gmra.mrb[140].mxu0 %vm1584_vm3, %v14499_v51  ;;  %v6293_v51 = vrot.slane %v6242_v50, %v12983_v16 }
 0xca7   :  { %12481 = vmatprep.mubr.msk.bf16.mxu0 %vm12913_vm2, %v12912_v3 }
 0xca8   :  { %v6301_v33 = vrot.slane %v6293_v51, %v12983_v16 }
 0xcaa   :  { %v6554_v8 = vrot.slane %v6301_v33, %v13090_v53 }
 0xd19   :  { %v6720_v18 = vpop.f32.mrb[92].mxu0  ;;  %v14687_v47 = vpop.f32.mrb[112].mxu1 }
 0xd1a   :  { %v12287_v5 = vpop.f32.mrb[93].mxu0  ;;  %v12303_v52 = vpop.f32.mrb[113].mxu1  ;;  %v6721_v48 = vadd.f32 %v6720_v18, %v6554_v8  ;;  %v11498_v8 = vld.sshfl [vmem:[%s15589_s4 + $0x27] sm:$0x33 pattern:$0x75316420] }
 0xd1b   :  { %v6723_v27 = vpop.f32.mrb[94].mxu0  ;;  %v6818_v49 = vpop.f32.mrb[114].mxu1 }
 0xd1c   :  { %v12288_v14 = vpop.f32.mrb[95].mxu0  ;;  %v12304_v35 = vpop.f32.mrb[115].mxu1  ;;  %v7781_v18 = vmul.f32 0.35355338, %v6721_v48 }
 0xd1d   :  { %v6411_v14 = vrot.slane %v14713_v32, %v12983_v16  ;;  %v6266_v35 = vrot.slane %v6212_v60, %v13090_v53 }
 0xd1e   :  { %v7789_v21 = vpack.c.bf16 %v7781_v18, %v7781_v18 }
 0xd1f   :  { %v6594_v15 = vrot.slane %v6411_v14, %v13090_v53 }
 0xd21   :  { %v14693_v24 = vpop.f32.mrb[96].mxu0  ;;  %v14695_v42 = vpop.f32.mrb[116].mxu1 }
 0xd22   :  { %v12295_v4 = vpop.f32.mrb[97].mxu0  ;;  %v12319_v13 = vpop.f32.mrb[117].mxu1 }
 0xd23   :  { %v6766_v12 = vpop.f32.mrb[98].mxu0  ;;  %v6910_v45 = vpop.f32.mrb[118].mxu1  ;;  %v6323_v13 = vrot.slane %v14717_v1, %v12983_v16 }
 0xd24   :  { %v12296_v26 = vpop.f32.mrb[99].mxu0  ;;  %v12320_v17 = vpop.f32.mrb[119].mxu1  ;;  %v6382_v45 = vcombine.high %v6381_v30, %v6381_v30 }
 0xd25   :  { %v14730_v26 = vrot.slane %v6266_v35, %v12983_v16  ;;  %v6214_v17 = vcombine.high %v6210_v44, %v6210_v44  ;;  %v6562_v0 = vrot.slane %v6323_v13, %v13090_v53 }
 0xd27   :  { %v6433_v44 = vrot.slane %v14730_v26, %v12983_v16 }
 0xd29   :  { %v14703_v39 = vpop.f32.mrb[100].mxu0  ;;  %v14705_v28 = vpop.f32.mrb[120].mxu1  ;;  %v6602_v48 = vrot.slane %v6433_v44, %v13090_v53 }
 0xd2a   :  { %v12311_v6 = vpop.f32.mrb[101].mxu0  ;;  %v12335_v9 = vpop.f32.mrb[121].mxu1 }
 0xd2b   :  { %v6858_v46 = vpop.f32.mrb[102].mxu0  ;;  %v7002_v2 = vpop.f32.mrb[122].mxu1  ;;  %v6294_v6 = vcombine.high %v6293_v51, %v6293_v51  ;;  %v6213_v9 = vcombine.high %v6203_v22, %v6203_v22  ;;  %v6270_v51 = vrot.slane %v6214_v17, %v13090_v53  ;;  %v6222_v17 = vcombine.high %v11498_v8, %v11498_v8 }
 0xd2c   :  { %v12312_v31 = vpop.f32.mrb[103].mxu0  ;;  %v12336_v34 = vpop.f32.mrb[123].mxu1  ;;  %v6396_v2 = vrot.slane %v6382_v45, %v12983_v16 }
 0xd2d   :  { %v6308_v22 = vrot.slane %v6294_v6, %v12983_v16  ;;  %v6254_v34 = vrot.slane %v6213_v9, %v13090_v53  ;;  %v14758_v13 = vrot.slane %v6270_v51, %v12983_v16 }
 0xd2e   :  { %v6590_v35 = vrot.slane %v6396_v2, %v13090_v53 }
 0xd2f   :  { %v6558_v43 = vrot.slane %v6308_v22, %v13090_v53 }
 0xd31   :  { %v14719_v5 = vpop.f32.mrb[104].mxu0  ;;  %v7091_v52 = vpop.f32.mrb[124].mxu1  ;;  %v6764_v2 = vadd.f32 %v14693_v24, %v6558_v43  ;;  %v14787_v24 = vrot.slane %v6222_v17, %v12983_v16 }
 0xd32   :  { %v7092_v63 = vadd.f32 %v7091_v52, %v6586_v11  ;;  %v12327_v27 = vpop.f32.mrb[105].mxu0  ;;  %v12351_v49 = vpop.f32.mrb[125].mxu1  ;;  %v6816_v52 = vadd.f32 %v14687_v47, %v6562_v0  ;;  %v14761_v47 = vrot.slane %v11498_v8, %v12983_v16  ;;  %v6455_v0 = vrot.slane %v14758_v13, %v12983_v16 }
 0xd33   :  { %v6950_v61 = vpop.f32.mrb[106].mxu0  ;;  %v7094_v4 = vpop.f32.mrb[126].mxu1 }
 0xd34   :  { %v7797_v62 = vpack.c.bf16 %v7092_v63, %v7092_v63  ;;  %v12328_v25 = vpop.f32.mrb[107].mxu0  ;;  %v12352_v12 = vpop.f32.mrb[127].mxu1  ;;  %v6345_v63 = vrot.slane %v14734_v19, %v12983_v16  ;;  %v6404_v61 = vcombine.high %v14713_v32, %v14713_v32  ;;  %v7783_v32 = vmul.f32 0.35355338, %v6816_v52 }
 0xd35   :  { %v14767_v25 = vrot.slane %v6254_v34, %v12983_v16  ;;  %v6426_v52 = vcombine.high %v14730_v26, %v14730_v26  ;;  %v6338_v26 = vcombine.high %v14734_v19, %v14734_v19 }
 0xd36   :  { %v7817_v50 = vsel %vm2715_vm4, %v7797_v62, 0  ;;  %v6316_v62 = vcombine.high %v14717_v1, %v14717_v1  ;;  %v6570_v12 = vrot.slane %v6345_v63, %v13090_v53  ;;  %v7791_v51 = vpack.c.bf16 %v7783_v32, %v7783_v32 }
 0xd37   :  { %12474 = vmatpush3.bf16.xpose.msra.mxu1 %v7817_v50  ;;  %v6278_v32 = vrot.slane %v14787_v24, %v13090_v53 }
 0xd38   :  { %12485 = vmatprep.subr.bf16.mxu1 %v12912_v3  ;;  %v6908_v22 = vadd.f32 %v14695_v42, %v6570_v12  ;;  %v6610_v42 = vrot.slane %v6455_v0, %v13090_v53 }
 0xd39   :  { %v14737_v30 = vpop.f32.mrb[108].mxu0  ;;  %v7183_v46 = vpop.f32.mrb[128].mxu1 }
 0xd3a   :  { %v7184_v33 = vadd.f32 %v7183_v46, %v6594_v15  ;;  %v12343_v40 = vpop.f32.mrb[109].mxu0  ;;  %v12367_v31 = vpop.f32.mrb[129].mxu1  ;;  %v6418_v15 = vrot.slane %v6404_v61, %v12983_v16  ;;  %v6274_v46 = vrot.slane %v14761_v47, %v13090_v53  ;;  %v7785_v61 = vmul.f32 0.35355338, %v6908_v22 }
 0xd3b   :  { %v7042_v11 = vpop.f32.mrb[110].mxu0  ;;  %v7186_v60 = vpop.f32.mrb[130].mxu1  ;;  %v6367_v40 = vrot.slane %v14767_v25, %v12983_v16  ;;  %v14816_v22 = vrot.slane %v6278_v32, %v12983_v16 }
 0xd3c   :  { %v7799_v27 = vpack.c.bf16 %v7184_v33, %v7184_v33  ;;  %v12344_v49 = vpop.f32.mrb[111].mxu0  ;;  %v12368_v14 = vpop.f32.mrb[131].mxu1  ;;  %v6330_v33 = vrot.slane %v6316_v62, %v12983_v16  ;;  %v6440_v62 = vrot.slane %v6426_v52, %v12983_v16  ;;  %v7793_v0 = vpack.c.bf16 %v7785_v61, %v7785_v61 }
 0xd3d   :  { %v14794_v49 = vrot.slane %v6274_v46, %v12983_v16  ;;  %v7782_v14 = vmul.f32 0.35355338, %v6764_v2 }
 0xd3e   :  { %v7909_v4 = vsel %vm2715_vm4, %v7799_v27, 0  ;;  %12476 = vmatmul.mubr.msk.bf16.vlgmr.msra.gmra.mrb[156].mxu1 %vm2715_vm4, %v7789_v21  ;;  %v6598_v21 = vrot.slane %v6418_v15, %v13090_v53 }
 0xd3f   :  { %12486 = vmatpush3.bf16.xpose.msra.mxu1 %v7909_v4  ;;  %12487 = vmatprep.mubr.msk.bf16.mxu1 %vm12913_vm2, %v12912_v3  ;;  %v6578_v4 = vrot.slane %v6367_v40, %v13090_v53  ;;  %v6477_v15 = vrot.slane %v14794_v49, %v12983_v16  ;;  %v7790_v17 = vpack.c.bf16 %v7782_v14, %v7782_v14 }
 0xd40   :  { %12497 = vmatprep.subr.bf16.mxu1 %v12912_v3 }
 0xd41   :  { %v7131_v45 = vpop.f32.mrb[112].mxu0  ;;  %v7275_v50 = vpop.f32.mrb[132].mxu1  ;;  %v7000_v46 = vadd.f32 %v14705_v28, %v6578_v4  ;;  %v6618_v28 = vrot.slane %v6477_v15, %v13090_v53 }
 0xd42   :  { %v7132_v6 = vadd.f32 %v7131_v45, %v6590_v35  ;;  %v7276_v9 = vadd.f32 %v7275_v50, %v6602_v48  ;;  %v12359_v1 = vpop.f32.mrb[113].mxu0  ;;  %v12383_v18 = vpop.f32.mrb[133].mxu1  ;;  %v6566_v35 = vrot.slane %v6330_v33, %v13090_v53 }
 0xd43   :  { %v7134_v31 = vpop.f32.mrb[114].mxu0  ;;  %v7278_v44 = vpop.f32.mrb[134].mxu1 }
 0xd44   :  { %v7798_v34 = vpack.c.bf16 %v7132_v6, %v7132_v6  ;;  %v7801_v11 = vpack.c.bf16 %v7276_v9, %v7276_v9  ;;  %v12360_v60 = vpop.f32.mrb[115].mxu0  ;;  %v12384_v8 = vpop.f32.mrb[135].mxu1  ;;  %v6856_v6 = vadd.f32 %v14703_v39, %v6566_v35  ;;  %v6352_v9 = vrot.slane %v6338_v26, %v12983_v16 }
 0xd45   :  { %v6606_v44 = vrot.slane %v6440_v62, %v13090_v53  ;;  %v7787_v8 = vmul.f32 0.35355338, %v7000_v46 }
 0xd46   :  { %v7863_v63 = vsel %vm2715_vm4, %v7798_v34, 0  ;;  %v8001_v27 = vsel %vm2715_vm4, %v7801_v11, 0  ;;  %12488 = vmatmul.mubr.msk.bf16.vlgmr.msra.gmra.mrb[160].mxu1 %vm2715_vm4, %v7791_v51  ;;  %v6448_v51 = vcombine.high %v14758_v13, %v14758_v13  ;;  %v6237_v11 = vcombine.high %v14761_v47, %v14761_v47 }
 0xd47   :  { %12480 = vmatpush3.bf16.xpose.msra.mxu0 %v7863_v63  ;;  %12498 = vmatpush3.bf16.xpose.msra.mxu1 %v8001_v27  ;;  %v7784_v60 = vmul.f32 0.35355338, %v6856_v6  ;;  %v6360_v13 = vcombine.high %v14767_v25, %v14767_v25  ;;  %v6499_v25 = vrot.slane %v14816_v22, %v12983_v16  ;;  %v7795_v62 = vpack.c.bf16 %v7787_v8, %v7787_v8 }
 0xd48   :  { %12499 = vmatprep.mubr.msk.bf16.mxu1 %vm12913_vm2, %v12912_v3  ;;  %12491 = vmatprep.subr.bf16.mxu0 %v12912_v3  ;;  %v6462_v47 = vrot.slane %v6448_v51, %v12983_v16  ;;  %v6282_v26 = vrot.slane %v6237_v11, %v13090_v53  ;;  %v6470_v6 = vcombine.high %v14794_v49, %v14794_v49 }
 0xd49   :  { %v7223_v48 = vpop.f32.mrb[116].mxu0  ;;  %v7367_v43 = vpop.f32.mrb[136].mxu1  ;;  %12509 = vmatprep.subr.bf16.mxu1 %v12912_v3  ;;  %v7792_v61 = vpack.c.bf16 %v7784_v60, %v7784_v60  ;;  %v6374_v4 = vrot.slane %v6360_v13, %v12983_v16 }
 0xd4a   :  { %v7224_v19 = vadd.f32 %v7223_v48, %v6598_v21  ;;  %v7368_v12 = vadd.f32 %v7367_v43, %v6610_v42  ;;  %v12375_v45 = vpop.f32.mrb[117].mxu0  ;;  %v12399_v50 = vpop.f32.mrb[137].mxu1  ;;  %v6574_v21 = vrot.slane %v6352_v9, %v13090_v53  ;;  %v6614_v15 = vrot.slane %v6462_v47, %v13090_v53 }
 0xd4b   :  { %v7226_v1 = vpop.f32.mrb[118].mxu0  ;;  %v7370_v18 = vpop.f32.mrb[138].mxu1  ;;  %v6582_v49 = vrot.slane %v6374_v4, %v13090_v53 }
 0xd4c   :  { %v7800_v2 = vpack.c.bf16 %v7224_v19, %v7224_v19  ;;  %v7803_v33 = vpack.c.bf16 %v7368_v12, %v7368_v12  ;;  %v12376_v40 = vpop.f32.mrb[119].mxu0  ;;  %v12400_v31 = vpop.f32.mrb[139].mxu1  ;;  %v6948_v32 = vadd.f32 %v14719_v5, %v6574_v21  ;;  %v14849_v5 = vrot.slane %v6282_v26, %v12983_v16 }
 0xd4d   :  { %v6238_v18 = vcombine.high %v14787_v24, %v14787_v24  ;;  %v7040_v60 = vadd.f32 %v14737_v30, %v6582_v49 }
 0xd4e   :  { %v7955_v39 = vsel %vm2715_vm4, %v7800_v2, 0  ;;  %v8093_v34 = vsel %vm2715_vm4, %v7803_v33, 0  ;;  %12482 = vmatmul.mubr.msk.bf16.vlgmr.msra.gmra.mrb[144].mxu0 %vm2715_vm4, %v7790_v17  ;;  %12500 = vmatmul.mubr.msk.bf16.vlgmr.msra.gmra.mrb[164].mxu1 %vm2715_vm4, %v7793_v0  ;;  %v6626_v17 = vrot.slane %v6499_v25, %v13090_v53  ;;  %v7786_v0 = vmul.f32 0.35355338, %v6948_v32 }
 0xd4f   :  { %12492 = vmatpush3.bf16.xpose.msra.mxu0 %v7955_v39  ;;  %12510 = vmatpush3.bf16.xpose.msra.mxu1 %v8093_v34  ;;  %v6484_v33 = vrot.slane %v6470_v6, %v12983_v16  ;;  %v6521_v51 = vrot.slane %v14849_v5, %v12983_v16  ;;  %v6286_v39 = vrot.slane %v6238_v18, %v13090_v53  ;;  %v7788_v30 = vmul.f32 0.35355338, %v7040_v60 }
 0xd50   :  { %12493 = vmatprep.mubr.msk.bf16.mxu0 %vm12913_vm2, %v12912_v3  ;;  %12511 = vmatprep.mubr.msk.bf16.mxu1 %vm12913_vm2, %v12912_v3  ;;  %v7794_v11 = vpack.c.bf16 %v7786_v0, %v7786_v0  ;;  %v6492_v25 = vcombine.high %v14816_v22, %v14816_v22  ;;  %v6514_v6 = vcombine.high %v14849_v5, %v14849_v5 }
 0xd51   :  { %v7315_v52 = vpop.f32.mrb[120].mxu0  ;;  %v7459_v63 = vpop.f32.mrb[140].mxu1  ;;  %12503 = vmatprep.subr.bf16.mxu0 %v12912_v3  ;;  %12521 = vmatprep.subr.bf16.mxu1 %v12912_v3  ;;  %v6634_v47 = vrot.slane %v6521_v51, %v13090_v53  ;;  %v7796_v32 = vpack.c.bf16 %v7788_v30, %v7788_v30 }
 0xd52   :  { %v7316_v27 = vadd.f32 %v7315_v52, %v6606_v44  ;;  %v7460_v42 = vadd.f32 %v7459_v63, %v6618_v28  ;;  %v12391_v14 = vpop.f32.mrb[121].mxu0  ;;  %v12415_v35 = vpop.f32.mrb[141].mxu1  ;;  %v6622_v52 = vrot.slane %v6484_v33, %v13090_v53 }
 0xd53   :  { %v7318_v48 = vpop.f32.mrb[122].mxu0  ;;  %v7462_v43 = vpop.f32.mrb[142].mxu1 }
 0xd54   :  { %v7802_v19 = vpack.c.bf16 %v7316_v27, %v7316_v27  ;;  %v7805_v12 = vpack.c.bf16 %v7460_v42, %v7460_v42  ;;  %v12392_v45 = vpop.f32.mrb[123].mxu0  ;;  %v12416_v50 = vpop.f32.mrb[143].mxu1  ;;  %v6535_v27 = vrot.slane %v6286_v39, %v12983_v16  ;;  %v6506_v48 = vrot.slane %v6492_v25, %v12983_v16 }
 0xd56   :  { %v8047_v9 = vsel %vm2715_vm4, %v7802_v19, 0  ;;  %v8281_v1 = vand.u32 %v7805_v12, %v13634_v20  ;;  %12494 = vmatmul.mubr.msk.bf16.vlgmr.msra.gmra.mrb[148].mxu0 %vm2715_vm4, %v7792_v61  ;;  %12512 = vmatmul.mubr.msk.bf16.vlgmr.msra.gmra.mrb[168].mxu1 %vm2715_vm4, %v7795_v62  ;;  %v6543_v22 = vrot.slane %v6535_v27, %v12983_v16  ;;  %v6536_v51 = vcombine.high %v6535_v27, %v6535_v27 }
 0xd57   :  { %12504 = vmatpush3.bf16.xpose.msra.mxu0 %v8047_v9  ;;  %12505 = vmatprep.mubr.msk.bf16.mxu0 %vm12913_vm2, %v12912_v3 }
 0xd58   :  { %12522 = vmatpush3.bf16.msra.mxu1 %v8281_v1  ;;  %12515 = vmatprep.subr.bf16.mxu0 %v12912_v3 }
 0xd59   :  { %v7407_v46 = vpop.f32.mrb[124].mxu0  ;;  %v7551_v2 = vpop.f32.mrb[144].mxu1  ;;  %12523 = vmatprep.mubr.msk.bf16.mxu1 %vm12913_vm2, %v12912_v3  ;;  %12533 = vmatprep.subr.bf16.mxu1 %v12912_v3 }
 0xd5a   :  { %v7408_v24 = vadd.f32 %v7407_v46, %v6614_v15  ;;  %v14861_v40 = vadd.f32 %v7551_v2, %v6626_v17  ;;  %v12407_v31 = vpop.f32.mrb[125].mxu0  ;;  %v12431_v44 = vpop.f32.mrb[145].mxu1  ;;  %v6630_v15 = vrot.slane %v6506_v48, %v13090_v53  ;;  %v6642_v17 = vrot.slane %v6543_v22, %v13090_v53 }
 0xd5b   :  { %v7410_v34 = vpop.f32.mrb[126].mxu0  ;;  %v7554_v28 = vpop.f32.mrb[146].mxu1  ;;  %v6528_v2 = vrot.slane %v6514_v6, %v12983_v16 }
 0xd5c   :  { %v7804_v13 = vpack.c.bf16 %v7408_v24, %v7408_v24  ;;  %v12408_v8 = vpop.f32.mrb[127].mxu0  ;;  %v12432_v21 = vpop.f32.mrb[147].mxu1 }
 0xd5d   :  { %v6638_v44 = vrot.slane %v6528_v2, %v13090_v53 }
 0xd5e   :  { %v8139_v63 = vsel %vm2715_vm4, %v7804_v13, 0  ;;  %12506 = vmatmul.mubr.msk.bf16.vlgmr.msra.gmra.mrb[152].mxu0 %vm2715_vm4, %v7794_v11  ;;  %v6550_v11 = vrot.slane %v6536_v51, %v12983_v16 }
 0xd5f   :  { %12516 = vmatpush3.bf16.xpose.msra.mxu0 %v8139_v63  ;;  %12517 = vmatprep.mubr.msk.bf16.mxu0 %vm12913_vm2, %v12912_v3 }
 0xd60   :  { %12527 = vmatprep.subr.bf16.mxu0 %v12912_v3  ;;  %v6646_v8 = vrot.slane %v6550_v11, %v13090_v53 }
 0xd61   :  { %v7499_v42 = vpop.f32.mrb[128].mxu0  ;;  %v7643_v14 = vpop.f32.mrb[148].mxu1 }
 0xd62   :  { %v7500_v35 = vadd.f32 %v7499_v42, %v6622_v52  ;;  %v14877_v26 = vadd.f32 %v7643_v14, %v6634_v47  ;;  %v12423_v61 = vpop.f32.mrb[129].mxu0  ;;  %v12447_v4 = vpop.f32.mrb[149].mxu1 }
 0xd63   :  { %v7502_v43 = vpop.f32.mrb[130].mxu0  ;;  %v7646_v62 = vpop.f32.mrb[150].mxu1 }
 0xd64   :  { %v7806_v19 = vpack.c.bf16 %v7500_v35, %v7500_v35  ;;  %v12424_v12 = vpop.f32.mrb[131].mxu0  ;;  %v12448_v45 = vpop.f32.mrb[151].mxu1 }
 0xd66   :  { %v8327_v50 = vand.u32 %v7806_v19, %v13634_v20  ;;  %12518 = vmatmul.mubr.msk.bf16.vlgmr.msra.gmra.mrb[156].mxu0 %vm2715_vm4, %v7796_v32 }
 0xd67   :  { %12529 = vmatprep.mubr.msk.bf16.mxu0 %vm12913_vm2, %v12912_v3 }
 0xd68   :  { %12528 = vmatpush3.bf16.msra.mxu0 %v8327_v50 }
 0xd69   :  { %v7591_v9 = vpop.f32.mrb[132].mxu0  ;;  %v7735_v1 = vpop.f32.mrb[152].mxu1  ;;  %12539 = vmatprep.subr.bf16.mxu0 %v12912_v3 }
 0xd6a   :  { %v14890_v18 = vadd.f32 %v7591_v9, %v6630_v15  ;;  %v14892_v0 = vadd.f32 %v7735_v1, %v6642_v17  ;;  %v12439_v49 = vpop.f32.mrb[133].mxu0  ;;  %v12463_v46 = vpop.f32.mrb[153].mxu1 }
 0xd6b   :  { %v7594_v33 = vpop.f32.mrb[134].mxu0  ;;  %v7738_v24 = vpop.f32.mrb[154].mxu1 }
 0xd6c   :  { %v12440_v31 = vpop.f32.mrb[135].mxu0  ;;  %v12464_v5 = vpop.f32.mrb[155].mxu1 }
 0xd71   :  { %v7683_v39 = vpop.f32.mrb[136].mxu0 }
 0xd72   :  { %v14896_v34 = vadd.f32 %v7683_v39, %v6638_v44  ;;  %v12455_v28 = vpop.f32.mrb[137].mxu0 }
 0xd73   :  { %v7686_v60 = vpop.f32.mrb[138].mxu0 }
 0xd74   :  { %v12456_v13 = vpop.f32.mrb[139].mxu0 }
 0xd79   :  { %v7775_v21 = vpop.f32.mrb[140].mxu0 }
 0xd7a   :  { %v14900_v52 = vadd.f32 %v7775_v21, %v6646_v8  ;;  %v12471_v63 = vpop.f32.mrb[141].mxu0 }
 0xd7b   :  { %v7778_v47 = vpop.f32.mrb[142].mxu0 }
 0xd7c   :  { %v12472_v25 = vpop.f32.mrb[143].mxu0 }
 0xe11   :  { %v7853_v30 = vpop.f32.mrb[156].mxu1 }
 0xe12   :  { %v12477_v42 = vpop.f32.mrb[157].mxu1  ;;  %v8181_v27 = vsel %vm3084_vm7, %v7853_v30, -inf }
 0xe13   :  { %8182 = vmax.xlane.f32.xlu0 %v8181_v27  ;;  %v7856_v14 = vpop.f32.mrb[158].mxu1 }
 0xe14   :  { %v12478_v35 = vpop.f32.mrb[159].mxu1 }
 0xe19   :  { %v7945_v61 = vpop.f32.mrb[160].mxu1 }
 0xe1a   :  { %v12489_v4 = vpop.f32.mrb[161].mxu1  ;;  %v8187_v48 = vsel %vm3084_vm7, %v7945_v61, -inf }
 0xe1b   :  { %8188 = vmax.xlane.f32.xlu0 %v8187_v48  ;;  %v7948_v22 = vpop.f32.mrb[162].mxu1 }
 0xe1c   :  { %v12490_v43 = vpop.f32.mrb[163].mxu1 }
 0xe21   :  { %v7899_v62 = vpop.f32.mrb[144].mxu0  ;;  %v8037_v32 = vpop.f32.mrb[164].mxu1 }
 0xe22   :  { %v12483_v19 = vpop.f32.mrb[145].mxu0  ;;  %v12501_v12 = vpop.f32.mrb[165].mxu1  ;;  %v8193_v45 = vsel %vm3084_vm7, %v8037_v32, -inf  ;;  %v8184_v50 = vsel %vm3084_vm7, %v7899_v62, -inf }
 0xe23   :  { %8194 = vmax.xlane.f32.xlu0 %v8193_v45  ;;  %v8040_v15 = vpop.f32.mrb[166].mxu1  ;;  %8185 = vmax.xlane.f32.xlu1 %v8184_v50  ;;  %v7902_v17 = vpop.f32.mrb[146].mxu0 }
 0xe24   :  { %v12484_v6 = vpop.f32.mrb[147].mxu0  ;;  %v12502_v9 = vpop.f32.mrb[167].mxu1 }
 0xe29   :  { %v7991_v1 = vpop.f32.mrb[148].mxu0  ;;  %v8129_v49 = vpop.f32.mrb[168].mxu1 }
 0xe2a   :  { %v12495_v46 = vpop.f32.mrb[149].mxu0  ;;  %v12513_v2 = vpop.f32.mrb[169].mxu1  ;;  %v8199_v33 = vsel %vm3084_vm7, %v8129_v49, -inf  ;;  %v8190_v24 = vsel %vm3084_vm7, %v7991_v1, -inf }
 0xe2b   :  { %8200 = vmax.xlane.f32.xlu0 %v8199_v33  ;;  %v8132_v31 = vpop.f32.mrb[170].mxu1  ;;  %8191 = vmax.xlane.f32.xlu1 %v8190_v24  ;;  %v7994_v5 = vpop.f32.mrb[150].mxu0 }
 0xe2c   :  { %v12496_v44 = vpop.f32.mrb[151].mxu0  ;;  %v12514_v51 = vpop.f32.mrb[171].mxu1 }
 0xe31   :  { %v8083_v39 = vpop.f32.mrb[152].mxu0 }
 0xe32   :  { %v12507_v28 = vpop.f32.mrb[153].mxu0  ;;  %v8196_v11 = vsel %vm3084_vm7, %v8083_v39, -inf }
 0xe33   :  { %8197 = vmax.xlane.f32.xlu1 %v8196_v11  ;;  %v8086_v60 = vpop.f32.mrb[154].mxu0 }
 0xe34   :  { %v12508_v13 = vpop.f32.mrb[155].mxu0 }
 0xe39   :  { %v8175_v8 = vpop.f32.mrb[156].mxu0 }
 0xe3a   :  { %v12519_v21 = vpop.f32.mrb[157].mxu0  ;;  %v8202_v63 = vsel %vm3084_vm7, %v8175_v8, -inf }
 0xe3b   :  { %8203 = vmax.xlane.f32.xlu1 %v8202_v63  ;;  %v8178_v47 = vpop.f32.mrb[158].mxu0 }
 0xe3c   :  { %v12520_v25 = vpop.f32.mrb[159].mxu0 }
 0xea0   :  { %v8183_v42 = vpop.xlane.xlu0 %8182 }
 0xea1   :  { %v8205_v27 = vsub.f32 %v7853_v30, %v8183_v42 }
 0xea3   :  { %v8213_v14 = vmul.f32 1.442695, %v8205_v27 }
 0xea5   :  { %12824 = vpow2.f32 %v8213_v14 }
 0xea8   :  { %v8189_v35 = vpop.xlane.xlu0 %8188 }
 0xea9   :  { %v8207_v4 = vsub.f32 %v7945_v61, %v8189_v35  ;;  %v7807_v35 = vpack.c.bf16 %v14861_v40, %v14861_v40  ;;  %v7809_v40 = vpack.c.bf16 %v14877_v26, %v14877_v26  ;;  %v7811_v26 = vpack.c.bf16 %v14892_v0, %v14892_v0 }
 0xeab   :  { %v8217_v48 = vmul.f32 1.442695, %v8207_v4 }
 0xead   :  { %12826 = vpow2.f32 %v8217_v48 }
 0xeaf   :  { %v12825_v22 = vpop.eup %12824 }
 0xeb0   :  { %v8195_v43 = vpop.xlane.xlu0 %8194  ;;  %v8186_v19 = vpop.xlane.xlu1 %8185  ;;  %v8229_v12 = vsel %vm3084_vm7, %v12825_v22, 0.0 }
 0xeb1   :  { %v8209_v45 = vsub.f32 %v8037_v32, %v8195_v43  ;;  %v8206_v50 = vsub.f32 %v7899_v62, %v8186_v19  ;;  %8230 = vadd.xlane.f32.xlu0 %v8229_v12  ;;  %v8373_v43 = vand.u32 %v7807_v35, %v13634_v20 }
 0xeb3   :  { %v8221_v15 = vmul.f32 1.442695, %v8209_v45  ;;  %v8215_v17 = vmul.f32 1.442695, %v8206_v50 }
 0xeb5   :  { %12828 = vpow2.f32 %v8221_v15  ;;  %v8465_v15 = vand.u32 %v7809_v40, %v13634_v20 }
 0xeb6   :  { %12830 = vpow2.f32 %v8215_v17 }
 0xeb7   :  { %v12827_v6 = vpop.eup %12826 }
 0xeb8   :  { %v8201_v30 = vpop.xlane.xlu0 %8200  ;;  %v8192_v9 = vpop.xlane.xlu1 %8191  ;;  %v8235_v46 = vsel %vm3084_vm7, %v12827_v6, 0.0 }
 0xeb9   :  { %v8211_v61 = vsub.f32 %v8129_v49, %v8201_v30  ;;  %v8208_v2 = vsub.f32 %v7991_v1, %v8192_v9  ;;  %8236 = vadd.xlane.f32.xlu0 %v8235_v46  ;;  %v7808_v46 = vpack.c.bf16 %v14890_v18, %v14890_v18 }
 0xebb   :  { %v8225_v33 = vmul.f32 1.442695, %v8211_v61  ;;  %v8219_v24 = vmul.f32 1.442695, %v8208_v2 }
 0xebd   :  { %12832 = vpow2.f32 %v8225_v33 }
 0xebe   :  { %12834 = vpow2.f32 %v8219_v24  ;;  %v8557_v24 = vand.u32 %v7811_v26, %v13634_v20 }
 0xebf   :  { %v12829_v31 = vpop.eup %12828 }
 0xec0   :  { %v12831_v32 = vpop.eup %12830  ;;  %v8198_v62 = vpop.xlane.xlu1 %8197  ;;  %v8241_v5 = vsel %vm3084_vm7, %v12829_v31, 0.0 }
 0xec1   :  { %v8210_v44 = vsub.f32 %v8083_v39, %v8198_v62  ;;  %8242 = vadd.xlane.f32.xlu0 %v8241_v5  ;;  %v8232_v51 = vsel %vm3084_vm7, %v12831_v32, 0.0  ;;  %v8419_v5 = vand.u32 %v7808_v46, %v13634_v20 }
 0xec2   :  { %8233 = vadd.xlane.f32.xlu1 %v8232_v51  ;;  %v12744_v51 = vld [vmem:[%s15586_s1 + $0x1c0] sm:$0xff]  }
 0xec3   :  { %v8223_v28 = vmul.f32 1.442695, %v8210_v44 }
 0xec5   :  { %12836 = vpow2.f32 %v8223_v28 }
 0xec7   :  { %v14914_v11 = vpop.eup %12832 }
 0xec8   :  { %v14916_v1 = vpop.eup %12834  ;;  %v8204_v49 = vpop.xlane.xlu1 %8203  ;;  %v8247_v60 = vsel %vm3084_vm7, %v14914_v11, 0.0 }
 0xec9   :  { %v8212_v13 = vsub.f32 %v8175_v8, %v8204_v49  ;;  %8248 = vadd.xlane.f32.xlu0 %v8247_v60  ;;  %v8238_v21 = vsel %vm3084_vm7, %v14916_v1, 0.0 }
 0xeca   :  { %8239 = vadd.xlane.f32.xlu1 %v8238_v21 }
 0xecb   :  { %v8227_v39 = vmul.f32 1.442695, %v8212_v13 }
 0xecd   :  { %12838 = vpow2.f32 %v8227_v39  ;;  %v8684_v39 = vsel %vm2715_vm4, %v12744_v51, 0 }
 0xecf   :  { %v14922_v63 = vpop.eup %12836 }
 0xed0   :  { %v8244_v47 = vsel %vm3084_vm7, %v14922_v63, 0.0 }
 0xed1   :  { %8245 = vadd.xlane.f32.xlu1 %v8244_v47  ;;  %v12745_v47 = vld [vmem:[%s15586_s1 + $0x1c8] sm:$0xff]  }
 0xed7   :  { %v14926_v25 = vpop.eup %12838 }
 0xed8   :  { %v8250_v42 = vsel %vm3084_vm7, %v14926_v25, 0.0 }
 0xed9   :  { %8251 = vadd.xlane.f32.xlu1 %v8250_v42 }
 0xf3e   :  { %v8231_v8 = vpop.xlane.xlu0 %8230 }
 0xf3f   :  { %12840 = vrcp.f32 %v8231_v8 }
 0xf46   :  { %v8237_v27 = vpop.xlane.xlu0 %8236 }
 0xf47   :  { %12842 = vrcp.f32 %v8237_v27  ;;  %v8687_v27 = vsel %vm2715_vm4, %v12745_v47, 0 }
 0xf49   :  { %v12841_v14 = vpop.eup %12840 }
 0xf4a   :  { %v8254_v4 = vmul.f32 %v12841_v14, %v12825_v22 }
 0xf4c   :  { %v8269_v48 = vpack.c.bf16 %v8254_v4, %v8254_v4 }
 0xf4e   :  { %12524 = vmatmul.mubr.msk.bf16.vlgmr.msra.gmra.mrb[172].mxu1 %vm3181_vm8, %v8269_v48  ;;  %v8243_v19 = vpop.xlane.xlu0 %8242 }
 0xf4f   :  { %12534 = vmatpush3.bf16.msra.mxu1 %v8373_v43  ;;  %12844 = vrcp.f32 %v8243_v19  ;;  %v8234_v12 = vpop.xlane.xlu1 %8233  ;;  %12535 = vmatprep.mubr.msk.bf16.mxu1 %vm12913_vm2, %v12912_v3 }
 0xf50   :  { %12846 = vrcp.f32 %v8234_v12  ;;  %12545 = vmatprep.subr.bf16.mxu1 %v12912_v3  ;;  %v12747_v12 = vld [vmem:[%s15586_s1 + $0x1d8] sm:$0xff]  }
 0xf51   :  { %v12843_v45 = vpop.eup %12842 }
 0xf52   :  { %v8258_v22 = vmul.f32 %v12843_v45, %v12827_v6 }
 0xf54   :  { %v8271_v50 = vpack.c.bf16 %v8258_v22, %v8258_v22  ;;  %v8789_v22 = vsel %vm2715_vm4, %v12747_v12, 0 }
 0xf56   :  { %12536 = vmatmul.mubr.msk.bf16.vlgmr.msra.gmra.mrb[176].mxu1 %vm3181_vm8, %v8271_v50  ;;  %v8249_v17 = vpop.xlane.xlu0 %8248 }
 0xf57   :  { %12546 = vmatpush3.bf16.msra.mxu1 %v8465_v15  ;;  %12848 = vrcp.f32 %v8249_v17  ;;  %v8240_v30 = vpop.xlane.xlu1 %8239  ;;  %12547 = vmatprep.mubr.msk.bf16.mxu1 %vm12913_vm2, %v12912_v3  ;;  %v12748_v17 = vld [vmem:[%s15586_s1 + $0x1e0] sm:$0xff]  }
 0xf58   :  { %12850 = vrcp.f32 %v8240_v30  ;;  %12557 = vmatprep.subr.bf16.mxu1 %v12912_v3  ;;  %v8888_v46 = vsel %vm2715_vm4, %v12748_v17, 0 }
 0xf59   :  { %v12845_v9 = vpop.eup %12844 }
 0xf5a   :  { %v12847_v6 = vpop.eup %12846  ;;  %v8262_v61 = vmul.f32 %v12845_v9, %v12829_v31  ;;  %v7810_v31 = vpack.c.bf16 %v14896_v34, %v14896_v34 }
 0xf5b   :  { %v8256_v2 = vmul.f32 %v12847_v6, %v12831_v32 }
 0xf5c   :  { %v8273_v33 = vpack.c.bf16 %v8262_v61, %v8262_v61  ;;  %v8511_v13 = vand.u32 %v7810_v31, %v13634_v20 }
 0xf5d   :  { %v8270_v62 = vpack.c.bf16 %v8256_v2, %v8256_v2 }
 0xf5e   :  { %12548 = vmatmul.mubr.msk.bf16.vlgmr.msra.gmra.mrb[180].mxu1 %vm3181_vm8, %v8273_v33  ;;  %v8246_v44 = vpop.xlane.xlu1 %8245 }
 0xf5f   :  { %12530 = vmatmul.mubr.msk.bf16.vlgmr.msra.gmra.mrb[160].mxu0 %vm3181_vm8, %v8270_v62  ;;  %12558 = vmatpush3.bf16.msra.mxu1 %v8557_v24  ;;  %12852 = vrcp.f32 %v8246_v44  ;;  %v12749_v44 = vld [vmem:[%s15586_s1 + $0x1e8] sm:$0xff]  }
 0xf60   :  { %12540 = vmatpush3.bf16.msra.mxu0 %v8419_v5  ;;  %12541 = vmatprep.mubr.msk.bf16.mxu0 %vm12913_vm2, %v12912_v3 }
 0xf61   :  { %v12849_v18 = vpop.eup %12848  ;;  %12551 = vmatprep.subr.bf16.mxu0 %v12912_v3  ;;  %12559 = vmatprep.mubr.msk.bf16.mxu1 %vm12913_vm2, %v12912_v3 }
 0xf62   :  { %v12851_v0 = vpop.eup %12850  ;;  %v8266_v32 = vmul.f32 %v12849_v18, %v14914_v11  ;;  %12569 = vmatprep.subr.bf16.mxu1 %v12912_v3  ;;  %v7812_v11 = vpack.c.bf16 %v14900_v52, %v14900_v52 }
 0xf63   :  { %v8260_v28 = vmul.f32 %v12851_v0, %v14916_v1 }
 0xf64   :  { %v8275_v49 = vpack.c.bf16 %v8266_v32, %v8266_v32  ;;  %v8603_v8 = vand.u32 %v7812_v11, %v13634_v20  ;;  %v12746_v20 = vld [vmem:[%s15586_s1 + $0x1d0] sm:$0xff]   ;;  %v8891_v32 = vsel %vm2715_vm4, %v12749_v44, 0 }
 0xf65   :  { %v8272_v60 = vpack.c.bf16 %v8260_v28, %v8260_v28  ;;  %v8786_v48 = vsel %vm2715_vm4, %v12746_v20, 0 }
 0xf66   :  { %12560 = vmatmul.mubr.msk.bf16.vlgmr.msra.gmra.mrb[184].mxu1 %vm3181_vm8, %v8275_v49  ;;  %v8252_v21 = vpop.xlane.xlu1 %8251 }
 0xf67   :  { %12542 = vmatmul.mubr.msk.bf16.vlgmr.msra.gmra.mrb[164].mxu0 %vm3181_vm8, %v8272_v60  ;;  %12854 = vrcp.f32 %v8252_v21  ;;  %12573 = vmatprep.mubr.msk.bf16.mxu1 %vm12913_vm2, %v12912_v3  ;;  %v12750_v21 = vld [vmem:[%s15586_s1 + $0x1f0] sm:$0xff]  }
 0xf68   :  { %12552 = vmatpush3.bf16.msra.mxu0 %v8511_v13  ;;  %12553 = vmatprep.mubr.msk.bf16.mxu0 %vm12913_vm2, %v12912_v3  ;;  %v8990_v11 = vsel %vm2715_vm4, %v12750_v21, 0 }
 0xf69   :  { %v12853_v34 = vpop.eup %12852  ;;  %12563 = vmatprep.subr.bf16.mxu0 %v12912_v3  ;;  %12570 = vmatpush3.bf16.xpose.msra.mxu1 %v8684_v39 }
 0xf6a   :  { %v8264_v1 = vmul.f32 %v12853_v34, %v14922_v63  ;;  %12571 = vmatprep.subr.bf16.mxu1 %v12912_v3 }
 0xf6c   :  { %v8274_v42 = vpack.c.bf16 %v8264_v1, %v8264_v1 }
 0xf6f   :  { %12554 = vmatmul.mubr.msk.bf16.vlgmr.msra.gmra.mrb[168].mxu0 %vm3181_vm8, %v8274_v42 }
 0xf70   :  { %12564 = vmatpush3.bf16.msra.mxu0 %v8603_v8  ;;  %12565 = vmatprep.mubr.msk.bf16.mxu0 %vm12913_vm2, %v12912_v3 }
 0xf71   :  { %v12855_v52 = vpop.eup %12854  ;;  %12572 = vmatpush3.bf16.xpose.msra.mxu1 %v8687_v27  ;;  %12577 = vmatprep.subr.bf16.mxu0 %v12912_v3 }
 0xf72   :  { %v8268_v63 = vmul.f32 %v12855_v52, %v14926_v25  ;;  %12585 = vmatprep.subr.bf16.mxu1 %v12912_v3 }
 0xf74   :  { %v8276_v14 = vpack.c.bf16 %v8268_v63, %v8268_v63 }
 0xf77   :  { %12566 = vmatmul.mubr.msk.bf16.vlgmr.msra.gmra.mrb[172].mxu0 %vm3181_vm8, %v8276_v14 }
 0xf78   :  { %12581 = vmatprep.mubr.msk.bf16.mxu0 %vm12913_vm2, %v12912_v3 }
 0xf79   :  { %12578 = vmatpush3.bf16.xpose.msra.mxu0 %v8684_v39 }
 0xf7a   :  { %12579 = vmatprep.subr.bf16.mxu0 %v12912_v3 }
 0xf81   :  { %12580 = vmatpush3.bf16.xpose.msra.mxu0 %v8687_v27  ;;  %v12751_v27 = vld [vmem:[%s15586_s1 + $0x1f8] sm:$0xff]  }
 0xf82   :  { %12593 = vmatprep.subr.bf16.mxu0 %v12912_v3  ;;  %v8993_v63 = vsel %vm2715_vm4, %v12751_v27, 0 }
0x1021   :  { %v8317_v35 = vpop.f32.mrb[172].mxu1 }
0x1022   :  { %v8662_v25 = vpack.c.bf16 %v8317_v35, %v8317_v35  ;;  %v12525_v4 = vpop.f32.mrb[173].mxu1 }
0x1023   :  { %v8320_v43 = vpop.f32.mrb[174].mxu1 }
0x1024   :  { %v12526_v19 = vpop.f32.mrb[175].mxu1  ;;  %12574 = vmatmul.mubr.msk.bf16.vlgmr.msra.gmra.mrb[188].mxu1 %vm2715_vm4, %v8662_v25 }
0x1025   :  { %12586 = vmatpush3.bf16.xpose.msra.mxu1 %v8786_v48  ;;  %12589 = vmatprep.mubr.msk.bf16.mxu1 %vm12913_vm2, %v12912_v3 }
0x1026   :  { %12587 = vmatprep.subr.bf16.mxu1 %v12912_v3 }
0x1029   :  { %v8409_v45 = vpop.f32.mrb[176].mxu1 }
0x102a   :  { %v12537_v40 = vpop.f32.mrb[177].mxu1  ;;  %v8664_v9 = vpack.c.bf16 %v8409_v45, %v8409_v45 }
0x102b   :  { %v8412_v50 = vpop.f32.mrb[178].mxu1 }
0x102c   :  { %v12538_v15 = vpop.f32.mrb[179].mxu1 }
0x102d   :  { %12588 = vmatpush3.bf16.xpose.msra.mxu1 %v8789_v22 }
0x102e   :  { %12601 = vmatprep.subr.bf16.mxu1 %v12912_v3 }
0x1031   :  { %v8501_v30 = vpop.f32.mrb[180].mxu1 }
0x1032   :  { %v8363_v26 = vpop.f32.mrb[160].mxu0  ;;  %v12549_v6 = vpop.f32.mrb[181].mxu1  ;;  %v8666_v39 = vpack.c.bf16 %v8501_v30, %v8501_v30 }
0x1033   :  { %v8663_v61 = vpack.c.bf16 %v8363_v26, %v8363_v26  ;;  %v12531_v2 = vpop.f32.mrb[161].mxu0  ;;  %v8504_v33 = vpop.f32.mrb[182].mxu1 }
0x1034   :  { %v8366_v24 = vpop.f32.mrb[162].mxu0  ;;  %12590 = vmatmul.mubr.msk.bf16.vlgmr.msra.gmra.mrb[192].mxu1 %vm2715_vm4, %v8664_v9  ;;  %v12550_v62 = vpop.f32.mrb[183].mxu1 }
0x1035   :  { %v12532_v5 = vpop.f32.mrb[163].mxu0  ;;  %12582 = vmatmul.mubr.msk.bf16.vlgmr.msra.gmra.mrb[176].mxu0 %vm2715_vm4, %v8663_v61  ;;  %12602 = vmatpush3.bf16.xpose.msra.mxu1 %v8888_v46 }
0x1036   :  { %12594 = vmatpush3.bf16.xpose.msra.mxu0 %v8786_v48  ;;  %12603 = vmatprep.subr.bf16.mxu1 %v12912_v3 }
0x1037   :  { %12595 = vmatprep.subr.bf16.mxu0 %v12912_v3  ;;  %12597 = vmatprep.mubr.msk.bf16.mxu0 %vm12913_vm2, %v12912_v3 }
0x1038   :  { %12605 = vmatprep.mubr.msk.bf16.mxu1 %vm12913_vm2, %v12912_v3 }
0x1039   :  { %v8593_v18 = vpop.f32.mrb[184].mxu1 }
0x103a   :  { %v8455_v0 = vpop.f32.mrb[164].mxu0  ;;  %v12561_v31 = vpop.f32.mrb[185].mxu1  ;;  %v8668_v25 = vpack.c.bf16 %v8593_v18, %v8593_v18 }
0x103b   :  { %v12543_v51 = vpop.f32.mrb[165].mxu0  ;;  %v8596_v28 = vpop.f32.mrb[186].mxu1  ;;  %v8665_v1 = vpack.c.bf16 %v8455_v0, %v8455_v0 }
0x103c   :  { %v8458_v49 = vpop.f32.mrb[166].mxu0  ;;  %v12562_v60 = vpop.f32.mrb[187].mxu1 }
0x103d   :  { %v12544_v13 = vpop.f32.mrb[167].mxu0  ;;  %12604 = vmatpush3.bf16.xpose.msra.mxu1 %v8891_v32 }
0x103e   :  { %12596 = vmatpush3.bf16.xpose.msra.mxu0 %v8789_v22  ;;  %12617 = vmatprep.subr.bf16.mxu1 %v12912_v3 }
0x103f   :  { %12609 = vmatprep.subr.bf16.mxu0 %v12912_v3 }
0x1042   :  { %v8547_v34 = vpop.f32.mrb[168].mxu0 }
0x1043   :  { %v12555_v47 = vpop.f32.mrb[169].mxu0  ;;  %v8667_v4 = vpack.c.bf16 %v8547_v34, %v8547_v34 }
0x1044   :  { %v8550_v42 = vpop.f32.mrb[170].mxu0  ;;  %12606 = vmatmul.mubr.msk.bf16.vlgmr.msra.gmra.mrb[196].mxu1 %vm2715_vm4, %v8666_v39 }
0x1045   :  { %12598 = vmatmul.mubr.msk.bf16.vlgmr.msra.gmra.mrb[180].mxu0 %vm2715_vm4, %v8665_v1  ;;  %v12556_v8 = vpop.f32.mrb[171].mxu0  ;;  %12618 = vmatpush3.bf16.xpose.msra.mxu1 %v8990_v11 }
0x1046   :  { %12610 = vmatpush3.bf16.xpose.msra.mxu0 %v8888_v46  ;;  %12619 = vmatprep.subr.bf16.mxu1 %v12912_v3 }
0x1047   :  { %12611 = vmatprep.subr.bf16.mxu0 %v12912_v3  ;;  %12613 = vmatprep.mubr.msk.bf16.mxu0 %vm12913_vm2, %v12912_v3 }
0x1048   :  { %12621 = vmatprep.mubr.msk.bf16.mxu1 %vm12913_vm2, %v12912_v3 }
0x104a   :  { %v8639_v52 = vpop.f32.mrb[172].mxu0 }
0x104b   :  { %v12567_v14 = vpop.f32.mrb[173].mxu0  ;;  %v8669_v48 = vpack.c.bf16 %v8639_v52, %v8639_v52 }
0x104c   :  { %v8642_v20 = vpop.f32.mrb[174].mxu0 }
0x104d   :  { %v12568_v35 = vpop.f32.mrb[175].mxu0  ;;  %12620 = vmatpush3.bf16.xpose.msra.mxu1 %v8993_v63 }
0x104e   :  { %12612 = vmatpush3.bf16.xpose.msra.mxu0 %v8891_v32  ;;  %12633 = vmatprep.subr.bf16.mxu1 %v12912_v3  ;;  %v11595_v32 = vld [vmem:[%s15589_s4 + $0x1c] ss:$0 sm:$0xff] }
0x104f   :  { %12625 = vmatprep.subr.bf16.mxu0 %v12912_v3 }
0x1054   :  { %12622 = vmatmul.mubr.msk.bf16.vlgmr.msra.gmra.mrb[200].mxu1 %vm2715_vm4, %v8668_v25 }
0x1055   :  { %12614 = vmatmul.mubr.msk.bf16.vlgmr.msra.gmra.mrb[184].mxu0 %vm2715_vm4, %v8667_v4  ;;  %12637 = vmatprep.mubr.msk.bf16.mxu1 %vm12913_vm2, %v12912_v3 }
0x1056   :  { %12626 = vmatpush3.bf16.xpose.msra.mxu0 %v8990_v11  ;;  %12629 = vmatprep.mubr.msk.bf16.mxu0 %vm12913_vm2, %v12912_v3 }
0x1057   :  { %12627 = vmatprep.subr.bf16.mxu0 %v12912_v3 }
0x105e   :  { %12628 = vmatpush3.bf16.xpose.msra.mxu0 %v8993_v63 }
0x105f   :  { %12641 = vmatprep.subr.bf16.mxu0 %v12912_v3 }
0x1065   :  { %12630 = vmatmul.mubr.msk.bf16.vlgmr.msra.gmra.mrb[188].mxu0 %vm2715_vm4, %v8669_v48 }
0x1066   :  { %12649 = vmatprep.mubr.msk.bf16.mxu0 %vm12913_vm2, %v12912_v3 }
0x10f7   :  { %v8723_v43 = vpop.f32.mrb[188].mxu1 }
0x10f8   :  { %v12575_v19 = vpop.f32.mrb[189].mxu1 }
0x10f9   :  { %v8726_v12 = vpop.f32.mrb[190].mxu1 }
0x10fa   :  { %v12576_v45 = vpop.f32.mrb[191].mxu1 }
0x1107   :  { %v8825_v40 = vpop.f32.mrb[192].mxu1 }
0x1108   :  { %v9078_v22 = vadd.f32 %v8825_v40, %v8723_v43  ;;  %v8766_v50 = vpop.f32.mrb[176].mxu0  ;;  %v12591_v15 = vpop.f32.mrb[193].mxu1 }
0x1109   :  { %v12583_v17 = vpop.f32.mrb[177].mxu0  ;;  %v8828_v30 = vpop.f32.mrb[194].mxu1 }
0x110a   :  { %v8769_v9 = vpop.f32.mrb[178].mxu0  ;;  %v12592_v26 = vpop.f32.mrb[195].mxu1 }
0x110b   :  { %v12584_v6 = vpop.f32.mrb[179].mxu0 }
0x1117   :  { %v8927_v46 = vpop.f32.mrb[196].mxu1 }
0x1118   :  { %v8868_v61 = vpop.f32.mrb[180].mxu0  ;;  %v9080_v2 = vadd.f32 %v9078_v22, %v8927_v46  ;;  %v12607_v33 = vpop.f32.mrb[197].mxu1 }
0x1119   :  { %v9079_v24 = vadd.f32 %v8868_v61, %v8766_v50  ;;  %v12599_v62 = vpop.f32.mrb[181].mxu0  ;;  %v8930_v5 = vpop.f32.mrb[198].mxu1 }
0x111a   :  { %v8871_v44 = vpop.f32.mrb[182].mxu0  ;;  %v12608_v18 = vpop.f32.mrb[199].mxu1 }
0x111b   :  { %v12600_v0 = vpop.f32.mrb[183].mxu0 }
0x1127   :  { %v9029_v31 = vpop.f32.mrb[200].mxu1 }
0x1128   :  { %v8970_v51 = vpop.f32.mrb[184].mxu0  ;;  %v9082_v28 = vadd.f32 %v9080_v2, %v9029_v31  ;;  %v12623_v49 = vpop.f32.mrb[201].mxu1 }
0x1129   :  { %v9081_v60 = vadd.f32 %v9079_v24, %v8970_v51  ;;  %v12615_v13 = vpop.f32.mrb[185].mxu0  ;;  %v9032_v21 = vpop.f32.mrb[202].mxu1 }
0x112a   :  { %v9089_v39 = vadd.f32 %v11595_v32, %v9082_v28  ;;  %v8973_v34 = vpop.f32.mrb[186].mxu0  ;;  %v12624_v11 = vpop.f32.mrb[203].mxu1 }
0x112b   :  { %v12616_v1 = vpop.f32.mrb[187].mxu0 }
0x112c   :  { %v9093_v47 = vcombine.high %v9089_v39, %v9089_v39  ;;  %v9100_v42 = vrot.slane %v9089_v39, %v12983_v16 }
0x112e   :  { %v9107_v8 = vrot.slane %v9093_v47, %v12983_v16  ;;  %v9108_v27 = vcombine.high %v9100_v42, %v9100_v42  ;;  %v9115_v52 = vrot.slane %v9100_v42, %v12983_v16 }
0x1130   :  { %v9122_v63 = vrot.slane %v9107_v8, %v12983_v16  ;;  %v9129_v14 = vrot.slane %v9108_v27, %v12983_v16  ;;  %v9130_v20 = vcombine.high %v9115_v52, %v9115_v52  ;;  %v15063_v25 = vadd.f32 %v9115_v52, %v14281_v29 }
0x1132   :  { %v9131_v35 = vcombine.high %v9129_v14, %v9129_v14  ;;  %v15066_v4 = vadd.f32 %v9129_v14, %v14278_v59  ;;  %v15069_v48 = vadd.f32 %v9130_v20, %v14284_v37  ;;  %v15075_v19 = vadd.f32 %v9122_v63, %v14287_v23 }
0x1134   :  { %v15072_v43 = vadd.f32 %v9131_v35, %v14291_v10  ;;  %v9203_v12 = vcombine.low %v15063_v25, %v15066_v4  ;;  %v9225_v37 = vrot.slane %v15075_v19, %v12983_v16 }
0x1136   :  { %v9204_v45 = vcombine.low %v15069_v48, %v15072_v43  ;;  %v9211_v40 = vrot.slane %v9203_v12, %v12983_v16  ;;  %v9240_v9 = vrot.slane %v9225_v37, %v12983_v16 }
0x1138   :  { %v9072_v29 = vpop.f32.mrb[188].mxu0  ;;  %v9218_v59 = vrot.slane %v9204_v45, %v12983_v16 }
0x1139   :  { %v9083_v22 = vadd.f32 %v9081_v60, %v9072_v29  ;;  %v12631_v10 = vpop.f32.mrb[189].mxu0 }
0x113a   :  { %v9075_v50 = vpop.f32.mrb[190].mxu0  ;;  %v9226_v15 = vcombine.low %v9211_v40, %v9218_v59 }
0x113b   :  { %v9090_v23 = vadd.f32 %v11595_v32, %v9083_v22  ;;  %v12632_v17 = vpop.f32.mrb[191].mxu0 }
0x113c   :  { %v9233_v30 = vrot.slane %v9226_v15, %v12983_v16 }
0x113d   :  { %v9132_v26 = vcombine.high %v9090_v23, %v9090_v23  ;;  %v9139_v6 = vrot.slane %v9090_v23, %v12983_v16 }
0x113e   :  { %v9241_v46 = vcombine.low %v9233_v30, %v9240_v9 }
0x113f   :  { %v9146_v61 = vrot.slane %v9132_v26, %v12983_v16  ;;  %v9147_v2 = vcombine.high %v9139_v6, %v9139_v6  ;;  %v9154_v33 = vrot.slane %v9139_v6, %v12983_v16 }
0x1140   :  { %v9283_v24 = vsel %vm559_vm1, %v9241_v46, 0.0 }
0x1141   :  { %v9161_v62 = vrot.slane %v9146_v61, %v12983_v16  ;;  %v9168_v5 = vrot.slane %v9147_v2, %v12983_v16  ;;  %v9169_v44 = vcombine.high %v9154_v33, %v9154_v33  ;;  %9284 = vadd.xlane.f32.xlu0 %v9283_v24  ;;  %v15094_v0 = vadd.f32 %v9154_v33, %v14294_v38 }
0x1143   :  { %v9170_v18 = vcombine.high %v9168_v5, %v9168_v5  ;;  %v15097_v31 = vadd.f32 %v9168_v5, %v14297_v57  ;;  %v15100_v32 = vadd.f32 %v9169_v44, %v14305_v41  ;;  %v15106_v28 = vadd.f32 %v9161_v62, %v14308_v36 }
0x1145   :  { %v15103_v51 = vadd.f32 %v9170_v18, %v14300_v7  ;;  %v9242_v49 = vcombine.low %v15094_v0, %v15097_v31  ;;  %v9264_v41 = vrot.slane %v15106_v28, %v12983_v16 }
0x1147   :  { %v9243_v60 = vcombine.low %v15100_v32, %v15103_v51  ;;  %v9250_v38 = vrot.slane %v9242_v49, %v12983_v16  ;;  %v9279_v21 = vrot.slane %v9264_v41, %v12983_v16 }
0x1149   :  { %v9257_v57 = vrot.slane %v9243_v60, %v12983_v16 }
0x114b   :  { %v9265_v13 = vcombine.low %v9250_v38, %v9257_v57 }
0x114d   :  { %v9272_v7 = vrot.slane %v9265_v13, %v12983_v16 }
0x114f   :  { %v9280_v36 = vcombine.low %v9272_v7, %v9279_v21 }
0x1151   :  { %v9286_v39 = vsel %vm559_vm1, %v9280_v36, 0.0 }
0x1152   :  { %9287 = vadd.xlane.f32.xlu1 %v9286_v39 }
0x11ce   :  { %v9285_v34 = vpop.xlane.xlu0 %9284 }
0x11cf   :  { %v9289_v11 = vmul.f32 0.03125, %v9285_v34 }
0x11d1   :  { %v9296_v1 = vrot.slane %v9289_v11, %v13090_v53  ;;  %v9300_v47 = vrot.slane %v9289_v11, %v13093_v54  ;;  %v9304_v42 = vrot.slane %v9289_v11, %v13096_v55  ;;  %v9308_v8 = vrot.slane %v9289_v11, %v13099_v56 }
0x11d2   :  { %v9312_v27 = vrot.slane %v9289_v11, %v13102_v58 }
0x11d3   :  { %v15125_v52 = vsub.f32 %v15063_v25, %v9296_v1  ;;  %v15128_v63 = vsub.f32 %v15066_v4, %v9300_v47  ;;  %v15131_v14 = vsub.f32 %v15069_v48, %v9304_v42  ;;  %v15134_v20 = vsub.f32 %v15072_v43, %v9308_v8 }
0x11d4   :  { %v15137_v35 = vsub.f32 %v15075_v19, %v9312_v27 }
0x11d5   :  { %v9353_v12 = vmul.f32 %v15125_v52, %v15125_v52  ;;  %v9354_v45 = vmul.f32 %v15128_v63, %v15128_v63  ;;  %v9355_v29 = vmul.f32 %v15131_v14, %v15131_v14  ;;  %v9356_v40 = vmul.f32 %v15134_v20, %v15134_v20 }
0x11d6   :  { %v9357_v59 = vmul.f32 %v15137_v35, %v15137_v35 }
0x11d7   :  { %v9373_v37 = vcombine.low %v9353_v12, %v9354_v45  ;;  %v9374_v22 = vcombine.low %v9355_v29, %v9356_v40  ;;  %v12752_v12 = vld [vmem:[%s15587_s2 + $0x40] sm:$0xff]   ;;  %v12753_v45 = vld [vmem:[%s15587_s2 + $0x48] sm:$0xff]  }
0x11d8   :  { %v9395_v15 = vrot.slane %v9357_v59, %v12983_v16  ;;  %12634 = vmatpush3.bf16.msra.mxu1 %v12752_v12  ;;  %v11596_v59 = vld [vmem:[%s15589_s4 + $0x1a] ss:$0 sm:$0xff] }
0x11d9   :  { %v9381_v10 = vrot.slane %v9373_v37, %v12983_v16  ;;  %v9388_v50 = vrot.slane %v9374_v22, %v12983_v16  ;;  %12635 = vmatprep.subr.bf16.mxu1 %v12912_v3  ;;  %v11597_v22 = vld [vmem:[%s15589_s4 + $0x1b] ss:$0 sm:$0xff] }
0x11da   :  { %v9410_v30 = vrot.slane %v9395_v15, %v12983_v16  ;;  %v9532_v15 = vcombine.high %v11596_v59, %v11596_v59 }
0x11db   :  { %v9396_v23 = vcombine.low %v9381_v10, %v9388_v50  ;;  %v9539_v10 = vrot.slane %v11596_v59, %v12983_v16  ;;  %v9598_v50 = vrot.slane %v11597_v22, %v12983_v16 }
0x11dc   :  { %12636 = vmatpush3.bf16.msra.mxu1 %v12753_v45 }
0x11dd   :  { %v9403_v17 = vrot.slane %v9396_v23, %v12983_v16  ;;  %12653 = vmatprep.subr.bf16.mxu1 %v12912_v3  ;;  %v9547_v23 = vcombine.high %v9539_v10, %v9539_v10 }
0x11df   :  { %v9288_v9 = vpop.xlane.xlu1 %9287  ;;  %v9411_v26 = vcombine.low %v9403_v17, %v9410_v30  ;;  %v9554_v17 = vrot.slane %v9539_v10, %v12983_v16  ;;  %v9606_v30 = vcombine.high %v9598_v50, %v9598_v50 }
0x11e0   :  { %v9290_v6 = vmul.f32 0.03125, %v9288_v9  ;;  %v9546_v9 = vrot.slane %v9532_v15, %v12983_v16 }
0x11e1   :  { %v9453_v46 = vsel %vm559_vm1, %v9411_v26, 0.0  ;;  %v9568_v26 = vrot.slane %v9547_v23, %v12983_v16 }
0x11e2   :  { %v9316_v61 = vrot.slane %v9290_v6, %v13090_v53  ;;  %v9320_v2 = vrot.slane %v9290_v6, %v13093_v54  ;;  %v9324_v33 = vrot.slane %v9290_v6, %v13096_v55  ;;  %v9328_v24 = vrot.slane %v9290_v6, %v13099_v56  ;;  %9454 = vadd.xlane.f32.xlu0 %v9453_v46 }
0x11e3   :  { %v9332_v62 = vrot.slane %v9290_v6, %v13102_v58  ;;  %v9613_v6 = vrot.slane %v9598_v50, %v12983_v16 }
0x11e4   :  { %v15161_v5 = vsub.f32 %v15094_v0, %v9316_v61  ;;  %v15164_v44 = vsub.f32 %v15097_v31, %v9320_v2  ;;  %v15167_v18 = vsub.f32 %v15100_v32, %v9324_v33  ;;  %v15170_v49 = vsub.f32 %v15103_v51, %v9328_v24 }
0x11e5   :  { %v15173_v60 = vsub.f32 %v15106_v28, %v9332_v62  ;;  %v9569_v61 = vcombine.high %v9554_v17, %v9554_v17  ;;  %v9591_v2 = vcombine.high %v11597_v22, %v11597_v22  ;;  %v9627_v33 = vrot.slane %v9606_v30, %v12983_v16 }
0x11e6   :  { %v9358_v38 = vmul.f32 %v15161_v5, %v15161_v5  ;;  %v9359_v57 = vmul.f32 %v15164_v44, %v15164_v44  ;;  %v9360_v41 = vmul.f32 %v15167_v18, %v15167_v18  ;;  %v9361_v13 = vmul.f32 %v15170_v49, %v15170_v49 }
0x11e7   :  { %v9362_v7 = vmul.f32 %v15173_v60, %v15173_v60 }
0x11e8   :  { %v9412_v21 = vcombine.low %v9358_v38, %v9359_v57  ;;  %v9413_v36 = vcombine.low %v9360_v41, %v9361_v13 }
0x11e9   :  { %v9434_v11 = vrot.slane %v9362_v7, %v12983_v16  ;;  %v9561_v7 = vrot.slane %v9546_v9, %v12983_v16 }
0x11ea   :  { %v9420_v39 = vrot.slane %v9412_v21, %v12983_v16  ;;  %v9427_v34 = vrot.slane %v9413_v36, %v12983_v16  ;;  %v9570_v21 = vcombine.high %v9568_v26, %v9568_v26  ;;  %v9628_v36 = vcombine.high %v9613_v6, %v9613_v6 }
0x11eb   :  { %v9449_v42 = vrot.slane %v9434_v11, %v12983_v16 }
0x11ec   :  { %v9435_v1 = vcombine.low %v9420_v39, %v9427_v34 }
0x11ee   :  { %v9442_v47 = vrot.slane %v9435_v1, %v12983_v16 }
0x11f0   :  { %v9450_v8 = vcombine.low %v9442_v47, %v9449_v42 }
0x11f2   :  { %v9456_v27 = vsel %vm559_vm1, %v9450_v8, 0.0  ;;  %v9605_v8 = vrot.slane %v9591_v2, %v12983_v16 }
0x11f3   :  { %9457 = vadd.xlane.f32.xlu1 %v9456_v27  ;;  %v9629_v27 = vcombine.high %v9627_v33, %v9627_v33 }
0x126f   :  { %v9455_v29 = vpop.xlane.xlu0 %9454 }
0x1270   :  { %v9459_v40 = vmul.f32 0.03125, %v9455_v29 }
0x1272   :  { %v9461_v37 = vadd.f32 1e-12, %v9459_v40 }
0x1274   :  { %12856 = vrsqrt.f32 %v9461_v37 }
0x127e   :  { %v12857_v46 = vpop.eup %12856 }
0x127f   :  { %v9470_v24 = vrot.slane %v12857_v46, %v13090_v53  ;;  %v9474_v62 = vrot.slane %v12857_v46, %v13093_v54  ;;  %v9478_v38 = vrot.slane %v12857_v46, %v13096_v55  ;;  %v9482_v57 = vrot.slane %v12857_v46, %v13099_v56 }
0x1280   :  { %v9458_v41 = vpop.xlane.xlu1 %9457  ;;  %v9486_v13 = vrot.slane %v12857_v46, %v13102_v58 }
0x1281   :  { %v9460_v39 = vmul.f32 0.03125, %v9458_v41  ;;  %v9517_v34 = vmul.f32 %v9470_v24, %v15125_v52  ;;  %v9518_v11 = vmul.f32 %v9474_v62, %v15128_v63  ;;  %v9519_v1 = vmul.f32 %v9478_v38, %v15131_v14 }
0x1282   :  { %v9520_v47 = vmul.f32 %v9482_v57, %v15134_v20  ;;  %v9521_v42 = vmul.f32 %v9486_v13, %v15137_v35  ;;  %v9620_v14 = vrot.slane %v9605_v8, %v12983_v16 }
0x1283   :  { %v9462_v12 = vadd.f32 1e-12, %v9460_v39  ;;  %v9576_v45 = vmul.f32 %v9554_v17, %v9517_v34  ;;  %v9577_v29 = vmul.f32 %v9568_v26, %v9518_v11  ;;  %v9578_v40 = vmul.f32 %v9569_v61, %v9519_v1 }
0x1284   :  { %v9579_v59 = vmul.f32 %v9570_v21, %v9520_v47  ;;  %v9580_v63 = vmul.f32 %v9561_v7, %v9521_v42 }
0x1285   :  { %12858 = vrsqrt.f32 %v9462_v12  ;;  %v9635_v37 = vadd.f32 %v9613_v6, %v9576_v45  ;;  %v9636_v22 = vadd.f32 %v9627_v33, %v9577_v29  ;;  %v9637_v52 = vadd.f32 %v9628_v36, %v9578_v40 }
0x1286   :  { %v9638_v10 = vadd.f32 %v9629_v27, %v9579_v59  ;;  %v9639_v23 = vadd.f32 %v9620_v14, %v9580_v63 }
0x1287   :  { %v9655_v50 = vcombine.low %v9635_v37, %v9636_v22 }
0x1288   :  { %v9656_v20 = vcombine.low %v9637_v52, %v9638_v10  ;;  %v9677_v46 = vrot.slane %v9639_v23, %v12983_v16 }
0x1289   :  { %v9663_v35 = vrot.slane %v9655_v50, %v12983_v16 }
0x128a   :  { %v9670_v15 = vrot.slane %v9656_v20, %v12983_v16  ;;  %v9692_v47 = vrot.slane %v9677_v46, %v12983_v16 }
0x128c   :  { %v9678_v30 = vcombine.low %v9663_v35, %v9670_v15 }
0x128e   :  { %v9685_v41 = vrot.slane %v9678_v30, %v12983_v16 }
0x128f   :  { %v12859_v9 = vpop.eup %12858 }
0x1290   :  { %v9490_v2 = vrot.slane %v12859_v9, %v13090_v53  ;;  %v9494_v24 = vrot.slane %v12859_v9, %v13093_v54  ;;  %v9498_v62 = vrot.slane %v12859_v9, %v13096_v55  ;;  %v9502_v38 = vrot.slane %v12859_v9, %v13099_v56 }
0x1291   :  { %v9506_v57 = vrot.slane %v12859_v9, %v13102_v58  ;;  %v9693_v40 = vcombine.low %v9685_v41, %v9692_v47  ;;  %v12754_v47 = vld [vmem:[%s15587_s2 + $0x60] sm:$0xff]  }
0x1292   :  { %v9522_v13 = vmul.f32 %v9490_v2, %v15161_v5  ;;  %v9523_v39 = vmul.f32 %v9494_v24, %v15164_v44  ;;  %v9524_v34 = vmul.f32 %v9498_v62, %v15167_v18  ;;  %v9525_v11 = vmul.f32 %v9502_v38, %v15170_v49  ;;  %12642 = vmatpush3.bf16.msra.mxu0 %v12754_v47 }
0x1293   :  { %v9526_v1 = vmul.f32 %v9506_v57, %v15173_v60  ;;  %v9735_v18 = vpack.c.bf16 %v9693_v40, %v9693_v40  ;;  %12643 = vmatprep.subr.bf16.mxu0 %v12912_v3 }
0x1294   :  { %v9581_v42 = vmul.f32 %v9554_v17, %v9522_v13  ;;  %v9582_v8 = vmul.f32 %v9568_v26, %v9523_v39  ;;  %v9583_v12 = vmul.f32 %v9569_v61, %v9524_v34  ;;  %v9584_v45 = vmul.f32 %v9570_v21, %v9525_v11 }
0x1295   :  { %v9585_v29 = vmul.f32 %v9561_v7, %v9526_v1  ;;  %v9764_v26 = vrot.slane %v9735_v18, %v12983_v16 }
0x1296   :  { %v9640_v59 = vadd.f32 %v9613_v6, %v9581_v42  ;;  %v9641_v37 = vadd.f32 %v9627_v33, %v9582_v8  ;;  %v9642_v22 = vadd.f32 %v9628_v36, %v9583_v12  ;;  %v9643_v5 = vadd.f32 %v9629_v27, %v9584_v45  ;;  %v12755_v42 = vld [vmem:[%s15587_s2 + $0x68] sm:$0xff]   ;;  %v12756_v8 = vld [vmem:[%s15587_s2 + $0x70] sm:$0xff]   ;;  %v12757_v12 = vld [vmem:[%s15587_s2 + $0x78] sm:$0xff]  }
0x1297   :  { %v9644_v52 = vadd.f32 %v9620_v14, %v9585_v29  ;;  %v9765_v7 = vcombine.high %v9764_v26, %v9764_v26  ;;  %v9772_v36 = vrot.slane %v9764_v26, %v12983_v16  ;;  %12644 = vmatpush3.bf16.msra.mxu0 %v12755_v42  ;;  %v11610_v45 = vld [vmem:[%s15589_s4 + $0x1e] ss:$0 sm:$0xff] }
0x1298   :  { %v9694_v44 = vcombine.low %v9640_v59, %v9641_v37  ;;  %v9695_v10 = vcombine.low %v9642_v22, %v9643_v5  ;;  %12645 = vmatprep.subr.bf16.mxu0 %v12912_v3  ;;  %v9815_v29 = vcombine.high %v11610_v45, %v11610_v45  ;;  %v9822_v40 = vrot.slane %v11610_v45, %v12983_v16 }
0x1299   :  { %v9716_v63 = vrot.slane %v9644_v52, %v12983_v16  ;;  %v9779_v14 = vrot.slane %v9765_v7, %v12983_v16  ;;  %v9780_v35 = vcombine.high %v9772_v36, %v9772_v36 }
0x129a   :  { %v9702_v49 = vrot.slane %v9694_v44, %v12983_v16  ;;  %v9709_v60 = vrot.slane %v9695_v10, %v12983_v16  ;;  %v9829_v59 = vrot.slane %v9815_v29, %v12983_v16  ;;  %v9830_v37 = vcombine.high %v9822_v40, %v9822_v40 }
0x129b   :  { %v9731_v6 = vrot.slane %v9716_v63, %v12983_v16  ;;  %v9859_v30 = vcombine.low %v9772_v36, %v9779_v14  ;;  %12646 = vmatpush3.bf16.msra.mxu0 %v12756_v8  ;;  %v9837_v22 = vrot.slane %v9822_v40, %v12983_v16 }
0x129c   :  { %v9717_v17 = vcombine.low %v9702_v49, %v9709_v60  ;;  %12647 = vmatprep.subr.bf16.mxu0 %v12912_v3  ;;  %v9844_v5 = vrot.slane %v9829_v59, %v12983_v16  ;;  %v9851_v52 = vrot.slane %v9830_v37, %v12983_v16 }
0x129d   :  { %v9867_v57 = vrot.slane %v9859_v30, %v12983_v16  ;;  %v9852_v44 = vcombine.high %v9837_v22, %v9837_v22 }
0x129e   :  { %v9724_v61 = vrot.slane %v9717_v17, %v12983_v16  ;;  %v9910_v10 = vcombine.low %v9837_v22, %v9851_v52  ;;  %v11616_v18 = vcombine.high %v9837_v22, %v9851_v52  ;;  %v9912_v49 = vcombine.low %v9844_v5, %v9837_v22 }
0x129f   :  { %12648 = vmatpush3.bf16.msra.mxu0 %v12757_v12  ;;  %v9913_v60 = vcombine.low %v9851_v52, %v9852_v44 }
0x12a0   :  { %v9732_v33 = vcombine.low %v9724_v61, %v9731_v6  ;;  %v9920_v63 = vrot.slane %v9910_v10, %v12983_v16  ;;  %v9927_v17 = vrot.slane %v11616_v18, %v12983_v16  ;;  %v9934_v26 = vrot.slane %v9912_v49, %v12983_v16 }
0x12a1   :  { %v9941_v61 = vrot.slane %v9913_v60, %v12983_v16  ;;  %v9853_v6 = vcombine.high %v9851_v52, %v9851_v52 }
0x12a2   :  { %v9736_v21 = vpack.c.bf16 %v9732_v33, %v9732_v33  ;;  %v9942_v33 = vcombine.low %v9920_v63, %v9927_v17 }
0x12a3   :  { %v9943_v7 = vcombine.low %v9934_v26, %v9941_v61 }
0x12a4   :  { %v9787_v27 = vrot.slane %v9736_v21, %v12983_v16  ;;  %v9959_v21 = vcombine.low %v9853_v6, %v9844_v5  ;;  %v9950_v36 = vrot.slane %v9942_v33, %v12983_v16 }
0x12a6   :  { %v9788_v50 = vcombine.high %v9787_v27, %v9787_v27  ;;  %v9795_v20 = vrot.slane %v9787_v27, %v12983_v16  ;;  %v9957_v27 = vrot.slane %v9943_v7, %v12983_v16  ;;  %v9966_v14 = vrot.slane %v9959_v21, %v12983_v16 }
0x12a8   :  { %v9802_v15 = vrot.slane %v9788_v50, %v12983_v16  ;;  %v9810_v23 = vunpack.i.h.s16 %v9795_v20  ;;  %v9803_v9 = vcombine.high %v9795_v20, %v9795_v20  ;;  %v11611_v2 = vpack.i.b16 %v9795_v20, %v9780_v35 }
0x12a9   :  { %v9958_v50 = vcombine.low %v9950_v36, %v9957_v27  ;;  %v9973_v20 = vrot.slane %v9966_v14, %v12983_v16 }
0x12aa   :  { %v9812_v46 = vunpack.i.h.s16 %v9802_v15  ;;  %v11612_v24 = vpack.i.b16 %v9802_v15, %v9810_v23 }
0x12ac   :  { %v11613_v62 = vpack.i.b16 %v9803_v9, %v9812_v46  ;;  %v9860_v38 = vcombine.low %v11611_v2, %v11612_v24 }
0x12ae   :  { %v9874_v41 = vrot.slane %v9860_v38, %v12983_v16  ;;  %v9881_v13 = vrot.slane %v11613_v62, %v12983_v16 }
0x12b0   :  { %v9882_v39 = vcombine.low %v9867_v57, %v9874_v41  ;;  %v9896_v11 = vrot.slane %v9881_v13, %v12983_v16 }
0x12b2   :  { %v9889_v34 = vrot.slane %v9882_v39, %v12983_v16 }
0x12b4   :  { %v9897_v1 = vcombine.low %v9889_v34, %v9896_v11 }
0x12b6   :  { %12638 = vmatmul.mubr.msk.bf16.vlgmr.msra.gmra.mrb[204].mxu1 %vm1584_vm3, %v9897_v1 }
0x12b7   :  { %12657 = vmatprep.mubr.msk.bf16.mxu1 %vm12913_vm2, %v12912_v3 }
0x1389   :  { %v10013_v35 = vpop.f32.mrb[204].mxu1 }
0x138a   :  { %v10014_v15 = vadd.f32 %v10013_v35, %v9958_v50  ;;  %v12639_v23 = vpop.f32.mrb[205].mxu1 }
0x138b   :  { %v10016_v30 = vpop.f32.mrb[206].mxu1 }
0x138c   :  { %v10022_v9 = vcombine.high %v10014_v15, %v10014_v15  ;;  %v10029_v46 = vrot.slane %v10014_v15, %v12983_v16  ;;  %v10017_v2 = vadd.f32 %v10016_v30, %v9973_v20  ;;  %v12640_v24 = vpop.f32.mrb[207].mxu1 }
0x138e   :  { %v10036_v62 = vrot.slane %v10022_v9, %v12983_v16  ;;  %v10037_v38 = vcombine.high %v10029_v46, %v10029_v46  ;;  %v15293_v57 = vrot.slane %v10029_v46, %v12983_v16  ;;  %v10077_v41 = vrot.slane %v10017_v2, %v12983_v16 }
0x1390   :  { %v10038_v13 = vcombine.high %v10036_v62, %v10036_v62  ;;  %v15297_v39 = vrot.slane %v10036_v62, %v12983_v16  ;;  %v15300_v34 = vrot.slane %v10037_v38, %v12983_v16  ;;  %v15304_v11 = vcombine.high %v15293_v57, %v15293_v57 }
0x1391   :  { %v10103_v1 = vmul.f32 %v15293_v57, %v15293_v57  ;;  %v10078_v47 = vcombine.high %v10077_v41, %v10077_v41  ;;  %v15309_v42 = vrot.slane %v10077_v41, %v12983_v16 }
0x1392   :  { %v15312_v8 = vrot.slane %v10038_v13, %v12983_v16  ;;  %v15316_v12 = vcombine.high %v15297_v39, %v15297_v39  ;;  %v15320_v45 = vcombine.high %v15300_v34, %v15300_v34  ;;  %v10104_v29 = vmul.f32 %v15300_v34, %v15300_v34 }
0x1393   :  { %v10105_v40 = vmul.f32 %v15304_v11, %v15304_v11  ;;  %v10107_v59 = vmul.f32 %v15297_v39, %v15297_v39  ;;  %v10113_v37 = vmul.f32 %v10103_v1, %v15293_v57  ;;  %v15330_v22 = vrot.slane %v10078_v47, %v12983_v16 }
0x1394   :  { %v15334_v5 = vcombine.high %v15312_v8, %v15312_v8  ;;  %v10106_v52 = vmul.f32 %v15320_v45, %v15320_v45  ;;  %v10108_v44 = vmul.f32 %v15312_v8, %v15312_v8  ;;  %v10109_v10 = vmul.f32 %v15316_v12, %v15316_v12 }
0x1395   :  { %v10114_v18 = vmul.f32 %v10104_v29, %v15300_v34  ;;  %v10115_v49 = vmul.f32 %v10105_v40, %v15304_v11  ;;  %v10117_v60 = vmul.f32 %v10107_v59, %v15297_v39  ;;  %v10123_v63 = vmul.f32 0.044715, %v10113_v37 }
0x1396   :  { %v10116_v17 = vmul.f32 %v10106_v52, %v15320_v45  ;;  %v10118_v26 = vmul.f32 %v10108_v44, %v15312_v8  ;;  %v10119_v61 = vmul.f32 %v10109_v10, %v15316_v12  ;;  %v10110_v6 = vmul.f32 %v15334_v5, %v15334_v5 }
0x1397   :  { %v10124_v33 = vmul.f32 0.044715, %v10114_v18  ;;  %v10125_v7 = vmul.f32 0.044715, %v10115_v49  ;;  %v10127_v21 = vmul.f32 0.044715, %v10117_v60  ;;  %v10133_v36 = vadd.f32 %v10123_v63, %v15293_v57 }
0x1398   :  { %v10126_v27 = vmul.f32 0.044715, %v10116_v17  ;;  %v10128_v14 = vmul.f32 0.044715, %v10118_v26  ;;  %v10129_v50 = vmul.f32 0.044715, %v10119_v61  ;;  %v10111_v20 = vmul.f32 %v15309_v42, %v15309_v42 }
0x1399   :  { %v10134_v35 = vadd.f32 %v10124_v33, %v15300_v34  ;;  %v10135_v15 = vadd.f32 %v10125_v7, %v15304_v11  ;;  %v10137_v23 = vadd.f32 %v10127_v21, %v15297_v39  ;;  %v10143_v30 = vmul.f32 0.7978846, %v10133_v36 }
0x139a   :  { %v10136_v9 = vadd.f32 %v10126_v27, %v15320_v45  ;;  %v10138_v46 = vadd.f32 %v10128_v14, %v15312_v8  ;;  %v10139_v2 = vadd.f32 %v10129_v50, %v15316_v12  ;;  %v10112_v24 = vmul.f32 %v15330_v22, %v15330_v22 }
0x139b   :  { %v10144_v62 = vmul.f32 0.7978846, %v10134_v35  ;;  %v10145_v38 = vmul.f32 0.7978846, %v10135_v15  ;;  %12860 = vtanh.f32 %v10143_v30  ;;  %v10147_v13 = vmul.f32 0.7978846, %v10137_v23 }
0x139c   :  { %v10146_v41 = vmul.f32 0.7978846, %v10136_v9  ;;  %v10120_v1 = vmul.f32 %v10110_v6, %v15334_v5  ;;  %v10148_v47 = vmul.f32 0.7978846, %v10138_v46  ;;  %v10121_v29 = vmul.f32 %v10111_v20, %v15309_v42 }
0x139d   :  { %12862 = vtanh.f32 %v10144_v62  ;;  %v10122_v40 = vmul.f32 %v10112_v24, %v15330_v22  ;;  %v10149_v59 = vmul.f32 0.7978846, %v10139_v2 }
0x139e   :  { %12864 = vtanh.f32 %v10145_v38  ;;  %v10130_v37 = vmul.f32 0.044715, %v10120_v1  ;;  %v10131_v52 = vmul.f32 0.044715, %v10121_v29 }
0x139f   :  { %12866 = vtanh.f32 %v10146_v41  ;;  %v10132_v44 = vmul.f32 0.044715, %v10122_v40 }
0x13a0   :  { %12868 = vtanh.f32 %v10147_v13  ;;  %v10140_v10 = vadd.f32 %v10130_v37, %v15334_v5  ;;  %v10141_v18 = vadd.f32 %v10131_v52, %v15309_v42 }
0x13a1   :  { %12870 = vtanh.f32 %v10148_v47  ;;  %v10142_v49 = vadd.f32 %v10132_v44, %v15330_v22 }
0x13a2   :  { %12872 = vtanh.f32 %v10149_v59  ;;  %v10150_v60 = vmul.f32 0.7978846, %v10140_v10  ;;  %v10151_v63 = vmul.f32 0.7978846, %v10141_v18 }
0x13a3   :  { %v10152_v17 = vmul.f32 0.7978846, %v10142_v49 }
0x13a4   :  { %12874 = vtanh.f32 %v10150_v60 }
0x13a5   :  { %v12861_v26 = vpop.eup %12860  ;;  %12876 = vtanh.f32 %v10151_v63 }
0x13a6   :  { %v10163_v61 = vadd.f32 1.0, %v12861_v26  ;;  %12878 = vtanh.f32 %v10152_v17 }
0x13a7   :  { %v12863_v6 = vpop.eup %12862 }
0x13a8   :  { %v12865_v33 = vpop.eup %12864  ;;  %v10164_v7 = vadd.f32 1.0, %v12863_v6  ;;  %v10173_v21 = vmul.f32 0.5, %v10163_v61 }
0x13a9   :  { %v12867_v36 = vpop.eup %12866  ;;  %v10165_v27 = vadd.f32 1.0, %v12865_v33 }
0x13aa   :  { %v12869_v14 = vpop.eup %12868  ;;  %v10166_v50 = vadd.f32 1.0, %v12867_v36  ;;  %v10174_v20 = vmul.f32 0.5, %v10164_v7  ;;  %v10183_v2 = vmul.f32 %v10173_v21, %v15293_v57 }
0x13ab   :  { %v12871_v35 = vpop.eup %12870  ;;  %v10167_v15 = vadd.f32 1.0, %v12869_v14  ;;  %v10175_v23 = vmul.f32 0.5, %v10165_v27 }
0x13ac   :  { %v12873_v30 = vpop.eup %12872  ;;  %v10168_v9 = vadd.f32 1.0, %v12871_v35  ;;  %v10176_v46 = vmul.f32 0.5, %v10166_v50  ;;  %v10184_v24 = vmul.f32 %v10174_v20, %v15300_v34 }
0x13ad   :  { %v10177_v62 = vmul.f32 0.5, %v10167_v15  ;;  %v10169_v38 = vadd.f32 1.0, %v12873_v30  ;;  %v10185_v1 = vmul.f32 %v10175_v23, %v15304_v11 }
0x13ae   :  { %v12875_v41 = vpop.eup %12874  ;;  %v10178_v13 = vmul.f32 0.5, %v10168_v9  ;;  %v10186_v47 = vmul.f32 %v10176_v46, %v15320_v45  ;;  %v10203_v29 = vcombine.low %v10183_v2, %v10184_v24 }
0x13af   :  { %v12877_v40 = vpop.eup %12876  ;;  %v10187_v59 = vmul.f32 %v10177_v62, %v15297_v39  ;;  %v10170_v37 = vadd.f32 1.0, %v12875_v41  ;;  %v10179_v52 = vmul.f32 0.5, %v10169_v38 }
0x13b0   :  { %v12879_v44 = vpop.eup %12878  ;;  %v10188_v10 = vmul.f32 %v10178_v13, %v15312_v8  ;;  %v10204_v57 = vcombine.low %v10185_v1, %v10186_v47  ;;  %v10171_v18 = vadd.f32 1.0, %v12877_v40  ;;  %v10211_v63 = vrot.slane %v10203_v29, %v12983_v16 }
0x13b1   :  { %v10172_v34 = vadd.f32 1.0, %v12879_v44  ;;  %v10180_v49 = vmul.f32 0.5, %v10170_v37  ;;  %v10189_v60 = vmul.f32 %v10179_v52, %v15316_v12  ;;  %v10225_v45 = vrot.slane %v10187_v59, %v12983_v16 }
0x13b2   :  { %v10218_v11 = vrot.slane %v10204_v57, %v12983_v16  ;;  %v10181_v17 = vmul.f32 0.5, %v10171_v18 }
0x13b3   :  { %v10182_v26 = vmul.f32 0.5, %v10172_v34  ;;  %v10190_v39 = vmul.f32 %v10180_v49, %v15334_v5  ;;  %v10242_v8 = vcombine.low %v10188_v10, %v10189_v60  ;;  %v10240_v12 = vrot.slane %v10225_v45, %v12983_v16 }
0x13b4   :  { %v10226_v61 = vcombine.low %v10211_v63, %v10218_v11  ;;  %v10191_v6 = vmul.f32 %v10181_v17, %v15309_v42  ;;  %v11618_v63 = vld [vmem:[%s15589_s4 + $0x1d] ss:$0 sm:$0xff] }
0x13b5   :  { %v10192_v33 = vmul.f32 %v10182_v26, %v15330_v22  ;;  %v10250_v27 = vrot.slane %v10242_v8, %v12983_v16  ;;  %v10349_v11 = vcombine.high %v11618_v63, %v11618_v63  ;;  %v10356_v45 = vrot.slane %v11618_v63, %v12983_v16 }
0x13b6   :  { %v10233_v7 = vrot.slane %v10226_v61, %v12983_v16  ;;  %v10243_v21 = vcombine.low %v10190_v39, %v10191_v6 }
0x13b7   :  { %v10264_v50 = vrot.slane %v10192_v33, %v12983_v16  ;;  %v10363_v17 = vrot.slane %v10349_v11, %v12983_v16  ;;  %v10364_v26 = vcombine.high %v10356_v45, %v10356_v45  ;;  %v10371_v39 = vrot.slane %v10356_v45, %v12983_v16 }
0x13b8   :  { %v10241_v36 = vcombine.low %v10233_v7, %v10240_v12  ;;  %v10257_v14 = vrot.slane %v10243_v21, %v12983_v16 }
0x13b9   :  { %v10279_v42 = vrot.slane %v10264_v50, %v12983_v16  ;;  %v10378_v61 = vrot.slane %v10363_v17, %v12983_v16  ;;  %v10385_v6 = vrot.slane %v10364_v26, %v12983_v16  ;;  %v10386_v8 = vcombine.high %v10371_v39, %v10371_v39 }
0x13ba   :  { %v10283_v20 = vpack.c.bf16 %v10241_v36, %v10241_v36  ;;  %v10265_v5 = vcombine.low %v10250_v27, %v10257_v14 }
0x13bb   :  { %v10456_v33 = vcombine.low %v10371_v39, %v10385_v6  ;;  %v11626_v7 = vcombine.high %v10371_v39, %v10385_v6  ;;  %v10458_v12 = vcombine.low %v10378_v61, %v10371_v39  ;;  %v10459_v21 = vcombine.low %v10385_v6, %v10386_v8 }
0x13bc   :  { %v10272_v35 = vrot.slane %v10265_v5, %v12983_v16  ;;  %v10298_v22 = vrot.slane %v10283_v20, %v12983_v16  ;;  %v10387_v20 = vcombine.high %v10385_v6, %v10385_v6 }
0x13bd   :  { %v10466_v36 = vrot.slane %v10456_v33, %v12983_v16  ;;  %v10473_v27 = vrot.slane %v11626_v7, %v12983_v16  ;;  %v10480_v14 = vrot.slane %v10458_v12, %v12983_v16  ;;  %v10487_v50 = vrot.slane %v10459_v21, %v12983_v16 }
0x13be   :  { %v10280_v15 = vcombine.low %v10272_v35, %v10279_v42  ;;  %v10306_v23 = vrot.slane %v10298_v22, %v12983_v16  ;;  %v10299_v9 = vcombine.high %v10298_v22, %v10298_v22  ;;  %v10505_v42 = vcombine.low %v10387_v20, %v10378_v61 }
0x13bf   :  { %v10488_v5 = vcombine.low %v10466_v36, %v10473_v27  ;;  %v10489_v35 = vcombine.low %v10480_v14, %v10487_v50 }
0x13c0   :  { %v10284_v30 = vpack.c.bf16 %v10280_v15, %v10280_v15  ;;  %v10314_v2 = vcombine.high %v10306_v23, %v10306_v23  ;;  %v10313_v24 = vrot.slane %v10299_v9, %v12983_v16 }
0x13c1   :  { %v10496_v22 = vrot.slane %v10488_v5, %v12983_v16  ;;  %v10503_v15 = vrot.slane %v10489_v35, %v12983_v16 }
0x13c2   :  { %v10321_v46 = vrot.slane %v10284_v30, %v12983_v16  ;;  %v10393_v59 = vcombine.low %v10306_v23, %v10313_v24  ;;  %v10512_v23 = vrot.slane %v10505_v42, %v12983_v16 }
0x13c3   :  { %v10504_v30 = vcombine.low %v10496_v22, %v10503_v15 }
0x13c4   :  { %v10322_v62 = vcombine.high %v10321_v46, %v10321_v46  ;;  %v10329_v38 = vrot.slane %v10321_v46, %v12983_v16  ;;  %v10401_v44 = vrot.slane %v10393_v59, %v12983_v16  ;;  %v10519_v9 = vrot.slane %v10512_v23, %v12983_v16 }
0x13c6   :  { %v10336_v41 = vrot.slane %v10322_v62, %v12983_v16  ;;  %v10344_v13 = vunpack.i.h.s16 %v10329_v38  ;;  %v11619_v1 = vpack.i.b16 %v10329_v38, %v10314_v2  ;;  %v10337_v47 = vcombine.high %v10329_v38, %v10329_v38 }
0x13c8   :  { %v10346_v29 = vunpack.i.h.s16 %v10336_v41  ;;  %v11620_v40 = vpack.i.b16 %v10336_v41, %v10344_v13 }
0x13ca   :  { %v11621_v37 = vpack.i.b16 %v10337_v47, %v10346_v29  ;;  %v10394_v52 = vcombine.low %v11619_v1, %v11620_v40 }
0x13cc   :  { %v10408_v10 = vrot.slane %v10394_v52, %v12983_v16  ;;  %v10415_v57 = vrot.slane %v11621_v37, %v12983_v16 }
0x13ce   :  { %v10416_v18 = vcombine.low %v10401_v44, %v10408_v10  ;;  %v10430_v49 = vrot.slane %v10415_v57, %v12983_v16 }
0x13d0   :  { %v10423_v34 = vrot.slane %v10416_v18, %v12983_v16 }
0x13d2   :  { %v10431_v60 = vcombine.low %v10423_v34, %v10430_v49 }
0x13d4   :  { %12650 = vmatmul.mubr.msk.bf16.vlgmr.msra.gmra.mrb[192].mxu0 %vm349_vm0, %v10431_v60 }
0x14a7   :  { %v10559_v46 = vpop.f32.mrb[192].mxu0 }
0x14a8   :  { %v10560_v2 = vadd.f32 %v10559_v46, %v10504_v30  ;;  %v12651_v24 = vpop.f32.mrb[193].mxu0 }
0x14a9   :  { %v10562_v62 = vpop.f32.mrb[194].mxu0 }
0x14aa   :  { %v10568_v38 = vcombine.high %v10560_v2, %v10560_v2  ;;  %v10575_v41 = vrot.slane %v10560_v2, %v12983_v16  ;;  %v10563_v13 = vadd.f32 %v10562_v62, %v10519_v9  ;;  %v12652_v1 = vpop.f32.mrb[195].mxu0 }
0x14ac   :  { %v10582_v47 = vrot.slane %v10568_v38, %v12983_v16  ;;  %v10583_v29 = vcombine.high %v10575_v41, %v10575_v41  ;;  %v10591_v40 = vrot.slane %v10575_v41, %v12983_v16  ;;  %v10623_v59 = vrot.slane %v10563_v13, %v12983_v16 }
0x14ae   :  { %v10584_v37 = vcombine.high %v10582_v47, %v10582_v47  ;;  %v10598_v52 = vrot.slane %v10582_v47, %v12983_v16  ;;  %v10605_v44 = vrot.slane %v10583_v29, %v12983_v16  ;;  %v10613_v10 = vcombine.high %v10591_v40, %v10591_v40 }
0x14af   :  { %v10624_v57 = vcombine.high %v10623_v59, %v10623_v59  ;;  %v10631_v18 = vrot.slane %v10623_v59, %v12983_v16  ;;  %v10649_v11 = vadd.f32 %v10591_v40, %v15063_v25 }
0x14b0   :  { %v10612_v34 = vrot.slane %v10584_v37, %v12983_v16  ;;  %v10614_v49 = vcombine.high %v10598_v52, %v10598_v52  ;;  %v10615_v60 = vcombine.high %v10605_v44, %v10605_v44  ;;  %v10650_v63 = vadd.f32 %v10605_v44, %v15066_v4 }
0x14b1   :  { %v10651_v45 = vadd.f32 %v10613_v10, %v15069_v48  ;;  %v10638_v17 = vrot.slane %v10624_v57, %v12983_v16  ;;  %v10653_v26 = vadd.f32 %v10598_v52, %v15075_v19  ;;  %v10657_v7 = vadd.f32 %v10631_v18, %v15103_v51 }
0x14b2   :  { %v10616_v39 = vcombine.high %v10612_v34, %v10612_v34  ;;  %v10652_v61 = vadd.f32 %v10615_v60, %v15072_v43  ;;  %v10654_v6 = vadd.f32 %v10612_v34, %v15094_v0  ;;  %v10655_v8 = vadd.f32 %v10614_v49, %v15097_v31 }
0x14b3   :  { %v10671_v33 = vcombine.low %v10649_v11, %v10650_v63  ;;  %v10658_v25 = vadd.f32 %v10638_v17, %v15106_v28  ;;  %v10693_v43 = vrot.slane %v10653_v26, %v12983_v16 }
0x14b4   :  { %v10656_v4 = vadd.f32 %v10616_v39, %v15100_v32  ;;  %v10672_v12 = vcombine.low %v10651_v45, %v10652_v61  ;;  %v10710_v48 = vcombine.low %v10654_v6, %v10655_v8 }
0x14b5   :  { %v10679_v36 = vrot.slane %v10671_v33, %v12983_v16  ;;  %v10732_v51 = vrot.slane %v10658_v25, %v12983_v16  ;;  %v10708_v14 = vrot.slane %v10693_v43, %v12983_v16 }
0x14b6   :  { %v10711_v21 = vcombine.low %v10656_v4, %v10657_v7  ;;  %v10686_v19 = vrot.slane %v10672_v12, %v12983_v16  ;;  %v10718_v0 = vrot.slane %v10710_v48, %v12983_v16 }
0x14b7   :  { %v10747_v5 = vrot.slane %v10732_v51, %v12983_v16 }
0x14b8   :  { %v10694_v27 = vcombine.low %v10679_v36, %v10686_v19  ;;  %v10725_v31 = vrot.slane %v10711_v21, %v12983_v16 }
0x14ba   :  { %v10701_v32 = vrot.slane %v10694_v27, %v12983_v16  ;;  %v10733_v28 = vcombine.low %v10718_v0, %v10725_v31 }
0x14bc   :  { %v10709_v50 = vcombine.low %v10701_v32, %v10708_v14  ;;  %v10740_v20 = vrot.slane %v10733_v28, %v12983_v16 }
0x14be   :  { %v10751_v35 = vsel %vm559_vm1, %v10709_v50, 0.0  ;;  %v10748_v42 = vcombine.low %v10740_v20, %v10747_v5 }
0x14bf   :  { %10752 = vadd.xlane.f32.xlu1 %v10751_v35  ;;  %v12758_v35 = vld [vmem:[%s15588_s3 + $0x60] sm:$0xff]  }
0x14c0   :  { %v10754_v22 = vsel %vm559_vm1, %v10748_v42, 0.0  ;;  %12654 = vmatpush3.bf16.msra.mxu1 %v12758_v35  ;;  %v12759_v42 = vld [vmem:[%s15588_s3 + $0x68] sm:$0xff]  }
0x14c1   :  { %10755 = vadd.xlane.f32.xlu0 %v10754_v22  ;;  %12655 = vmatprep.subr.bf16.mxu1 %v12912_v3 }
0x14c4   :  { %12656 = vmatpush3.bf16.msra.mxu1 %v12759_v42 }
0x154c   :  { %v10753_v15 = vpop.xlane.xlu1 %10752 }
0x154d   :  { %v10757_v23 = vmul.f32 0.03125, %v10753_v15  ;;  %v11628_v15 = vld [vmem:[%s15589_s4 + $0x2b] ss:$0 sm:$0xff] }
0x154e   :  { %v10756_v30 = vpop.xlane.xlu0 %10755 }
0x154f   :  { %v10764_v9 = vrot.slane %v10757_v23, %v13090_v53  ;;  %v10768_v46 = vrot.slane %v10757_v23, %v13093_v54  ;;  %v10772_v2 = vrot.slane %v10757_v23, %v13096_v55  ;;  %v10776_v24 = vrot.slane %v10757_v23, %v13099_v56 }
0x1550   :  { %v10758_v62 = vmul.f32 0.03125, %v10756_v30  ;;  %v10780_v38 = vrot.slane %v10757_v23, %v13102_v58  ;;  %v11629_v30 = vld [vmem:[%s15589_s4 + $0x2c] ss:$0 sm:$0xff] }
0x1551   :  { %v15451_v41 = vsub.f32 %v10649_v11, %v10764_v9  ;;  %v15453_v13 = vsub.f32 %v10650_v63, %v10768_v46  ;;  %v15455_v1 = vsub.f32 %v10651_v45, %v10772_v2  ;;  %v15457_v47 = vsub.f32 %v10652_v61, %v10776_v24 }
0x1552   :  { %v10784_v29 = vrot.slane %v10758_v62, %v13090_v53  ;;  %v10788_v40 = vrot.slane %v10758_v62, %v13093_v54  ;;  %v10792_v59 = vrot.slane %v10758_v62, %v13096_v55  ;;  %v10796_v37 = vrot.slane %v10758_v62, %v13099_v56 }
0x1553   :  { %v15463_v52 = vsub.f32 %v10653_v26, %v10780_v38  ;;  %v10821_v44 = vmul.f32 %v15451_v41, %v15451_v41  ;;  %v10822_v10 = vmul.f32 %v15453_v13, %v15453_v13  ;;  %v10823_v57 = vmul.f32 %v15455_v1, %v15455_v1 }
0x1554   :  { %v10824_v18 = vmul.f32 %v15457_v47, %v15457_v47  ;;  %v10800_v34 = vrot.slane %v10758_v62, %v13102_v58  ;;  %v15474_v49 = vsub.f32 %v10654_v6, %v10784_v29  ;;  %v15476_v60 = vsub.f32 %v10655_v8, %v10788_v40 }
0x1555   :  { %v10825_v63 = vmul.f32 %v15463_v52, %v15463_v52  ;;  %v10841_v11 = vcombine.low %v10821_v44, %v10822_v10  ;;  %v15480_v45 = vsub.f32 %v10656_v4, %v10792_v59  ;;  %v15482_v17 = vsub.f32 %v10657_v7, %v10796_v37 }
0x1556   :  { %v10842_v26 = vcombine.low %v10823_v57, %v10824_v18  ;;  %v15484_v39 = vsub.f32 %v10658_v25, %v10800_v34  ;;  %v10826_v61 = vmul.f32 %v15474_v49, %v15474_v49  ;;  %v10827_v6 = vmul.f32 %v15476_v60, %v15476_v60 }
0x1557   :  { %v10849_v8 = vrot.slane %v10841_v11, %v12983_v16  ;;  %v10828_v33 = vmul.f32 %v15480_v45, %v15480_v45  ;;  %v10829_v4 = vmul.f32 %v15482_v17, %v15482_v17  ;;  %v10863_v12 = vrot.slane %v10825_v63, %v12983_v16 }
0x1558   :  { %v10856_v7 = vrot.slane %v10842_v26, %v12983_v16  ;;  %v10830_v25 = vmul.f32 %v15484_v39, %v15484_v39  ;;  %v10880_v48 = vcombine.low %v10826_v61, %v10827_v6  ;;  %v11007_v2 = vrot.slane %v11628_v15, %v12983_v16 }
0x1559   :  { %v10881_v21 = vcombine.low %v10828_v33, %v10829_v4  ;;  %v10878_v31 = vrot.slane %v10863_v12, %v12983_v16  ;;  %v11066_v62 = vrot.slane %v11629_v30, %v12983_v16  ;;  %v11000_v38 = vcombine.high %v11628_v15, %v11628_v15 }
0x155a   :  { %v10864_v36 = vcombine.low %v10849_v8, %v10856_v7  ;;  %v10888_v19 = vrot.slane %v10880_v48, %v12983_v16  ;;  %v10902_v27 = vrot.slane %v10830_v25, %v12983_v16  ;;  %v11015_v29 = vcombine.high %v11007_v2, %v11007_v2 }
0x155b   :  { %v10895_v43 = vrot.slane %v10881_v21, %v12983_v16  ;;  %v11059_v40 = vcombine.high %v11629_v30, %v11629_v30  ;;  %v11074_v59 = vcombine.high %v11066_v62, %v11066_v62  ;;  %v11014_v37 = vrot.slane %v11000_v38, %v12983_v16 }
0x155c   :  { %v10871_v0 = vrot.slane %v10864_v36, %v12983_v16  ;;  %v10917_v28 = vrot.slane %v10902_v27, %v12983_v16  ;;  %v11022_v44 = vrot.slane %v11007_v2, %v12983_v16  ;;  %v11036_v10 = vrot.slane %v11015_v29, %v12983_v16 }
0x155d   :  { %v10903_v51 = vcombine.low %v10888_v19, %v10895_v43  ;;  %v11073_v57 = vrot.slane %v11059_v40, %v12983_v16  ;;  %v11081_v18 = vrot.slane %v11066_v62, %v12983_v16  ;;  %v11095_v34 = vrot.slane %v11074_v59, %v12983_v16 }
0x155e   :  { %v10879_v32 = vcombine.low %v10871_v0, %v10878_v31  ;;  %v11029_v11 = vrot.slane %v11014_v37, %v12983_v16  ;;  %v11037_v26 = vcombine.high %v11022_v44, %v11022_v44  ;;  %v11038_v61 = vcombine.high %v11036_v10, %v11036_v10 }
0x155f   :  { %v10910_v14 = vrot.slane %v10903_v51, %v12983_v16  ;;  %v11088_v12 = vrot.slane %v11073_v57, %v12983_v16  ;;  %v11096_v25 = vcombine.high %v11081_v18, %v11081_v18  ;;  %v11097_v48 = vcombine.high %v11095_v34, %v11095_v34 }
0x1560   :  { %v10921_v50 = vsel %vm559_vm1, %v10879_v32, 0.0 }
0x1561   :  { %10922 = vadd.xlane.f32.xlu1 %v10921_v50  ;;  %v10918_v20 = vcombine.low %v10910_v14, %v10917_v28 }
0x1563   :  { %v10924_v5 = vsel %vm559_vm1, %v10918_v20, 0.0 }
0x1564   :  { %10925 = vadd.xlane.f32.xlu0 %v10924_v5 }
0x15ee   :  { %v10923_v22 = vpop.xlane.xlu1 %10922 }
0x15ef   :  { %v10927_v23 = vmul.f32 0.03125, %v10923_v22 }
0x15f1   :  { %v10929_v9 = vadd.f32 1e-12, %v10927_v23  ;;  %v10926_v46 = vpop.xlane.xlu0 %10925 }
0x15f2   :  { %v10928_v24 = vmul.f32 0.03125, %v10926_v46 }
0x15f3   :  { %12880 = vrsqrt.f32 %v10929_v9 }
0x15f4   :  { %v10930_v3 = vadd.f32 1e-12, %v10928_v24 }
0x15f6   :  { %12882 = vrsqrt.f32 %v10930_v3 }
0x15fd   :  { %v12881_v63 = vpop.eup %12880 }
0x15fe   :  { %v10938_v6 = vrot.slane %v12881_v63, %v13090_v53  ;;  %v10942_v8 = vrot.slane %v12881_v63, %v13093_v54  ;;  %v10946_v33 = vrot.slane %v12881_v63, %v13096_v55  ;;  %v10950_v4 = vrot.slane %v12881_v63, %v13099_v56 }
0x15ff   :  { %v10954_v7 = vrot.slane %v12881_v63, %v13102_v58 }
0x1600   :  { %v12883_v21 = vpop.eup %12882  ;;  %v10985_v36 = vmul.f32 %v10938_v6, %v15451_v41  ;;  %v10986_v19 = vmul.f32 %v10942_v8, %v15453_v13  ;;  %v10987_v43 = vmul.f32 %v10946_v33, %v15455_v1  ;;  %v10988_v27 = vmul.f32 %v10950_v4, %v15457_v47 }
0x1601   :  { %v10958_v0 = vrot.slane %v12883_v21, %v13090_v53  ;;  %v10962_v31 = vrot.slane %v12883_v21, %v13093_v54  ;;  %v10966_v51 = vrot.slane %v12883_v21, %v13096_v55  ;;  %v10970_v32 = vrot.slane %v12883_v21, %v13099_v56 }
0x1602   :  { %v10974_v14 = vrot.slane %v12883_v21, %v13102_v58  ;;  %v10989_v28 = vmul.f32 %v10954_v7, %v15463_v52  ;;  %v11044_v50 = vmul.f32 %v11022_v44, %v10985_v36  ;;  %v11045_v41 = vmul.f32 %v11036_v10, %v10986_v19 }
0x1603   :  { %v10990_v13 = vmul.f32 %v10958_v0, %v15474_v49  ;;  %v10991_v1 = vmul.f32 %v10962_v31, %v15476_v60  ;;  %v10992_v47 = vmul.f32 %v10966_v51, %v15480_v45  ;;  %v10993_v53 = vmul.f32 %v10970_v32, %v15482_v17 }
0x1604   :  { %v10994_v54 = vmul.f32 %v10974_v14, %v15484_v39  ;;  %v11046_v20 = vmul.f32 %v11037_v26, %v10987_v43  ;;  %v11047_v55 = vmul.f32 %v11038_v61, %v10988_v27  ;;  %v11048_v5 = vmul.f32 %v11029_v11, %v10989_v28 }
0x1605   :  { %v11049_v56 = vmul.f32 %v11022_v44, %v10990_v13  ;;  %v11050_v35 = vmul.f32 %v11036_v10, %v10991_v1  ;;  %v11051_v58 = vmul.f32 %v11037_v26, %v10992_v47  ;;  %v11052_v42 = vmul.f32 %v11038_v61, %v10993_v53 }
0x1606   :  { %v11053_v52 = vmul.f32 %v11029_v11, %v10994_v54  ;;  %v11103_v22 = vadd.f32 %v11081_v18, %v11044_v50  ;;  %v11104_v15 = vadd.f32 %v11095_v34, %v11045_v41  ;;  %v11105_v23 = vadd.f32 %v11096_v25, %v11046_v20 }
0x1607   :  { %v11106_v49 = vadd.f32 %v11097_v48, %v11047_v55  ;;  %v11107_v30 = vadd.f32 %v11088_v12, %v11048_v5  ;;  %v11108_v60 = vadd.f32 %v11081_v18, %v11049_v56  ;;  %v11109_v9 = vadd.f32 %v11095_v34, %v11050_v35 }
0x1608   :  { %v11110_v45 = vadd.f32 %v11096_v25, %v11051_v58  ;;  %v11111_v46 = vadd.f32 %v11097_v48, %v11052_v42  ;;  %v11112_v17 = vadd.f32 %v11088_v12, %v11053_v52  ;;  %v11123_v2 = vcombine.low %v11103_v22, %v11104_v15 }
0x1609   :  { %v11124_v39 = vcombine.low %v11105_v23, %v11106_v49  ;;  %v11162_v24 = vcombine.low %v11108_v60, %v11109_v9  ;;  %v11205_v38 = vpack.c.bf16 %v11103_v22, %v11103_v22  ;;  %v11206_v29 = vpack.c.bf16 %v11108_v60, %v11108_v60 }
0x160a   :  { %v11131_v62 = vrot.slane %v11123_v2, %v12983_v16  ;;  %v11163_v3 = vcombine.low %v11110_v45, %v11111_v46  ;;  %v11145_v59 = vrot.slane %v11107_v30, %v12983_v16  ;;  %v11184_v10 = vrot.slane %v11112_v17, %v12983_v16 }
0x160b   :  { %v11138_v40 = vrot.slane %v11124_v39, %v12983_v16  ;;  %v11170_v37 = vrot.slane %v11162_v24, %v12983_v16  ;;  %v11219_v57 = vunpack.c.l.b16 %v11206_v29  ;;  %v11218_v63 = vunpack.c.l.b16 %v11205_v38 }
0x160c   :  { %v11177_v44 = vrot.slane %v11163_v3, %v12983_v16  ;;  %v11160_v61 = vrot.slane %v11145_v59, %v12983_v16  ;;  %v11199_v8 = vrot.slane %v11184_v10, %v12983_v16 }
0x160d   :  { %v11146_v18 = vcombine.low %v11131_v62, %v11138_v40  ;;  %v11220_v11 = vrot.slane %v11219_v57, 7 }
0x160e   :  { %v11185_v34 = vcombine.low %v11170_v37, %v11177_v44 }
0x160f   :  { %v11153_v26 = vrot.slane %v11146_v18, %v12983_v16  ;;  %v11222_v33 = vsel %vm11221_vm9, %v11220_v11, %v11218_v63 }
0x1610   :  { %v11192_v6 = vrot.slane %v11185_v34, %v12983_v16  ;;  %v11223_v7 = vpack.c.b16 %v11222_v33, %v11222_v33  ;;  %v11630_v16 = vld [vmem:[%s15589_s4 + $0x2d] ss:$0 sm:$0xff] }
0x1611   :  { %v11161_v4 = vcombine.low %v11153_v26, %v11160_v61 }
0x1612   :  { %v11200_v12 = vcombine.low %v11192_v6, %v11199_v8  ;;  %12658 = vmatmul.mubr.msk.bf16.vlgmr.msra.gmra.mrb[208].mxu1 %vm1584_vm3, %v11223_v7 }
0x1613   :  { %11203 = vst.msk [vmem:[%s15590_s5] sm:$0x1f] %vm559_vm1, %v11161_v4 }
0x1614   :  { %11204 = vst.msk [vmem:[%s15590_s5 + $0x8] sm:$0x1f] %vm559_vm1, %v11200_v12 }
0x16e5   :  { %v11273_v25 = vpop.f32.mrb[208].mxu1 }
0x16e6   :  { %v11274_v48 = vadd.f32 %v11630_v16, %v11273_v25  ;;  %v12659_v21 = vpop.f32.mrb[209].mxu1 }
0x16e7   :  { %v11276_v36 = vpop.f32.mrb[210].mxu1 }
0x16e8   :  { %12884 = vtanh.f32 %v11274_v48  ;;  %v12660_v19 = vpop.f32.mrb[211].mxu1 }
0x16f2   :  { %v12885_v43 = vpop.eup %12884 }
0x16f3   :  { %11281 = vst.msk [vmem:[#allocation2] sm:$0x3] %vm11280_vm10, %v12885_v43 }
0x16f4   :  { %12897 = shalt.err (!%p12894_p4)
}
0x16f5   :  { %s12898_s27 = scalar_lea.hbm %s15591_s6, 32 }
0x16f6   :  { %p12899_p5 = scmp.ne.s32.totalorder %s15591_s6, %s12898_s27  ;;  %p12902_p6 = scmp.lt.u32.totalorder %s12898_s27, %s15591_s6 }
0x16f8   :  { %p12904_p7 = pnand %p12902_p6, %p12899_p5 }
0x16fa   :  { %12907 = shalt.err (!%p12904_p7)
}
0x16fb   :  { %11293 = dma.vmem_to_hbm [thread:$0]  %s11291_s25, 32, %s15591_s6, [#allocation3]  }
0x16fc   :  { %12908 = dma.done.wait [#allocation3], 32  }
0x16fd   :  { %12909 = vsyncadd [#allocation3], 4294967264 }
0x16fe   :  { %11299 = vsyncpa [#allocation3], 1 }

</bundles_post_ra>
